<compile_context>
chip_gen: v6e
topology: v6e:2x2x1
jax: 0.10.0
libtpu: 0.0.40
codegen_flags: <defaults>
</compile_context>

<pallas_src>
import functools

import jax
import jax.numpy as jnp
from jax import lax
from jax.experimental import pallas as pl
from jax.experimental.pallas import tpu as pltpu

_K1D = (0.05, 0.25, 0.4, 0.25, 0.05)   # fixed Gaussian taps from the module
_EPS = 0.001


def _round_up(a, b):
    return -(-a // b) * b


# ----------------------------- in-kernel math ------------------------------
def _gauss5_sep(p):
    """Separable 5-tap Gaussian with wrap-around indexing.

    The caller guarantees rows/cols -1,-2 of the image are stored at the last
    two rows/cols of the buffer (replicate ring), so roll wraparound lands on
    the replicate padding. Result is valid on [0:H, 0:W].
    """
    hp, wp = p.shape
    k0 = jnp.float32(_K1D[2])
    k1 = jnp.float32(_K1D[1])   # == _K1D[3]
    k2 = jnp.float32(_K1D[0])   # == _K1D[4]
    # horizontal pass (lane rolls): h[r, c] = sum_t k[t] * p[r, (c + t - 2) % Wp]
    h = k0 * p
    h = h + k1 * (pltpu.roll(p, wp - 1, 1) + pltpu.roll(p, 1, 1))
    h = h + k2 * (pltpu.roll(p, wp - 2, 1) + pltpu.roll(p, 2, 1))
    # vertical pass (sublane rolls)
    g = k0 * h
    g = g + k1 * (pltpu.roll(h, hp - 1, 0) + pltpu.roll(h, 1, 0))
    g = g + k2 * (pltpu.roll(h, hp - 2, 0) + pltpu.roll(h, 2, 0))
    return g


def _replicate_ring(m, ri, ci, H, W):
    """Write the wrapped replicate-pad ring of `m` (valid data on [0:H, 0:W])."""
    hp, wp = m.shape
    bot = jnp.broadcast_to(m[H - 1:H, :], (hp, wp))
    top = jnp.broadcast_to(m[0:1, :], (hp, wp))
    m = jnp.where(jnp.logical_and(ri >= H, ri < H + 2), bot, m)
    m = jnp.where(ri >= hp - 2, top, m)
    right = jnp.broadcast_to(m[:, W - 1:W], (hp, wp))
    left = jnp.broadcast_to(m[:, 0:1], (hp, wp))
    m = jnp.where(jnp.logical_and(ci >= W, ci < W + 2), right, m)
    m = jnp.where(ci >= wp - 2, left, m)
    return m


def _edge_loss_kernel(d_ref, out_ref, *, H, W, B, NC, eps):
    _, hp, wp = d_ref.shape
    gidx = pl.program_id(0)
    nvalid = jnp.minimum(jnp.int32(NC) - gidx * jnp.int32(B), jnp.int32(B))

    # Hoisted once per grid step (shared by all planes of the block).
    ri = lax.broadcasted_iota(jnp.int32, (hp, wp), 0)
    ci = lax.broadcasted_iota(jnp.int32, (hp, wp), 1)
    even = ((ri | ci) & 1) == 0                       # even row AND even col
    in_img = jnp.logical_and(ri < H, ci < W)
    eps2 = jnp.float32(eps * eps)

    def one_plane(b):
        p = d_ref[b].astype(jnp.float32)              # diff image at [0:H, 0:W]
        g1 = _gauss5_sep(p)                           # conv_gauss(d)
        m = jnp.where(even, g1 * jnp.float32(4.0), jnp.float32(0.0))
        m = _replicate_ring(m, ri, ci, H, W)          # replicate pad for 2nd conv
        g2 = _gauss5_sep(m)                           # conv_gauss(upsampled)
        lap = p - g2                                  # laplacian of the diff
        val = jnp.sqrt(lap * lap + eps2)              # charbonnier
        return jnp.sum(jnp.where(in_img, val, jnp.float32(0.0)))

    def body(b, acc):
        s = one_plane(b)
        return acc + jnp.where(b < nvalid, s, jnp.float32(0.0))

    total = lax.fori_loop(0, B, body, jnp.float32(0.0), unroll=True)
    out_ref[...] = jnp.broadcast_to(total, out_ref.shape)


# --------------------------------- wrapper ---------------------------------
def _pad_plane_wrapped(d, hp, wp):
    """(NC, H, W) -> (NC, hp, wp); replicate ring stored in wrapped positions."""
    nc, h, w = d.shape
    bot = jnp.concatenate([d[:, h - 1:h, :]] * 2, axis=1)
    top = jnp.concatenate([d[:, 0:1, :]] * 2, axis=1)
    zr = jnp.zeros((nc, hp - (h + 4), w), d.dtype)
    rows = jnp.concatenate([d, bot, zr, top], axis=1)            # (nc, hp, w)
    right = jnp.concatenate([rows[:, :, w - 1:w]] * 2, axis=2)
    left = jnp.concatenate([rows[:, :, 0:1]] * 2, axis=2)
    zc = jnp.zeros((nc, hp, wp - (w + 4)), rows.dtype)
    return jnp.concatenate([rows, right, zc, left], axis=2)      # (nc, hp, wp)


def edge_loss_v2(x, y):
    N, C, H, W = x.shape
    assert y.shape == x.shape
    NC = N * C
    # LoG is linear: laplacian(x) - laplacian(y) == laplacian(x - y).
    d = (x - y).astype(jnp.float32).reshape(NC, H, W)

    hp = _round_up(H + 4, 8)
    wp = _round_up(W + 4, 128)
    plane_bytes = hp * wp * 4
    # Planes per grid step: double-buffered input block kept within a
    # conservative budget (safe on v7x's 64 MiB VMEM as well as v5e/v6e).
    B = int(max(1, min(NC, 32, (8 * 1024 * 1024) // (2 * plane_bytes))))
    G = -(-NC // B)
    NCp = G * B

    P = _pad_plane_wrapped(d, hp, wp)
    if NCp > NC:
        P = jnp.concatenate([P, jnp.zeros((NCp - NC, hp, wp), P.dtype)], axis=0)

    kernel = functools.partial(_edge_loss_kernel, H=H, W=W, B=B, NC=NC, eps=_EPS)
    partial_sums = pl.pallas_call(
        kernel,
        out_shape=jax.ShapeDtypeStruct((G, 8, 128), jnp.float32),
        grid_spec=pltpu.PrefetchScalarGridSpec(
            num_scalar_prefetch=0,
            grid=(G,),
            in_specs=[pl.BlockSpec((B, hp, wp), lambda g: (g, 0, 0))],
            out_specs=pl.BlockSpec((1, 8, 128), lambda g: (g, 0, 0)),
        ),
        compiler_params=pltpu.CompilerParams(
            dimension_semantics=("parallel",),
            vmem_limit_bytes=32 * 1024 * 1024,
        ),
    )(P)
    return jnp.sum(partial_sums[:, 0, 0]) / jnp.float32(NC * H * W)


# --------------------------- pure-JAX reference -----------------------------
def _conv_gauss_ref(img):
    _, C, _, _ = img.shape
    k1 = jnp.array(_K1D, jnp.float32)
    k2 = jnp.outer(k1, k1)
    w = jnp.broadcast_to(k2, (C, 1, 5, 5))
    p = jnp.pad(img, ((0, 0), (0, 0), (2, 2), (2, 2)), mode="edge")
    return lax.conv_general_dilated(
        p, w, window_strides=(1, 1), padding="VALID",
        dimension_numbers=("NCHW", "OIHW", "NCHW"), feature_group_count=C)


def _laplacian_ref(img):
    _, _, H, W = img.shape
    f = _conv_gauss_ref(img)
    row = lax.broadcasted_iota(jnp.int32, (1, 1, H, W), 2)
    col = lax.broadcasted_iota(jnp.int32, (1, 1, H, W), 3)
    even = jnp.logical_and((row % 2) == 0, (col % 2) == 0)
    newf = jnp.where(even, f * 4.0, 0.0)
    return img - _conv_gauss_ref(newf)


def edge_loss_v2_ref(x, y):
    d = _laplacian_ref(x) - _laplacian_ref(y)
    return jnp.mean(jnp.sqrt(d * d + _EPS * _EPS))


# ----------------------------------- main -----------------------------------
if __name__ == "__main__":
    key = jax.random.PRNGKey(0)
    kx, ky = jax.random.split(key)
    # C must be 3 (the module's depthwise kernel is built for 3 channels).
    x = jax.random.normal(kx, (2, 3, 16, 16), dtype=jnp.float32)
    y = jax.random.normal(ky, (2, 3, 16, 16), dtype=jnp.float32)

    loss = jax.block_until_ready(edge_loss_v2(x, y))
    ref = jax.block_until_ready(edge_loss_v2_ref(x, y))

    assert jnp.isfinite(loss)
    assert abs(float(loss) - float(ref)) < 1e-4, (float(loss), float(ref))
    print("KERNEL_OK")
</pallas_src>

<mosaic_0001>
module attributes {stable_mosaic.version = 11 : i64} {
  func.func @_edge_loss_kernel(%arg0: i32, %arg1: memref<6x24x128xf32, #tpu.memory_space<vmem>>, %arg2: memref<1x8x128xf32, #tpu.memory_space<vmem>>) attributes {dimension_semantics = [#tpu.dimension_semantics<parallel>], iteration_bounds = array<i64: 1>, scalar_prefetch = 0 : i64, scratch_operands = 0 : i64, tpu.core_type = #tpu.core_type<tc>, window_params = [{transform_indices = @transform_0, window_bounds = array<i64: 6, 24, 128>}, {transform_indices = @transform_1, window_bounds = array<i64: 1, 8, 128>}]} {
    %c6_i32 = arith.constant 6 : i32
    %0 = arith.muli %arg0, %c6_i32 : i32
    %c6_i32_0 = arith.constant 6 : i32
    %1 = arith.subi %c6_i32_0, %0 : i32
    %c6_i32_1 = arith.constant 6 : i32
    %2 = arith.minsi %1, %c6_i32_1 : i32
    %3 = tpu.iota {dimensions = array<i32: 0>} : vector<24x128xi32>
    %4 = tpu.iota {dimensions = array<i32: 1>} : vector<24x128xi32>
    %5 = arith.ori %3, %4 : vector<24x128xi32>
    %c1_i32 = arith.constant 1 : i32
    %6 = vector.broadcast %c1_i32 : i32 to vector<24x128xi32>
    %7 = arith.andi %5, %6 : vector<24x128xi32>
    %c0_i32 = arith.constant 0 : i32
    %8 = vector.broadcast %c0_i32 : i32 to vector<24x128xi32>
    %9 = arith.cmpi eq, %7, %8 : vector<24x128xi32>
    %c16_i32 = arith.constant 16 : i32
    %10 = vector.broadcast %c16_i32 : i32 to vector<24x128xi32>
    %11 = arith.cmpi slt, %3, %10 : vector<24x128xi32>
    %c16_i32_2 = arith.constant 16 : i32
    %12 = vector.broadcast %c16_i32_2 : i32 to vector<24x128xi32>
    %13 = arith.cmpi slt, %4, %12 : vector<24x128xi32>
    %14 = arith.andi %11, %13 : vector<24x128xi1>
    %cst = arith.constant 9.99999997E-7 : f32
    %cst_3 = arith.constant 0.000000e+00 : f32
    %c0_i32_4 = arith.constant 0 : i32
    %15 = arith.index_cast %c0_i32_4 : i32 to index
    %c0 = arith.constant 0 : index
    %c0_5 = arith.constant 0 : index
    %16 = vector.load %arg1[%15, %c0, %c0_5] : memref<6x24x128xf32, #tpu.memory_space<vmem>>, vector<1x24x128xf32>
    %17 = vector.shape_cast %16 : vector<1x24x128xf32> to vector<24x128xf32>
    %cst_6 = arith.constant 4.000000e-01 : f32
    %18 = vector.broadcast %cst_6 : f32 to vector<24x128xf32>
    %19 = arith.mulf %18, %17 : vector<24x128xf32>
    %c127_i32 = arith.constant 127 : i32
    %20 = tpu.dynamic_rotate %17 by %c127_i32 dim 1 : vector<24x128xf32>, i32 -> vector<24x128xf32>
    %c1_i32_7 = arith.constant 1 : i32
    %21 = tpu.dynamic_rotate %17 by %c1_i32_7 dim 1 : vector<24x128xf32>, i32 -> vector<24x128xf32>
    %22 = arith.addf %20, %21 : vector<24x128xf32>
    %cst_8 = arith.constant 2.500000e-01 : f32
    %23 = vector.broadcast %cst_8 : f32 to vector<24x128xf32>
    %24 = arith.mulf %23, %22 : vector<24x128xf32>
    %25 = arith.addf %19, %24 : vector<24x128xf32>
    %c126_i32 = arith.constant 126 : i32
    %26 = tpu.dynamic_rotate %17 by %c126_i32 dim 1 : vector<24x128xf32>, i32 -> vector<24x128xf32>
    %c2_i32 = arith.constant 2 : i32
    %27 = tpu.dynamic_rotate %17 by %c2_i32 dim 1 : vector<24x128xf32>, i32 -> vector<24x128xf32>
    %28 = arith.addf %26, %27 : vector<24x128xf32>
    %cst_9 = arith.constant 5.000000e-02 : f32
    %29 = vector.broadcast %cst_9 : f32 to vector<24x128xf32>
    %30 = arith.mulf %29, %28 : vector<24x128xf32>
    %31 = arith.addf %25, %30 : vector<24x128xf32>
    %cst_10 = arith.constant 4.000000e-01 : f32
    %32 = vector.broadcast %cst_10 : f32 to vector<24x128xf32>
    %33 = arith.mulf %32, %31 : vector<24x128xf32>
    %c23_i32 = arith.constant 23 : i32
    %34 = tpu.dynamic_rotate %31 by %c23_i32 dim 0 : vector<24x128xf32>, i32 -> vector<24x128xf32>
    %c1_i32_11 = arith.constant 1 : i32
    %35 = tpu.dynamic_rotate %31 by %c1_i32_11 dim 0 : vector<24x128xf32>, i32 -> vector<24x128xf32>
    %36 = arith.addf %34, %35 : vector<24x128xf32>
    %cst_12 = arith.constant 2.500000e-01 : f32
    %37 = vector.broadcast %cst_12 : f32 to vector<24x128xf32>
    %38 = arith.mulf %37, %36 : vector<24x128xf32>
    %39 = arith.addf %33, %38 : vector<24x128xf32>
    %c22_i32 = arith.constant 22 : i32
    %40 = tpu.dynamic_rotate %31 by %c22_i32 dim 0 : vector<24x128xf32>, i32 -> vector<24x128xf32>
    %c2_i32_13 = arith.constant 2 : i32
    %41 = tpu.dynamic_rotate %31 by %c2_i32_13 dim 0 : vector<24x128xf32>, i32 -> vector<24x128xf32>
    %42 = arith.addf %40, %41 : vector<24x128xf32>
    %cst_14 = arith.constant 5.000000e-02 : f32
    %43 = vector.broadcast %cst_14 : f32 to vector<24x128xf32>
    %44 = arith.mulf %43, %42 : vector<24x128xf32>
    %45 = arith.addf %39, %44 : vector<24x128xf32>
    %cst_15 = arith.constant 4.000000e+00 : f32
    %46 = vector.broadcast %cst_15 : f32 to vector<24x128xf32>
    %47 = arith.mulf %45, %46 : vector<24x128xf32>
    %cst_16 = arith.constant 0.000000e+00 : f32
    %48 = vector.broadcast %cst_16 : f32 to vector<24x128xf32>
    %49 = arith.select %9, %47, %48 : vector<24x128xi1>, vector<24x128xf32>
    %50 = vector.extract_strided_slice %49 {offsets = [15, 0], sizes = [1, 128], strides = [1, 1]} : vector<24x128xf32> to vector<1x128xf32>
    %51 = vector.shape_cast %50 : vector<1x128xf32> to vector<1x128xf32>
    %52 = vector.broadcast %51 : vector<1x128xf32> to vector<24x128xf32>
    %53 = vector.extract_strided_slice %49 {offsets = [0, 0], sizes = [1, 128], strides = [1, 1]} : vector<24x128xf32> to vector<1x128xf32>
    %54 = vector.shape_cast %53 : vector<1x128xf32> to vector<1x128xf32>
    %55 = vector.broadcast %54 : vector<1x128xf32> to vector<24x128xf32>
    %c16_i32_17 = arith.constant 16 : i32
    %56 = vector.broadcast %c16_i32_17 : i32 to vector<24x128xi32>
    %57 = arith.cmpi sge, %3, %56 : vector<24x128xi32>
    %c18_i32 = arith.constant 18 : i32
    %58 = vector.broadcast %c18_i32 : i32 to vector<24x128xi32>
    %59 = arith.cmpi slt, %3, %58 : vector<24x128xi32>
    %60 = arith.andi %57, %59 : vector<24x128xi1>
    %61 = arith.select %60, %52, %49 : vector<24x128xi1>, vector<24x128xf32>
    %c22_i32_18 = arith.constant 22 : i32
    %62 = vector.broadcast %c22_i32_18 : i32 to vector<24x128xi32>
    %63 = arith.cmpi sge, %3, %62 : vector<24x128xi32>
    %64 = arith.select %63, %55, %61 : vector<24x128xi1>, vector<24x128xf32>
    %65 = vector.extract_strided_slice %64 {offsets = [0, 15], sizes = [24, 1], strides = [1, 1]} : vector<24x128xf32> to vector<24x1xf32>
    %66 = vector.shape_cast %65 : vector<24x1xf32> to vector<24x1xf32>
    %67 = vector.broadcast %66 : vector<24x1xf32> to vector<24x128xf32>
    %68 = vector.extract_strided_slice %64 {offsets = [0, 0], sizes = [24, 1], strides = [1, 1]} : vector<24x128xf32> to vector<24x1xf32>
    %69 = vector.shape_cast %68 : vector<24x1xf32> to vector<24x1xf32>
    %70 = vector.broadcast %69 : vector<24x1xf32> to vector<24x128xf32>
    %c16_i32_19 = arith.constant 16 : i32
    %71 = vector.broadcast %c16_i32_19 : i32 to vector<24x128xi32>
    %72 = arith.cmpi sge, %4, %71 : vector<24x128xi32>
    %c18_i32_20 = arith.constant 18 : i32
    %73 = vector.broadcast %c18_i32_20 : i32 to vector<24x128xi32>
    %74 = arith.cmpi slt, %4, %73 : vector<24x128xi32>
    %75 = arith.andi %72, %74 : vector<24x128xi1>
    %76 = arith.select %75, %67, %64 : vector<24x128xi1>, vector<24x128xf32>
    %c126_i32_21 = arith.constant 126 : i32
    %77 = vector.broadcast %c126_i32_21 : i32 to vector<24x128xi32>
    %78 = arith.cmpi sge, %4, %77 : vector<24x128xi32>
    %79 = arith.select %78, %70, %76 : vector<24x128xi1>, vector<24x128xf32>
    %cst_22 = arith.constant 4.000000e-01 : f32
    %80 = vector.broadcast %cst_22 : f32 to vector<24x128xf32>
    %81 = arith.mulf %80, %79 : vector<24x128xf32>
    %c127_i32_23 = arith.constant 127 : i32
    %82 = tpu.dynamic_rotate %79 by %c127_i32_23 dim 1 : vector<24x128xf32>, i32 -> vector<24x128xf32>
    %c1_i32_24 = arith.constant 1 : i32
    %83 = tpu.dynamic_rotate %79 by %c1_i32_24 dim 1 : vector<24x128xf32>, i32 -> vector<24x128xf32>
    %84 = arith.addf %82, %83 : vector<24x128xf32>
    %cst_25 = arith.constant 2.500000e-01 : f32
    %85 = vector.broadcast %cst_25 : f32 to vector<24x128xf32>
    %86 = arith.mulf %85, %84 : vector<24x128xf32>
    %87 = arith.addf %81, %86 : vector<24x128xf32>
    %c126_i32_26 = arith.constant 126 : i32
    %88 = tpu.dynamic_rotate %79 by %c126_i32_26 dim 1 : vector<24x128xf32>, i32 -> vector<24x128xf32>
    %c2_i32_27 = arith.constant 2 : i32
    %89 = tpu.dynamic_rotate %79 by %c2_i32_27 dim 1 : vector<24x128xf32>, i32 -> vector<24x128xf32>
    %90 = arith.addf %88, %89 : vector<24x128xf32>
    %cst_28 = arith.constant 5.000000e-02 : f32
    %91 = vector.broadcast %cst_28 : f32 to vector<24x128xf32>
    %92 = arith.mulf %91, %90 : vector<24x128xf32>
    %93 = arith.addf %87, %92 : vector<24x128xf32>
    %cst_29 = arith.constant 4.000000e-01 : f32
    %94 = vector.broadcast %cst_29 : f32 to vector<24x128xf32>
    %95 = arith.mulf %94, %93 : vector<24x128xf32>
    %c23_i32_30 = arith.constant 23 : i32
    %96 = tpu.dynamic_rotate %93 by %c23_i32_30 dim 0 : vector<24x128xf32>, i32 -> vector<24x128xf32>
    %c1_i32_31 = arith.constant 1 : i32
    %97 = tpu.dynamic_rotate %93 by %c1_i32_31 dim 0 : vector<24x128xf32>, i32 -> vector<24x128xf32>
    %98 = arith.addf %96, %97 : vector<24x128xf32>
    %cst_32 = arith.constant 2.500000e-01 : f32
    %99 = vector.broadcast %cst_32 : f32 to vector<24x128xf32>
    %100 = arith.mulf %99, %98 : vector<24x128xf32>
    %101 = arith.addf %95, %100 : vector<24x128xf32>
    %c22_i32_33 = arith.constant 22 : i32
    %102 = tpu.dynamic_rotate %93 by %c22_i32_33 dim 0 : vector<24x128xf32>, i32 -> vector<24x128xf32>
    %c2_i32_34 = arith.constant 2 : i32
    %103 = tpu.dynamic_rotate %93 by %c2_i32_34 dim 0 : vector<24x128xf32>, i32 -> vector<24x128xf32>
    %104 = arith.addf %102, %103 : vector<24x128xf32>
    %cst_35 = arith.constant 5.000000e-02 : f32
    %105 = vector.broadcast %cst_35 : f32 to vector<24x128xf32>
    %106 = arith.mulf %105, %104 : vector<24x128xf32>
    %107 = arith.addf %101, %106 : vector<24x128xf32>
    %108 = arith.subf %17, %107 : vector<24x128xf32>
    %109 = arith.mulf %108, %108 : vector<24x128xf32>
    %110 = vector.broadcast %cst : f32 to vector<24x128xf32>
    %111 = arith.addf %109, %110 : vector<24x128xf32>
    %112 = math.sqrt %111 : vector<24x128xf32>
    %cst_36 = arith.constant 0.000000e+00 : f32
    %113 = vector.broadcast %cst_36 : f32 to vector<24x128xf32>
    %114 = arith.select %14, %112, %113 : vector<24x128xi1>, vector<24x128xf32>
    %115 = vector.shape_cast %114 : vector<24x128xf32> to vector<1x24x128xf32>
    %cst_37 = arith.constant dense<0.000000e+00> : vector<1xf32>
    %116 = vector.multi_reduction <add>, %115, %cst_37 [1, 2] : vector<1x24x128xf32> to vector<1xf32>
    %117 = vector.shape_cast %116 : vector<1xf32> to vector<1x1x1xf32>
    %118 = vector.extract %117[0, 0, 0] : f32 from vector<1x1x1xf32>
    %119 = arith.cmpi slt, %c0_i32_4, %2 : i32
    %cst_38 = arith.constant 0.000000e+00 : f32
    %120 = arith.select %119, %118, %cst_38 : f32
    %121 = arith.addf %cst_3, %120 : f32
    %c1_i32_39 = arith.constant 1 : i32
    %122 = arith.index_cast %c1_i32_39 : i32 to index
    %c0_40 = arith.constant 0 : index
    %c0_41 = arith.constant 0 : index
    %123 = vector.load %arg1[%122, %c0_40, %c0_41] : memref<6x24x128xf32, #tpu.memory_space<vmem>>, vector<1x24x128xf32>
    %124 = vector.shape_cast %123 : vector<1x24x128xf32> to vector<24x128xf32>
    %cst_42 = arith.constant 4.000000e-01 : f32
    %125 = vector.broadcast %cst_42 : f32 to vector<24x128xf32>
    %126 = arith.mulf %125, %124 : vector<24x128xf32>
    %c127_i32_43 = arith.constant 127 : i32
    %127 = tpu.dynamic_rotate %124 by %c127_i32_43 dim 1 : vector<24x128xf32>, i32 -> vector<24x128xf32>
    %c1_i32_44 = arith.constant 1 : i32
    %128 = tpu.dynamic_rotate %124 by %c1_i32_44 dim 1 : vector<24x128xf32>, i32 -> vector<24x128xf32>
    %129 = arith.addf %127, %128 : vector<24x128xf32>
    %cst_45 = arith.constant 2.500000e-01 : f32
    %130 = vector.broadcast %cst_45 : f32 to vector<24x128xf32>
    %131 = arith.mulf %130, %129 : vector<24x128xf32>
    %132 = arith.addf %126, %131 : vector<24x128xf32>
    %c126_i32_46 = arith.constant 126 : i32
    %133 = tpu.dynamic_rotate %124 by %c126_i32_46 dim 1 : vector<24x128xf32>, i32 -> vector<24x128xf32>
    %c2_i32_47 = arith.constant 2 : i32
    %134 = tpu.dynamic_rotate %124 by %c2_i32_47 dim 1 : vector<24x128xf32>, i32 -> vector<24x128xf32>
    %135 = arith.addf %133, %134 : vector<24x128xf32>
    %cst_48 = arith.constant 5.000000e-02 : f32
    %136 = vector.broadcast %cst_48 : f32 to vector<24x128xf32>
    %137 = arith.mulf %136, %135 : vector<24x128xf32>
    %138 = arith.addf %132, %137 : vector<24x128xf32>
    %cst_49 = arith.constant 4.000000e-01 : f32
    %139 = vector.broadcast %cst_49 : f32 to vector<24x128xf32>
    %140 = arith.mulf %139, %138 : vector<24x128xf32>
    %c23_i32_50 = arith.constant 23 : i32
    %141 = tpu.dynamic_rotate %138 by %c23_i32_50 dim 0 : vector<24x128xf32>, i32 -> vector<24x128xf32>
    %c1_i32_51 = arith.constant 1 : i32
    %142 = tpu.dynamic_rotate %138 by %c1_i32_51 dim 0 : vector<24x128xf32>, i32 -> vector<24x128xf32>
    %143 = arith.addf %141, %142 : vector<24x128xf32>
    %cst_52 = arith.constant 2.500000e-01 : f32
    %144 = vector.broadcast %cst_52 : f32 to vector<24x128xf32>
    %145 = arith.mulf %144, %143 : vector<24x128xf32>
    %146 = arith.addf %140, %145 : vector<24x128xf32>
    %c22_i32_53 = arith.constant 22 : i32
    %147 = tpu.dynamic_rotate %138 by %c22_i32_53 dim 0 : vector<24x128xf32>, i32 -> vector<24x128xf32>
    %c2_i32_54 = arith.constant 2 : i32
    %148 = tpu.dynamic_rotate %138 by %c2_i32_54 dim 0 : vector<24x128xf32>, i32 -> vector<24x128xf32>
    %149 = arith.addf %147, %148 : vector<24x128xf32>
    %cst_55 = arith.constant 5.000000e-02 : f32
    %150 = vector.broadcast %cst_55 : f32 to vector<24x128xf32>
    %151 = arith.mulf %150, %149 : vector<24x128xf32>
    %152 = arith.addf %146, %151 : vector<24x128xf32>
    %cst_56 = arith.constant 4.000000e+00 : f32
    %153 = vector.broadcast %cst_56 : f32 to vector<24x128xf32>
    %154 = arith.mulf %152, %153 : vector<24x128xf32>
    %cst_57 = arith.constant 0.000000e+00 : f32
    %155 = vector.broadcast %cst_57 : f32 to vector<24x128xf32>
    %156 = arith.select %9, %154, %155 : vector<24x128xi1>, vector<24x128xf32>
    %157 = vector.extract_strided_slice %156 {offsets = [15, 0], sizes = [1, 128], strides = [1, 1]} : vector<24x128xf32> to vector<1x128xf32>
    %158 = vector.shape_cast %157 : vector<1x128xf32> to vector<1x128xf32>
    %159 = vector.broadcast %158 : vector<1x128xf32> to vector<24x128xf32>
    %160 = vector.extract_strided_slice %156 {offsets = [0, 0], sizes = [1, 128], strides = [1, 1]} : vector<24x128xf32> to vector<1x128xf32>
    %161 = vector.shape_cast %160 : vector<1x128xf32> to vector<1x128xf32>
    %162 = vector.broadcast %161 : vector<1x128xf32> to vector<24x128xf32>
    %c16_i32_58 = arith.constant 16 : i32
    %163 = vector.broadcast %c16_i32_58 : i32 to vector<24x128xi32>
    %164 = arith.cmpi sge, %3, %163 : vector<24x128xi32>
    %c18_i32_59 = arith.constant 18 : i32
    %165 = vector.broadcast %c18_i32_59 : i32 to vector<24x128xi32>
    %166 = arith.cmpi slt, %3, %165 : vector<24x128xi32>
    %167 = arith.andi %164, %166 : vector<24x128xi1>
    %168 = arith.select %167, %159, %156 : vector<24x128xi1>, vector<24x128xf32>
    %c22_i32_60 = arith.constant 22 : i32
    %169 = vector.broadcast %c22_i32_60 : i32 to vector<24x128xi32>
    %170 = arith.cmpi sge, %3, %169 : vector<24x128xi32>
    %171 = arith.select %170, %162, %168 : vector<24x128xi1>, vector<24x128xf32>
    %172 = vector.extract_strided_slice %171 {offsets = [0, 15], sizes = [24, 1], strides = [1, 1]} : vector<24x128xf32> to vector<24x1xf32>
    %173 = vector.shape_cast %172 : vector<24x1xf32> to vector<24x1xf32>
    %174 = vector.broadcast %173 : vector<24x1xf32> to vector<24x128xf32>
    %175 = vector.extract_strided_slice %171 {offsets = [0, 0], sizes = [24, 1], strides = [1, 1]} : vector<24x128xf32> to vector<24x1xf32>
    %176 = vector.shape_cast %175 : vector<24x1xf32> to vector<24x1xf32>
    %177 = vector.broadcast %176 : vector<24x1xf32> to vector<24x128xf32>
    %c16_i32_61 = arith.constant 16 : i32
    %178 = vector.broadcast %c16_i32_61 : i32 to vector<24x128xi32>
    %179 = arith.cmpi sge, %4, %178 : vector<24x128xi32>
    %c18_i32_62 = arith.constant 18 : i32
    %180 = vector.broadcast %c18_i32_62 : i32 to vector<24x128xi32>
    %181 = arith.cmpi slt, %4, %180 : vector<24x128xi32>
    %182 = arith.andi %179, %181 : vector<24x128xi1>
    %183 = arith.select %182, %174, %171 : vector<24x128xi1>, vector<24x128xf32>
    %c126_i32_63 = arith.constant 126 : i32
    %184 = vector.broadcast %c126_i32_63 : i32 to vector<24x128xi32>
    %185 = arith.cmpi sge, %4, %184 : vector<24x128xi32>
    %186 = arith.select %185, %177, %183 : vector<24x128xi1>, vector<24x128xf32>
    %cst_64 = arith.constant 4.000000e-01 : f32
    %187 = vector.broadcast %cst_64 : f32 to vector<24x128xf32>
    %188 = arith.mulf %187, %186 : vector<24x128xf32>
    %c127_i32_65 = arith.constant 127 : i32
    %189 = tpu.dynamic_rotate %186 by %c127_i32_65 dim 1 : vector<24x128xf32>, i32 -> vector<24x128xf32>
    %c1_i32_66 = arith.constant 1 : i32
    %190 = tpu.dynamic_rotate %186 by %c1_i32_66 dim 1 : vector<24x128xf32>, i32 -> vector<24x128xf32>
    %191 = arith.addf %189, %190 : vector<24x128xf32>
    %cst_67 = arith.constant 2.500000e-01 : f32
    %192 = vector.broadcast %cst_67 : f32 to vector<24x128xf32>
    %193 = arith.mulf %192, %191 : vector<24x128xf32>
    %194 = arith.addf %188, %193 : vector<24x128xf32>
    %c126_i32_68 = arith.constant 126 : i32
    %195 = tpu.dynamic_rotate %186 by %c126_i32_68 dim 1 : vector<24x128xf32>, i32 -> vector<24x128xf32>
    %c2_i32_69 = arith.constant 2 : i32
    %196 = tpu.dynamic_rotate %186 by %c2_i32_69 dim 1 : vector<24x128xf32>, i32 -> vector<24x128xf32>
    %197 = arith.addf %195, %196 : vector<24x128xf32>
    %cst_70 = arith.constant 5.000000e-02 : f32
    %198 = vector.broadcast %cst_70 : f32 to vector<24x128xf32>
    %199 = arith.mulf %198, %197 : vector<24x128xf32>
    %200 = arith.addf %194, %199 : vector<24x128xf32>
    %cst_71 = arith.constant 4.000000e-01 : f32
    %201 = vector.broadcast %cst_71 : f32 to vector<24x128xf32>
    %202 = arith.mulf %201, %200 : vector<24x128xf32>
    %c23_i32_72 = arith.constant 23 : i32
    %203 = tpu.dynamic_rotate %200 by %c23_i32_72 dim 0 : vector<24x128xf32>, i32 -> vector<24x128xf32>
    %c1_i32_73 = arith.constant 1 : i32
    %204 = tpu.dynamic_rotate %200 by %c1_i32_73 dim 0 : vector<24x128xf32>, i32 -> vector<24x128xf32>
    %205 = arith.addf %203, %204 : vector<24x128xf32>
    %cst_74 = arith.constant 2.500000e-01 : f32
    %206 = vector.broadcast %cst_74 : f32 to vector<24x128xf32>
    %207 = arith.mulf %206, %205 : vector<24x128xf32>
    %208 = arith.addf %202, %207 : vector<24x128xf32>
    %c22_i32_75 = arith.constant 22 : i32
    %209 = tpu.dynamic_rotate %200 by %c22_i32_75 dim 0 : vector<24x128xf32>, i32 -> vector<24x128xf32>
    %c2_i32_76 = arith.constant 2 : i32
    %210 = tpu.dynamic_rotate %200 by %c2_i32_76 dim 0 : vector<24x128xf32>, i32 -> vector<24x128xf32>
    %211 = arith.addf %209, %210 : vector<24x128xf32>
    %cst_77 = arith.constant 5.000000e-02 : f32
    %212 = vector.broadcast %cst_77 : f32 to vector<24x128xf32>
    %213 = arith.mulf %212, %211 : vector<24x128xf32>
    %214 = arith.addf %208, %213 : vector<24x128xf32>
    %215 = arith.subf %124, %214 : vector<24x128xf32>
    %216 = arith.mulf %215, %215 : vector<24x128xf32>
    %217 = vector.broadcast %cst : f32 to vector<24x128xf32>
    %218 = arith.addf %216, %217 : vector<24x128xf32>
    %219 = math.sqrt %218 : vector<24x128xf32>
    %cst_78 = arith.constant 0.000000e+00 : f32
    %220 = vector.broadcast %cst_78 : f32 to vector<24x128xf32>
    %221 = arith.select %14, %219, %220 : vector<24x128xi1>, vector<24x128xf32>
    %222 = vector.shape_cast %221 : vector<24x128xf32> to vector<1x24x128xf32>
    %cst_79 = arith.constant dense<0.000000e+00> : vector<1xf32>
    %223 = vector.multi_reduction <add>, %222, %cst_79 [1, 2] : vector<1x24x128xf32> to vector<1xf32>
    %224 = vector.shape_cast %223 : vector<1xf32> to vector<1x1x1xf32>
    %225 = vector.extract %224[0, 0, 0] : f32 from vector<1x1x1xf32>
    %226 = arith.cmpi slt, %c1_i32_39, %2 : i32
    %cst_80 = arith.constant 0.000000e+00 : f32
    %227 = arith.select %226, %225, %cst_80 : f32
    %228 = arith.addf %121, %227 : f32
    %c2_i32_81 = arith.constant 2 : i32
    %229 = arith.index_cast %c2_i32_81 : i32 to index
    %c0_82 = arith.constant 0 : index
    %c0_83 = arith.constant 0 : index
    %230 = vector.load %arg1[%229, %c0_82, %c0_83] : memref<6x24x128xf32, #tpu.memory_space<vmem>>, vector<1x24x128xf32>
    %231 = vector.shape_cast %230 : vector<1x24x128xf32> to vector<24x128xf32>
    %cst_84 = arith.constant 4.000000e-01 : f32
    %232 = vector.broadcast %cst_84 : f32 to vector<24x128xf32>
    %233 = arith.mulf %232, %231 : vector<24x128xf32>
    %c127_i32_85 = arith.constant 127 : i32
    %234 = tpu.dynamic_rotate %231 by %c127_i32_85 dim 1 : vector<24x128xf32>, i32 -> vector<24x128xf32>
    %c1_i32_86 = arith.constant 1 : i32
    %235 = tpu.dynamic_rotate %231 by %c1_i32_86 dim 1 : vector<24x128xf32>, i32 -> vector<24x128xf32>
    %236 = arith.addf %234, %235 : vector<24x128xf32>
    %cst_87 = arith.constant 2.500000e-01 : f32
    %237 = vector.broadcast %cst_87 : f32 to vector<24x128xf32>
    %238 = arith.mulf %237, %236 : vector<24x128xf32>
    %239 = arith.addf %233, %238 : vector<24x128xf32>
    %c126_i32_88 = arith.constant 126 : i32
    %240 = tpu.dynamic_rotate %231 by %c126_i32_88 dim 1 : vector<24x128xf32>, i32 -> vector<24x128xf32>
    %c2_i32_89 = arith.constant 2 : i32
    %241 = tpu.dynamic_rotate %231 by %c2_i32_89 dim 1 : vector<24x128xf32>, i32 -> vector<24x128xf32>
    %242 = arith.addf %240, %241 : vector<24x128xf32>
    %cst_90 = arith.constant 5.000000e-02 : f32
    %243 = vector.broadcast %cst_90 : f32 to vector<24x128xf32>
    %244 = arith.mulf %243, %242 : vector<24x128xf32>
    %245 = arith.addf %239, %244 : vector<24x128xf32>
    %cst_91 = arith.constant 4.000000e-01 : f32
    %246 = vector.broadcast %cst_91 : f32 to vector<24x128xf32>
    %247 = arith.mulf %246, %245 : vector<24x128xf32>
    %c23_i32_92 = arith.constant 23 : i32
    %248 = tpu.dynamic_rotate %245 by %c23_i32_92 dim 0 : vector<24x128xf32>, i32 -> vector<24x128xf32>
    %c1_i32_93 = arith.constant 1 : i32
    %249 = tpu.dynamic_rotate %245 by %c1_i32_93 dim 0 : vector<24x128xf32>, i32 -> vector<24x128xf32>
    %250 = arith.addf %248, %249 : vector<24x128xf32>
    %cst_94 = arith.constant 2.500000e-01 : f32
    %251 = vector.broadcast %cst_94 : f32 to vector<24x128xf32>
    %252 = arith.mulf %251, %250 : vector<24x128xf32>
    %253 = arith.addf %247, %252 : vector<24x128xf32>
    %c22_i32_95 = arith.constant 22 : i32
    %254 = tpu.dynamic_rotate %245 by %c22_i32_95 dim 0 : vector<24x128xf32>, i32 -> vector<24x128xf32>
    %c2_i32_96 = arith.constant 2 : i32
    %255 = tpu.dynamic_rotate %245 by %c2_i32_96 dim 0 : vector<24x128xf32>, i32 -> vector<24x128xf32>
    %256 = arith.addf %254, %255 : vector<24x128xf32>
    %cst_97 = arith.constant 5.000000e-02 : f32
    %257 = vector.broadcast %cst_97 : f32 to vector<24x128xf32>
    %258 = arith.mulf %257, %256 : vector<24x128xf32>
    %259 = arith.addf %253, %258 : vector<24x128xf32>
    %cst_98 = arith.constant 4.000000e+00 : f32
    %260 = vector.broadcast %cst_98 : f32 to vector<24x128xf32>
    %261 = arith.mulf %259, %260 : vector<24x128xf32>
    %cst_99 = arith.constant 0.000000e+00 : f32
    %262 = vector.broadcast %cst_99 : f32 to vector<24x128xf32>
    %263 = arith.select %9, %261, %262 : vector<24x128xi1>, vector<24x128xf32>
    %264 = vector.extract_strided_slice %263 {offsets = [15, 0], sizes = [1, 128], strides = [1, 1]} : vector<24x128xf32> to vector<1x128xf32>
    %265 = vector.shape_cast %264 : vector<1x128xf32> to vector<1x128xf32>
    %266 = vector.broadcast %265 : vector<1x128xf32> to vector<24x128xf32>
    %267 = vector.extract_strided_slice %263 {offsets = [0, 0], sizes = [1, 128], strides = [1, 1]} : vector<24x128xf32> to vector<1x128xf32>
    %268 = vector.shape_cast %267 : vector<1x128xf32> to vector<1x128xf32>
    %269 = vector.broadcast %268 : vector<1x128xf32> to vector<24x128xf32>
    %c16_i32_100 = arith.constant 16 : i32
    %270 = vector.broadcast %c16_i32_100 : i32 to vector<24x128xi32>
    %271 = arith.cmpi sge, %3, %270 : vector<24x128xi32>
    %c18_i32_101 = arith.constant 18 : i32
    %272 = vector.broadcast %c18_i32_101 : i32 to vector<24x128xi32>
    %273 = arith.cmpi slt, %3, %272 : vector<24x128xi32>
    %274 = arith.andi %271, %273 : vector<24x128xi1>
    %275 = arith.select %274, %266, %263 : vector<24x128xi1>, vector<24x128xf32>
    %c22_i32_102 = arith.constant 22 : i32
    %276 = vector.broadcast %c22_i32_102 : i32 to vector<24x128xi32>
    %277 = arith.cmpi sge, %3, %276 : vector<24x128xi32>
    %278 = arith.select %277, %269, %275 : vector<24x128xi1>, vector<24x128xf32>
    %279 = vector.extract_strided_slice %278 {offsets = [0, 15], sizes = [24, 1], strides = [1, 1]} : vector<24x128xf32> to vector<24x1xf32>
    %280 = vector.shape_cast %279 : vector<24x1xf32> to vector<24x1xf32>
    %281 = vector.broadcast %280 : vector<24x1xf32> to vector<24x128xf32>
    %282 = vector.extract_strided_slice %278 {offsets = [0, 0], sizes = [24, 1], strides = [1, 1]} : vector<24x128xf32> to vector<24x1xf32>
    %283 = vector.shape_cast %282 : vector<24x1xf32> to vector<24x1xf32>
    %284 = vector.broadcast %283 : vector<24x1xf32> to vector<24x128xf32>
    %c16_i32_103 = arith.constant 16 : i32
    %285 = vector.broadcast %c16_i32_103 : i32 to vector<24x128xi32>
    %286 = arith.cmpi sge, %4, %285 : vector<24x128xi32>
    %c18_i32_104 = arith.constant 18 : i32
    %287 = vector.broadcast %c18_i32_104 : i32 to vector<24x128xi32>
    %288 = arith.cmpi slt, %4, %287 : vector<24x128xi32>
    %289 = arith.andi %286, %288 : vector<24x128xi1>
    %290 = arith.select %289, %281, %278 : vector<24x128xi1>, vector<24x128xf32>
    %c126_i32_105 = arith.constant 126 : i32
    %291 = vector.broadcast %c126_i32_105 : i32 to vector<24x128xi32>
    %292 = arith.cmpi sge, %4, %291 : vector<24x128xi32>
    %293 = arith.select %292, %284, %290 : vector<24x128xi1>, vector<24x128xf32>
    %cst_106 = arith.constant 4.000000e-01 : f32
    %294 = vector.broadcast %cst_106 : f32 to vector<24x128xf32>
    %295 = arith.mulf %294, %293 : vector<24x128xf32>
    %c127_i32_107 = arith.constant 127 : i32
    %296 = tpu.dynamic_rotate %293 by %c127_i32_107 dim 1 : vector<24x128xf32>, i32 -> vector<24x128xf32>
    %c1_i32_108 = arith.constant 1 : i32
    %297 = tpu.dynamic_rotate %293 by %c1_i32_108 dim 1 : vector<24x128xf32>, i32 -> vector<24x128xf32>
    %298 = arith.addf %296, %297 : vector<24x128xf32>
    %cst_109 = arith.constant 2.500000e-01 : f32
    %299 = vector.broadcast %cst_109 : f32 to vector<24x128xf32>
    %300 = arith.mulf %299, %298 : vector<24x128xf32>
    %301 = arith.addf %295, %300 : vector<24x128xf32>
    %c126_i32_110 = arith.constant 126 : i32
    %302 = tpu.dynamic_rotate %293 by %c126_i32_110 dim 1 : vector<24x128xf32>, i32 -> vector<24x128xf32>
    %c2_i32_111 = arith.constant 2 : i32
    %303 = tpu.dynamic_rotate %293 by %c2_i32_111 dim 1 : vector<24x128xf32>, i32 -> vector<24x128xf32>
    %304 = arith.addf %302, %303 : vector<24x128xf32>
    %cst_112 = arith.constant 5.000000e-02 : f32
    %305 = vector.broadcast %cst_112 : f32 to vector<24x128xf32>
    %306 = arith.mulf %305, %304 : vector<24x128xf32>
    %307 = arith.addf %301, %306 : vector<24x128xf32>
    %cst_113 = arith.constant 4.000000e-01 : f32
    %308 = vector.broadcast %cst_113 : f32 to vector<24x128xf32>
    %309 = arith.mulf %308, %307 : vector<24x128xf32>
    %c23_i32_114 = arith.constant 23 : i32
    %310 = tpu.dynamic_rotate %307 by %c23_i32_114 dim 0 : vector<24x128xf32>, i32 -> vector<24x128xf32>
    %c1_i32_115 = arith.constant 1 : i32
    %311 = tpu.dynamic_rotate %307 by %c1_i32_115 dim 0 : vector<24x128xf32>, i32 -> vector<24x128xf32>
    %312 = arith.addf %310, %311 : vector<24x128xf32>
    %cst_116 = arith.constant 2.500000e-01 : f32
    %313 = vector.broadcast %cst_116 : f32 to vector<24x128xf32>
    %314 = arith.mulf %313, %312 : vector<24x128xf32>
    %315 = arith.addf %309, %314 : vector<24x128xf32>
    %c22_i32_117 = arith.constant 22 : i32
    %316 = tpu.dynamic_rotate %307 by %c22_i32_117 dim 0 : vector<24x128xf32>, i32 -> vector<24x128xf32>
    %c2_i32_118 = arith.constant 2 : i32
    %317 = tpu.dynamic_rotate %307 by %c2_i32_118 dim 0 : vector<24x128xf32>, i32 -> vector<24x128xf32>
    %318 = arith.addf %316, %317 : vector<24x128xf32>
    %cst_119 = arith.constant 5.000000e-02 : f32
    %319 = vector.broadcast %cst_119 : f32 to vector<24x128xf32>
    %320 = arith.mulf %319, %318 : vector<24x128xf32>
    %321 = arith.addf %315, %320 : vector<24x128xf32>
    %322 = arith.subf %231, %321 : vector<24x128xf32>
    %323 = arith.mulf %322, %322 : vector<24x128xf32>
    %324 = vector.broadcast %cst : f32 to vector<24x128xf32>
    %325 = arith.addf %323, %324 : vector<24x128xf32>
    %326 = math.sqrt %325 : vector<24x128xf32>
    %cst_120 = arith.constant 0.000000e+00 : f32
    %327 = vector.broadcast %cst_120 : f32 to vector<24x128xf32>
    %328 = arith.select %14, %326, %327 : vector<24x128xi1>, vector<24x128xf32>
    %329 = vector.shape_cast %328 : vector<24x128xf32> to vector<1x24x128xf32>
    %cst_121 = arith.constant dense<0.000000e+00> : vector<1xf32>
    %330 = vector.multi_reduction <add>, %329, %cst_121 [1, 2] : vector<1x24x128xf32> to vector<1xf32>
    %331 = vector.shape_cast %330 : vector<1xf32> to vector<1x1x1xf32>
    %332 = vector.extract %331[0, 0, 0] : f32 from vector<1x1x1xf32>
    %333 = arith.cmpi slt, %c2_i32_81, %2 : i32
    %cst_122 = arith.constant 0.000000e+00 : f32
    %334 = arith.select %333, %332, %cst_122 : f32
    %335 = arith.addf %228, %334 : f32
    %c3_i32 = arith.constant 3 : i32
    %336 = arith.index_cast %c3_i32 : i32 to index
    %c0_123 = arith.constant 0 : index
    %c0_124 = arith.constant 0 : index
    %337 = vector.load %arg1[%336, %c0_123, %c0_124] : memref<6x24x128xf32, #tpu.memory_space<vmem>>, vector<1x24x128xf32>
    %338 = vector.shape_cast %337 : vector<1x24x128xf32> to vector<24x128xf32>
    %cst_125 = arith.constant 4.000000e-01 : f32
    %339 = vector.broadcast %cst_125 : f32 to vector<24x128xf32>
    %340 = arith.mulf %339, %338 : vector<24x128xf32>
    %c127_i32_126 = arith.constant 127 : i32
    %341 = tpu.dynamic_rotate %338 by %c127_i32_126 dim 1 : vector<24x128xf32>, i32 -> vector<24x128xf32>
    %c1_i32_127 = arith.constant 1 : i32
    %342 = tpu.dynamic_rotate %338 by %c1_i32_127 dim 1 : vector<24x128xf32>, i32 -> vector<24x128xf32>
    %343 = arith.addf %341, %342 : vector<24x128xf32>
    %cst_128 = arith.constant 2.500000e-01 : f32
    %344 = vector.broadcast %cst_128 : f32 to vector<24x128xf32>
    %345 = arith.mulf %344, %343 : vector<24x128xf32>
    %346 = arith.addf %340, %345 : vector<24x128xf32>
    %c126_i32_129 = arith.constant 126 : i32
    %347 = tpu.dynamic_rotate %338 by %c126_i32_129 dim 1 : vector<24x128xf32>, i32 -> vector<24x128xf32>
    %c2_i32_130 = arith.constant 2 : i32
    %348 = tpu.dynamic_rotate %338 by %c2_i32_130 dim 1 : vector<24x128xf32>, i32 -> vector<24x128xf32>
    %349 = arith.addf %347, %348 : vector<24x128xf32>
    %cst_131 = arith.constant 5.000000e-02 : f32
    %350 = vector.broadcast %cst_131 : f32 to vector<24x128xf32>
    %351 = arith.mulf %350, %349 : vector<24x128xf32>
    %352 = arith.addf %346, %351 : vector<24x128xf32>
    %cst_132 = arith.constant 4.000000e-01 : f32
    %353 = vector.broadcast %cst_132 : f32 to vector<24x128xf32>
    %354 = arith.mulf %353, %352 : vector<24x128xf32>
    %c23_i32_133 = arith.constant 23 : i32
    %355 = tpu.dynamic_rotate %352 by %c23_i32_133 dim 0 : vector<24x128xf32>, i32 -> vector<24x128xf32>
    %c1_i32_134 = arith.constant 1 : i32
    %356 = tpu.dynamic_rotate %352 by %c1_i32_134 dim 0 : vector<24x128xf32>, i32 -> vector<24x128xf32>
    %357 = arith.addf %355, %356 : vector<24x128xf32>
    %cst_135 = arith.constant 2.500000e-01 : f32
    %358 = vector.broadcast %cst_135 : f32 to vector<24x128xf32>
    %359 = arith.mulf %358, %357 : vector<24x128xf32>
    %360 = arith.addf %354, %359 : vector<24x128xf32>
    %c22_i32_136 = arith.constant 22 : i32
    %361 = tpu.dynamic_rotate %352 by %c22_i32_136 dim 0 : vector<24x128xf32>, i32 -> vector<24x128xf32>
    %c2_i32_137 = arith.constant 2 : i32
    %362 = tpu.dynamic_rotate %352 by %c2_i32_137 dim 0 : vector<24x128xf32>, i32 -> vector<24x128xf32>
    %363 = arith.addf %361, %362 : vector<24x128xf32>
    %cst_138 = arith.constant 5.000000e-02 : f32
    %364 = vector.broadcast %cst_138 : f32 to vector<24x128xf32>
    %365 = arith.mulf %364, %363 : vector<24x128xf32>
    %366 = arith.addf %360, %365 : vector<24x128xf32>
    %cst_139 = arith.constant 4.000000e+00 : f32
    %367 = vector.broadcast %cst_139 : f32 to vector<24x128xf32>
    %368 = arith.mulf %366, %367 : vector<24x128xf32>
    %cst_140 = arith.constant 0.000000e+00 : f32
    %369 = vector.broadcast %cst_140 : f32 to vector<24x128xf32>
    %370 = arith.select %9, %368, %369 : vector<24x128xi1>, vector<24x128xf32>
    %371 = vector.extract_strided_slice %370 {offsets = [15, 0], sizes = [1, 128], strides = [1, 1]} : vector<24x128xf32> to vector<1x128xf32>
    %372 = vector.shape_cast %371 : vector<1x128xf32> to vector<1x128xf32>
    %373 = vector.broadcast %372 : vector<1x128xf32> to vector<24x128xf32>
    %374 = vector.extract_strided_slice %370 {offsets = [0, 0], sizes = [1, 128], strides = [1, 1]} : vector<24x128xf32> to vector<1x128xf32>
    %375 = vector.shape_cast %374 : vector<1x128xf32> to vector<1x128xf32>
    %376 = vector.broadcast %375 : vector<1x128xf32> to vector<24x128xf32>
    %c16_i32_141 = arith.constant 16 : i32
    %377 = vector.broadcast %c16_i32_141 : i32 to vector<24x128xi32>
    %378 = arith.cmpi sge, %3, %377 : vector<24x128xi32>
    %c18_i32_142 = arith.constant 18 : i32
    %379 = vector.broadcast %c18_i32_142 : i32 to vector<24x128xi32>
    %380 = arith.cmpi slt, %3, %379 : vector<24x128xi32>
    %381 = arith.andi %378, %380 : vector<24x128xi1>
    %382 = arith.select %381, %373, %370 : vector<24x128xi1>, vector<24x128xf32>
    %c22_i32_143 = arith.constant 22 : i32
    %383 = vector.broadcast %c22_i32_143 : i32 to vector<24x128xi32>
    %384 = arith.cmpi sge, %3, %383 : vector<24x128xi32>
    %385 = arith.select %384, %376, %382 : vector<24x128xi1>, vector<24x128xf32>
    %386 = vector.extract_strided_slice %385 {offsets = [0, 15], sizes = [24, 1], strides = [1, 1]} : vector<24x128xf32> to vector<24x1xf32>
    %387 = vector.shape_cast %386 : vector<24x1xf32> to vector<24x1xf32>
    %388 = vector.broadcast %387 : vector<24x1xf32> to vector<24x128xf32>
    %389 = vector.extract_strided_slice %385 {offsets = [0, 0], sizes = [24, 1], strides = [1, 1]} : vector<24x128xf32> to vector<24x1xf32>
    %390 = vector.shape_cast %389 : vector<24x1xf32> to vector<24x1xf32>
    %391 = vector.broadcast %390 : vector<24x1xf32> to vector<24x128xf32>
    %c16_i32_144 = arith.constant 16 : i32
    %392 = vector.broadcast %c16_i32_144 : i32 to vector<24x128xi32>
    %393 = arith.cmpi sge, %4, %392 : vector<24x128xi32>
    %c18_i32_145 = arith.constant 18 : i32
    %394 = vector.broadcast %c18_i32_145 : i32 to vector<24x128xi32>
    %395 = arith.cmpi slt, %4, %394 : vector<24x128xi32>
    %396 = arith.andi %393, %395 : vector<24x128xi1>
    %397 = arith.select %396, %388, %385 : vector<24x128xi1>, vector<24x128xf32>
    %c126_i32_146 = arith.constant 126 : i32
    %398 = vector.broadcast %c126_i32_146 : i32 to vector<24x128xi32>
    %399 = arith.cmpi sge, %4, %398 : vector<24x128xi32>
    %400 = arith.select %399, %391, %397 : vector<24x128xi1>, vector<24x128xf32>
    %cst_147 = arith.constant 4.000000e-01 : f32
    %401 = vector.broadcast %cst_147 : f32 to vector<24x128xf32>
    %402 = arith.mulf %401, %400 : vector<24x128xf32>
    %c127_i32_148 = arith.constant 127 : i32
    %403 = tpu.dynamic_rotate %400 by %c127_i32_148 dim 1 : vector<24x128xf32>, i32 -> vector<24x128xf32>
    %c1_i32_149 = arith.constant 1 : i32
    %404 = tpu.dynamic_rotate %400 by %c1_i32_149 dim 1 : vector<24x128xf32>, i32 -> vector<24x128xf32>
    %405 = arith.addf %403, %404 : vector<24x128xf32>
    %cst_150 = arith.constant 2.500000e-01 : f32
    %406 = vector.broadcast %cst_150 : f32 to vector<24x128xf32>
    %407 = arith.mulf %406, %405 : vector<24x128xf32>
    %408 = arith.addf %402, %407 : vector<24x128xf32>
    %c126_i32_151 = arith.constant 126 : i32
    %409 = tpu.dynamic_rotate %400 by %c126_i32_151 dim 1 : vector<24x128xf32>, i32 -> vector<24x128xf32>
    %c2_i32_152 = arith.constant 2 : i32
    %410 = tpu.dynamic_rotate %400 by %c2_i32_152 dim 1 : vector<24x128xf32>, i32 -> vector<24x128xf32>
    %411 = arith.addf %409, %410 : vector<24x128xf32>
    %cst_153 = arith.constant 5.000000e-02 : f32
    %412 = vector.broadcast %cst_153 : f32 to vector<24x128xf32>
    %413 = arith.mulf %412, %411 : vector<24x128xf32>
    %414 = arith.addf %408, %413 : vector<24x128xf32>
    %cst_154 = arith.constant 4.000000e-01 : f32
    %415 = vector.broadcast %cst_154 : f32 to vector<24x128xf32>
    %416 = arith.mulf %415, %414 : vector<24x128xf32>
    %c23_i32_155 = arith.constant 23 : i32
    %417 = tpu.dynamic_rotate %414 by %c23_i32_155 dim 0 : vector<24x128xf32>, i32 -> vector<24x128xf32>
    %c1_i32_156 = arith.constant 1 : i32
    %418 = tpu.dynamic_rotate %414 by %c1_i32_156 dim 0 : vector<24x128xf32>, i32 -> vector<24x128xf32>
    %419 = arith.addf %417, %418 : vector<24x128xf32>
    %cst_157 = arith.constant 2.500000e-01 : f32
    %420 = vector.broadcast %cst_157 : f32 to vector<24x128xf32>
    %421 = arith.mulf %420, %419 : vector<24x128xf32>
    %422 = arith.addf %416, %421 : vector<24x128xf32>
    %c22_i32_158 = arith.constant 22 : i32
    %423 = tpu.dynamic_rotate %414 by %c22_i32_158 dim 0 : vector<24x128xf32>, i32 -> vector<24x128xf32>
    %c2_i32_159 = arith.constant 2 : i32
    %424 = tpu.dynamic_rotate %414 by %c2_i32_159 dim 0 : vector<24x128xf32>, i32 -> vector<24x128xf32>
    %425 = arith.addf %423, %424 : vector<24x128xf32>
    %cst_160 = arith.constant 5.000000e-02 : f32
    %426 = vector.broadcast %cst_160 : f32 to vector<24x128xf32>
    %427 = arith.mulf %426, %425 : vector<24x128xf32>
    %428 = arith.addf %422, %427 : vector<24x128xf32>
    %429 = arith.subf %338, %428 : vector<24x128xf32>
    %430 = arith.mulf %429, %429 : vector<24x128xf32>
    %431 = vector.broadcast %cst : f32 to vector<24x128xf32>
    %432 = arith.addf %430, %431 : vector<24x128xf32>
    %433 = math.sqrt %432 : vector<24x128xf32>
    %cst_161 = arith.constant 0.000000e+00 : f32
    %434 = vector.broadcast %cst_161 : f32 to vector<24x128xf32>
    %435 = arith.select %14, %433, %434 : vector<24x128xi1>, vector<24x128xf32>
    %436 = vector.shape_cast %435 : vector<24x128xf32> to vector<1x24x128xf32>
    %cst_162 = arith.constant dense<0.000000e+00> : vector<1xf32>
    %437 = vector.multi_reduction <add>, %436, %cst_162 [1, 2] : vector<1x24x128xf32> to vector<1xf32>
    %438 = vector.shape_cast %437 : vector<1xf32> to vector<1x1x1xf32>
    %439 = vector.extract %438[0, 0, 0] : f32 from vector<1x1x1xf32>
    %440 = arith.cmpi slt, %c3_i32, %2 : i32
    %cst_163 = arith.constant 0.000000e+00 : f32
    %441 = arith.select %440, %439, %cst_163 : f32
    %442 = arith.addf %335, %441 : f32
    %c4_i32 = arith.constant 4 : i32
    %443 = arith.index_cast %c4_i32 : i32 to index
    %c0_164 = arith.constant 0 : index
    %c0_165 = arith.constant 0 : index
    %444 = vector.load %arg1[%443, %c0_164, %c0_165] : memref<6x24x128xf32, #tpu.memory_space<vmem>>, vector<1x24x128xf32>
    %445 = vector.shape_cast %444 : vector<1x24x128xf32> to vector<24x128xf32>
    %cst_166 = arith.constant 4.000000e-01 : f32
    %446 = vector.broadcast %cst_166 : f32 to vector<24x128xf32>
    %447 = arith.mulf %446, %445 : vector<24x128xf32>
    %c127_i32_167 = arith.constant 127 : i32
    %448 = tpu.dynamic_rotate %445 by %c127_i32_167 dim 1 : vector<24x128xf32>, i32 -> vector<24x128xf32>
    %c1_i32_168 = arith.constant 1 : i32
    %449 = tpu.dynamic_rotate %445 by %c1_i32_168 dim 1 : vector<24x128xf32>, i32 -> vector<24x128xf32>
    %450 = arith.addf %448, %449 : vector<24x128xf32>
    %cst_169 = arith.constant 2.500000e-01 : f32
    %451 = vector.broadcast %cst_169 : f32 to vector<24x128xf32>
    %452 = arith.mulf %451, %450 : vector<24x128xf32>
    %453 = arith.addf %447, %452 : vector<24x128xf32>
    %c126_i32_170 = arith.constant 126 : i32
    %454 = tpu.dynamic_rotate %445 by %c126_i32_170 dim 1 : vector<24x128xf32>, i32 -> vector<24x128xf32>
    %c2_i32_171 = arith.constant 2 : i32
    %455 = tpu.dynamic_rotate %445 by %c2_i32_171 dim 1 : vector<24x128xf32>, i32 -> vector<24x128xf32>
    %456 = arith.addf %454, %455 : vector<24x128xf32>
    %cst_172 = arith.constant 5.000000e-02 : f32
    %457 = vector.broadcast %cst_172 : f32 to vector<24x128xf32>
    %458 = arith.mulf %457, %456 : vector<24x128xf32>
    %459 = arith.addf %453, %458 : vector<24x128xf32>
    %cst_173 = arith.constant 4.000000e-01 : f32
    %460 = vector.broadcast %cst_173 : f32 to vector<24x128xf32>
    %461 = arith.mulf %460, %459 : vector<24x128xf32>
    %c23_i32_174 = arith.constant 23 : i32
    %462 = tpu.dynamic_rotate %459 by %c23_i32_174 dim 0 : vector<24x128xf32>, i32 -> vector<24x128xf32>
    %c1_i32_175 = arith.constant 1 : i32
    %463 = tpu.dynamic_rotate %459 by %c1_i32_175 dim 0 : vector<24x128xf32>, i32 -> vector<24x128xf32>
    %464 = arith.addf %462, %463 : vector<24x128xf32>
    %cst_176 = arith.constant 2.500000e-01 : f32
    %465 = vector.broadcast %cst_176 : f32 to vector<24x128xf32>
    %466 = arith.mulf %465, %464 : vector<24x128xf32>
    %467 = arith.addf %461, %466 : vector<24x128xf32>
    %c22_i32_177 = arith.constant 22 : i32
    %468 = tpu.dynamic_rotate %459 by %c22_i32_177 dim 0 : vector<24x128xf32>, i32 -> vector<24x128xf32>
    %c2_i32_178 = arith.constant 2 : i32
    %469 = tpu.dynamic_rotate %459 by %c2_i32_178 dim 0 : vector<24x128xf32>, i32 -> vector<24x128xf32>
    %470 = arith.addf %468, %469 : vector<24x128xf32>
    %cst_179 = arith.constant 5.000000e-02 : f32
    %471 = vector.broadcast %cst_179 : f32 to vector<24x128xf32>
    %472 = arith.mulf %471, %470 : vector<24x128xf32>
    %473 = arith.addf %467, %472 : vector<24x128xf32>
    %cst_180 = arith.constant 4.000000e+00 : f32
    %474 = vector.broadcast %cst_180 : f32 to vector<24x128xf32>
    %475 = arith.mulf %473, %474 : vector<24x128xf32>
    %cst_181 = arith.constant 0.000000e+00 : f32
    %476 = vector.broadcast %cst_181 : f32 to vector<24x128xf32>
    %477 = arith.select %9, %475, %476 : vector<24x128xi1>, vector<24x128xf32>
    %478 = vector.extract_strided_slice %477 {offsets = [15, 0], sizes = [1, 128], strides = [1, 1]} : vector<24x128xf32> to vector<1x128xf32>
    %479 = vector.shape_cast %478 : vector<1x128xf32> to vector<1x128xf32>
    %480 = vector.broadcast %479 : vector<1x128xf32> to vector<24x128xf32>
    %481 = vector.extract_strided_slice %477 {offsets = [0, 0], sizes = [1, 128], strides = [1, 1]} : vector<24x128xf32> to vector<1x128xf32>
    %482 = vector.shape_cast %481 : vector<1x128xf32> to vector<1x128xf32>
    %483 = vector.broadcast %482 : vector<1x128xf32> to vector<24x128xf32>
    %c16_i32_182 = arith.constant 16 : i32
    %484 = vector.broadcast %c16_i32_182 : i32 to vector<24x128xi32>
    %485 = arith.cmpi sge, %3, %484 : vector<24x128xi32>
    %c18_i32_183 = arith.constant 18 : i32
    %486 = vector.broadcast %c18_i32_183 : i32 to vector<24x128xi32>
    %487 = arith.cmpi slt, %3, %486 : vector<24x128xi32>
    %488 = arith.andi %485, %487 : vector<24x128xi1>
    %489 = arith.select %488, %480, %477 : vector<24x128xi1>, vector<24x128xf32>
    %c22_i32_184 = arith.constant 22 : i32
    %490 = vector.broadcast %c22_i32_184 : i32 to vector<24x128xi32>
    %491 = arith.cmpi sge, %3, %490 : vector<24x128xi32>
    %492 = arith.select %491, %483, %489 : vector<24x128xi1>, vector<24x128xf32>
    %493 = vector.extract_strided_slice %492 {offsets = [0, 15], sizes = [24, 1], strides = [1, 1]} : vector<24x128xf32> to vector<24x1xf32>
    %494 = vector.shape_cast %493 : vector<24x1xf32> to vector<24x1xf32>
    %495 = vector.broadcast %494 : vector<24x1xf32> to vector<24x128xf32>
    %496 = vector.extract_strided_slice %492 {offsets = [0, 0], sizes = [24, 1], strides = [1, 1]} : vector<24x128xf32> to vector<24x1xf32>
    %497 = vector.shape_cast %496 : vector<24x1xf32> to vector<24x1xf32>
    %498 = vector.broadcast %497 : vector<24x1xf32> to vector<24x128xf32>
    %c16_i32_185 = arith.constant 16 : i32
    %499 = vector.broadcast %c16_i32_185 : i32 to vector<24x128xi32>
    %500 = arith.cmpi sge, %4, %499 : vector<24x128xi32>
    %c18_i32_186 = arith.constant 18 : i32
    %501 = vector.broadcast %c18_i32_186 : i32 to vector<24x128xi32>
    %502 = arith.cmpi slt, %4, %501 : vector<24x128xi32>
    %503 = arith.andi %500, %502 : vector<24x128xi1>
    %504 = arith.select %503, %495, %492 : vector<24x128xi1>, vector<24x128xf32>
    %c126_i32_187 = arith.constant 126 : i32
    %505 = vector.broadcast %c126_i32_187 : i32 to vector<24x128xi32>
    %506 = arith.cmpi sge, %4, %505 : vector<24x128xi32>
    %507 = arith.select %506, %498, %504 : vector<24x128xi1>, vector<24x128xf32>
    %cst_188 = arith.constant 4.000000e-01 : f32
    %508 = vector.broadcast %cst_188 : f32 to vector<24x128xf32>
    %509 = arith.mulf %508, %507 : vector<24x128xf32>
    %c127_i32_189 = arith.constant 127 : i32
    %510 = tpu.dynamic_rotate %507 by %c127_i32_189 dim 1 : vector<24x128xf32>, i32 -> vector<24x128xf32>
    %c1_i32_190 = arith.constant 1 : i32
    %511 = tpu.dynamic_rotate %507 by %c1_i32_190 dim 1 : vector<24x128xf32>, i32 -> vector<24x128xf32>
    %512 = arith.addf %510, %511 : vector<24x128xf32>
    %cst_191 = arith.constant 2.500000e-01 : f32
    %513 = vector.broadcast %cst_191 : f32 to vector<24x128xf32>
    %514 = arith.mulf %513, %512 : vector<24x128xf32>
    %515 = arith.addf %509, %514 : vector<24x128xf32>
    %c126_i32_192 = arith.constant 126 : i32
    %516 = tpu.dynamic_rotate %507 by %c126_i32_192 dim 1 : vector<24x128xf32>, i32 -> vector<24x128xf32>
    %c2_i32_193 = arith.constant 2 : i32
    %517 = tpu.dynamic_rotate %507 by %c2_i32_193 dim 1 : vector<24x128xf32>, i32 -> vector<24x128xf32>
    %518 = arith.addf %516, %517 : vector<24x128xf32>
    %cst_194 = arith.constant 5.000000e-02 : f32
    %519 = vector.broadcast %cst_194 : f32 to vector<24x128xf32>
    %520 = arith.mulf %519, %518 : vector<24x128xf32>
    %521 = arith.addf %515, %520 : vector<24x128xf32>
    %cst_195 = arith.constant 4.000000e-01 : f32
    %522 = vector.broadcast %cst_195 : f32 to vector<24x128xf32>
    %523 = arith.mulf %522, %521 : vector<24x128xf32>
    %c23_i32_196 = arith.constant 23 : i32
    %524 = tpu.dynamic_rotate %521 by %c23_i32_196 dim 0 : vector<24x128xf32>, i32 -> vector<24x128xf32>
    %c1_i32_197 = arith.constant 1 : i32
    %525 = tpu.dynamic_rotate %521 by %c1_i32_197 dim 0 : vector<24x128xf32>, i32 -> vector<24x128xf32>
    %526 = arith.addf %524, %525 : vector<24x128xf32>
    %cst_198 = arith.constant 2.500000e-01 : f32
    %527 = vector.broadcast %cst_198 : f32 to vector<24x128xf32>
    %528 = arith.mulf %527, %526 : vector<24x128xf32>
    %529 = arith.addf %523, %528 : vector<24x128xf32>
    %c22_i32_199 = arith.constant 22 : i32
    %530 = tpu.dynamic_rotate %521 by %c22_i32_199 dim 0 : vector<24x128xf32>, i32 -> vector<24x128xf32>
    %c2_i32_200 = arith.constant 2 : i32
    %531 = tpu.dynamic_rotate %521 by %c2_i32_200 dim 0 : vector<24x128xf32>, i32 -> vector<24x128xf32>
    %532 = arith.addf %530, %531 : vector<24x128xf32>
    %cst_201 = arith.constant 5.000000e-02 : f32
    %533 = vector.broadcast %cst_201 : f32 to vector<24x128xf32>
    %534 = arith.mulf %533, %532 : vector<24x128xf32>
    %535 = arith.addf %529, %534 : vector<24x128xf32>
    %536 = arith.subf %445, %535 : vector<24x128xf32>
    %537 = arith.mulf %536, %536 : vector<24x128xf32>
    %538 = vector.broadcast %cst : f32 to vector<24x128xf32>
    %539 = arith.addf %537, %538 : vector<24x128xf32>
    %540 = math.sqrt %539 : vector<24x128xf32>
    %cst_202 = arith.constant 0.000000e+00 : f32
    %541 = vector.broadcast %cst_202 : f32 to vector<24x128xf32>
    %542 = arith.select %14, %540, %541 : vector<24x128xi1>, vector<24x128xf32>
    %543 = vector.shape_cast %542 : vector<24x128xf32> to vector<1x24x128xf32>
    %cst_203 = arith.constant dense<0.000000e+00> : vector<1xf32>
    %544 = vector.multi_reduction <add>, %543, %cst_203 [1, 2] : vector<1x24x128xf32> to vector<1xf32>
    %545 = vector.shape_cast %544 : vector<1xf32> to vector<1x1x1xf32>
    %546 = vector.extract %545[0, 0, 0] : f32 from vector<1x1x1xf32>
    %547 = arith.cmpi slt, %c4_i32, %2 : i32
    %cst_204 = arith.constant 0.000000e+00 : f32
    %548 = arith.select %547, %546, %cst_204 : f32
    %549 = arith.addf %442, %548 : f32
    %c5_i32 = arith.constant 5 : i32
    %550 = arith.index_cast %c5_i32 : i32 to index
    %c0_205 = arith.constant 0 : index
    %c0_206 = arith.constant 0 : index
    %551 = vector.load %arg1[%550, %c0_205, %c0_206] : memref<6x24x128xf32, #tpu.memory_space<vmem>>, vector<1x24x128xf32>
    %552 = vector.shape_cast %551 : vector<1x24x128xf32> to vector<24x128xf32>
    %cst_207 = arith.constant 4.000000e-01 : f32
    %553 = vector.broadcast %cst_207 : f32 to vector<24x128xf32>
    %554 = arith.mulf %553, %552 : vector<24x128xf32>
    %c127_i32_208 = arith.constant 127 : i32
    %555 = tpu.dynamic_rotate %552 by %c127_i32_208 dim 1 : vector<24x128xf32>, i32 -> vector<24x128xf32>
    %c1_i32_209 = arith.constant 1 : i32
    %556 = tpu.dynamic_rotate %552 by %c1_i32_209 dim 1 : vector<24x128xf32>, i32 -> vector<24x128xf32>
    %557 = arith.addf %555, %556 : vector<24x128xf32>
    %cst_210 = arith.constant 2.500000e-01 : f32
    %558 = vector.broadcast %cst_210 : f32 to vector<24x128xf32>
    %559 = arith.mulf %558, %557 : vector<24x128xf32>
    %560 = arith.addf %554, %559 : vector<24x128xf32>
    %c126_i32_211 = arith.constant 126 : i32
    %561 = tpu.dynamic_rotate %552 by %c126_i32_211 dim 1 : vector<24x128xf32>, i32 -> vector<24x128xf32>
    %c2_i32_212 = arith.constant 2 : i32
    %562 = tpu.dynamic_rotate %552 by %c2_i32_212 dim 1 : vector<24x128xf32>, i32 -> vector<24x128xf32>
    %563 = arith.addf %561, %562 : vector<24x128xf32>
    %cst_213 = arith.constant 5.000000e-02 : f32
    %564 = vector.broadcast %cst_213 : f32 to vector<24x128xf32>
    %565 = arith.mulf %564, %563 : vector<24x128xf32>
    %566 = arith.addf %560, %565 : vector<24x128xf32>
    %cst_214 = arith.constant 4.000000e-01 : f32
    %567 = vector.broadcast %cst_214 : f32 to vector<24x128xf32>
    %568 = arith.mulf %567, %566 : vector<24x128xf32>
    %c23_i32_215 = arith.constant 23 : i32
    %569 = tpu.dynamic_rotate %566 by %c23_i32_215 dim 0 : vector<24x128xf32>, i32 -> vector<24x128xf32>
    %c1_i32_216 = arith.constant 1 : i32
    %570 = tpu.dynamic_rotate %566 by %c1_i32_216 dim 0 : vector<24x128xf32>, i32 -> vector<24x128xf32>
    %571 = arith.addf %569, %570 : vector<24x128xf32>
    %cst_217 = arith.constant 2.500000e-01 : f32
    %572 = vector.broadcast %cst_217 : f32 to vector<24x128xf32>
    %573 = arith.mulf %572, %571 : vector<24x128xf32>
    %574 = arith.addf %568, %573 : vector<24x128xf32>
    %c22_i32_218 = arith.constant 22 : i32
    %575 = tpu.dynamic_rotate %566 by %c22_i32_218 dim 0 : vector<24x128xf32>, i32 -> vector<24x128xf32>
    %c2_i32_219 = arith.constant 2 : i32
    %576 = tpu.dynamic_rotate %566 by %c2_i32_219 dim 0 : vector<24x128xf32>, i32 -> vector<24x128xf32>
    %577 = arith.addf %575, %576 : vector<24x128xf32>
    %cst_220 = arith.constant 5.000000e-02 : f32
    %578 = vector.broadcast %cst_220 : f32 to vector<24x128xf32>
    %579 = arith.mulf %578, %577 : vector<24x128xf32>
    %580 = arith.addf %574, %579 : vector<24x128xf32>
    %cst_221 = arith.constant 4.000000e+00 : f32
    %581 = vector.broadcast %cst_221 : f32 to vector<24x128xf32>
    %582 = arith.mulf %580, %581 : vector<24x128xf32>
    %cst_222 = arith.constant 0.000000e+00 : f32
    %583 = vector.broadcast %cst_222 : f32 to vector<24x128xf32>
    %584 = arith.select %9, %582, %583 : vector<24x128xi1>, vector<24x128xf32>
    %585 = vector.extract_strided_slice %584 {offsets = [15, 0], sizes = [1, 128], strides = [1, 1]} : vector<24x128xf32> to vector<1x128xf32>
    %586 = vector.shape_cast %585 : vector<1x128xf32> to vector<1x128xf32>
    %587 = vector.broadcast %586 : vector<1x128xf32> to vector<24x128xf32>
    %588 = vector.extract_strided_slice %584 {offsets = [0, 0], sizes = [1, 128], strides = [1, 1]} : vector<24x128xf32> to vector<1x128xf32>
    %589 = vector.shape_cast %588 : vector<1x128xf32> to vector<1x128xf32>
    %590 = vector.broadcast %589 : vector<1x128xf32> to vector<24x128xf32>
    %c16_i32_223 = arith.constant 16 : i32
    %591 = vector.broadcast %c16_i32_223 : i32 to vector<24x128xi32>
    %592 = arith.cmpi sge, %3, %591 : vector<24x128xi32>
    %c18_i32_224 = arith.constant 18 : i32
    %593 = vector.broadcast %c18_i32_224 : i32 to vector<24x128xi32>
    %594 = arith.cmpi slt, %3, %593 : vector<24x128xi32>
    %595 = arith.andi %592, %594 : vector<24x128xi1>
    %596 = arith.select %595, %587, %584 : vector<24x128xi1>, vector<24x128xf32>
    %c22_i32_225 = arith.constant 22 : i32
    %597 = vector.broadcast %c22_i32_225 : i32 to vector<24x128xi32>
    %598 = arith.cmpi sge, %3, %597 : vector<24x128xi32>
    %599 = arith.select %598, %590, %596 : vector<24x128xi1>, vector<24x128xf32>
    %600 = vector.extract_strided_slice %599 {offsets = [0, 15], sizes = [24, 1], strides = [1, 1]} : vector<24x128xf32> to vector<24x1xf32>
    %601 = vector.shape_cast %600 : vector<24x1xf32> to vector<24x1xf32>
    %602 = vector.broadcast %601 : vector<24x1xf32> to vector<24x128xf32>
    %603 = vector.extract_strided_slice %599 {offsets = [0, 0], sizes = [24, 1], strides = [1, 1]} : vector<24x128xf32> to vector<24x1xf32>
    %604 = vector.shape_cast %603 : vector<24x1xf32> to vector<24x1xf32>
    %605 = vector.broadcast %604 : vector<24x1xf32> to vector<24x128xf32>
    %c16_i32_226 = arith.constant 16 : i32
    %606 = vector.broadcast %c16_i32_226 : i32 to vector<24x128xi32>
    %607 = arith.cmpi sge, %4, %606 : vector<24x128xi32>
    %c18_i32_227 = arith.constant 18 : i32
    %608 = vector.broadcast %c18_i32_227 : i32 to vector<24x128xi32>
    %609 = arith.cmpi slt, %4, %608 : vector<24x128xi32>
    %610 = arith.andi %607, %609 : vector<24x128xi1>
    %611 = arith.select %610, %602, %599 : vector<24x128xi1>, vector<24x128xf32>
    %c126_i32_228 = arith.constant 126 : i32
    %612 = vector.broadcast %c126_i32_228 : i32 to vector<24x128xi32>
    %613 = arith.cmpi sge, %4, %612 : vector<24x128xi32>
    %614 = arith.select %613, %605, %611 : vector<24x128xi1>, vector<24x128xf32>
    %cst_229 = arith.constant 4.000000e-01 : f32
    %615 = vector.broadcast %cst_229 : f32 to vector<24x128xf32>
    %616 = arith.mulf %615, %614 : vector<24x128xf32>
    %c127_i32_230 = arith.constant 127 : i32
    %617 = tpu.dynamic_rotate %614 by %c127_i32_230 dim 1 : vector<24x128xf32>, i32 -> vector<24x128xf32>
    %c1_i32_231 = arith.constant 1 : i32
    %618 = tpu.dynamic_rotate %614 by %c1_i32_231 dim 1 : vector<24x128xf32>, i32 -> vector<24x128xf32>
    %619 = arith.addf %617, %618 : vector<24x128xf32>
    %cst_232 = arith.constant 2.500000e-01 : f32
    %620 = vector.broadcast %cst_232 : f32 to vector<24x128xf32>
    %621 = arith.mulf %620, %619 : vector<24x128xf32>
    %622 = arith.addf %616, %621 : vector<24x128xf32>
    %c126_i32_233 = arith.constant 126 : i32
    %623 = tpu.dynamic_rotate %614 by %c126_i32_233 dim 1 : vector<24x128xf32>, i32 -> vector<24x128xf32>
    %c2_i32_234 = arith.constant 2 : i32
    %624 = tpu.dynamic_rotate %614 by %c2_i32_234 dim 1 : vector<24x128xf32>, i32 -> vector<24x128xf32>
    %625 = arith.addf %623, %624 : vector<24x128xf32>
    %cst_235 = arith.constant 5.000000e-02 : f32
    %626 = vector.broadcast %cst_235 : f32 to vector<24x128xf32>
    %627 = arith.mulf %626, %625 : vector<24x128xf32>
    %628 = arith.addf %622, %627 : vector<24x128xf32>
    %cst_236 = arith.constant 4.000000e-01 : f32
    %629 = vector.broadcast %cst_236 : f32 to vector<24x128xf32>
    %630 = arith.mulf %629, %628 : vector<24x128xf32>
    %c23_i32_237 = arith.constant 23 : i32
    %631 = tpu.dynamic_rotate %628 by %c23_i32_237 dim 0 : vector<24x128xf32>, i32 -> vector<24x128xf32>
    %c1_i32_238 = arith.constant 1 : i32
    %632 = tpu.dynamic_rotate %628 by %c1_i32_238 dim 0 : vector<24x128xf32>, i32 -> vector<24x128xf32>
    %633 = arith.addf %631, %632 : vector<24x128xf32>
    %cst_239 = arith.constant 2.500000e-01 : f32
    %634 = vector.broadcast %cst_239 : f32 to vector<24x128xf32>
    %635 = arith.mulf %634, %633 : vector<24x128xf32>
    %636 = arith.addf %630, %635 : vector<24x128xf32>
    %c22_i32_240 = arith.constant 22 : i32
    %637 = tpu.dynamic_rotate %628 by %c22_i32_240 dim 0 : vector<24x128xf32>, i32 -> vector<24x128xf32>
    %c2_i32_241 = arith.constant 2 : i32
    %638 = tpu.dynamic_rotate %628 by %c2_i32_241 dim 0 : vector<24x128xf32>, i32 -> vector<24x128xf32>
    %639 = arith.addf %637, %638 : vector<24x128xf32>
    %cst_242 = arith.constant 5.000000e-02 : f32
    %640 = vector.broadcast %cst_242 : f32 to vector<24x128xf32>
    %641 = arith.mulf %640, %639 : vector<24x128xf32>
    %642 = arith.addf %636, %641 : vector<24x128xf32>
    %643 = arith.subf %552, %642 : vector<24x128xf32>
    %644 = arith.mulf %643, %643 : vector<24x128xf32>
    %645 = vector.broadcast %cst : f32 to vector<24x128xf32>
    %646 = arith.addf %644, %645 : vector<24x128xf32>
    %647 = math.sqrt %646 : vector<24x128xf32>
    %cst_243 = arith.constant 0.000000e+00 : f32
    %648 = vector.broadcast %cst_243 : f32 to vector<24x128xf32>
    %649 = arith.select %14, %647, %648 : vector<24x128xi1>, vector<24x128xf32>
    %650 = vector.shape_cast %649 : vector<24x128xf32> to vector<1x24x128xf32>
    %cst_244 = arith.constant dense<0.000000e+00> : vector<1xf32>
    %651 = vector.multi_reduction <add>, %650, %cst_244 [1, 2] : vector<1x24x128xf32> to vector<1xf32>
    %652 = vector.shape_cast %651 : vector<1xf32> to vector<1x1x1xf32>
    %653 = vector.extract %652[0, 0, 0] : f32 from vector<1x1x1xf32>
    %654 = arith.cmpi slt, %c5_i32, %2 : i32
    %cst_245 = arith.constant 0.000000e+00 : f32
    %655 = arith.select %654, %653, %cst_245 : f32
    %656 = arith.addf %549, %655 : f32
    %c6_i32_246 = arith.constant 6 : i32
    %657 = vector.broadcast %656 : f32 to vector<1x8x128xf32>
    %c0_247 = arith.constant 0 : index
    %c0_248 = arith.constant 0 : index
    %c0_249 = arith.constant 0 : index
    %658 = vector.load %arg2[%c0_247, %c0_248, %c0_249] : memref<1x8x128xf32, #tpu.memory_space<vmem>>, vector<1x8x128xf32>
    tpu.vector_store %arg2[%c0_247, %c0_248, %c0_249], %657 {strides = array<i32>} : memref<1x8x128xf32, #tpu.memory_space<vmem>>, vector<1x8x128xf32>,
    return
  }
  func.func @transform_0(%arg0: i32) -> (i32, i32, i32) {
    %c0_i32 = arith.constant 0 : i32
    %c0_i32_0 = arith.constant 0 : i32
    %c0_i32_1 = arith.constant 0 : i32
    return %arg0, %c0_i32, %c0_i32_0 : i32, i32, i32
  }
  func.func @transform_1(%arg0: i32) -> (i32, i32, i32) {
    %c0_i32 = arith.constant 0 : i32
    %c0_i32_0 = arith.constant 0 : i32
    %c0_i32_1 = arith.constant 0 : i32
    return %arg0, %c0_i32, %c0_i32_0 : i32, i32, i32
  }
}

</mosaic_0001>

<bundles_post_ra>
// kernel: tpu_custom_call.1
= control target key start
LH: loop header
LB: loop body
LE: loop exit
PB: predicated region body
PF: predicated region fallthrough
CT: control target
= control target key end

     0   :  { %6 = vsyncpa [#allocation3], 0  ;;  %s3338_s0 = inlined_call_operand.hbm [shape: f32[6,24,128], index: 0, kind: input, shape index: {}]   ;;  %s3339_s1 = inlined_call_operand.hbm [shape: f32[1,8,128], index: 1, kind: output, shape index: {}]  }
   0x1   :  { %7 = vsyncpa [#allocation4], 0  ;;  %s1909_s6 = smov [#allocation2]  }
   0x2   :  { %s13_s7 = sshll.u32 %s1909_s6, 4  ;;  %s14_s7 = int_to_ptr.vmem [resolvable:$true] %s13_s7 }
   0x3   :  { %s1873_s8 = scalar_lea.vmem %s14_s7, 2304  ;;  %p1878_p1 = scmp.lt.s32.totalorder %s14_s7, %s14_s7 }
   0x4   :  { %p1874_p0 = scmp.ne.s32.totalorder %s14_s7, %s1873_s8  ;;  %p1879_p2 = scmp.lt.s32.totalorder %s1873_s8, %s1873_s8 }
   0x6   :  { %p1880_p3 = por %p1879_p2, %p1878_p1 }
   0x8   :  { %p1881_p4 = pnand %p1880_p3, %p1874_p0 }
   0xa   :  { %1884 = shalt.err (!%p1881_p4)
}
   0xb   :  { %s1910_s9 = smov 128   ;;  %s1911_s10 = smov 8  }
   0xc   :  { %19 = dma.hbm_to_vmem [thread:$0]  %s3338_s0, 2304, %s14_s7, [#allocation3], %s1910_s9, %s1910_s9, %s1911_s10  }
   0xd   :  { %1905 = dma.done.wait [#allocation3], 2304  }
   0xe   :  { %1906 = vsyncadd [#allocation3], 4294964992  ;;  %v1932_v0 = vld [vmem:[#allocation2 + $0x10] sm:$0xff]  ;;  %v1934_v1 = vld [vmem:[#allocation2] sm:$0xff]  ;;  %s1912_s13 = smov 127   ;;  %s1913_s14 = smov 1   ;;  %v27_v26 = vlaneseq }
   0xf   :  { %59 = vrot.lane.b32.xlu1 %v1932_v0, %s1912_s13  ;;  %55 = vrot.lane.b32.xlu0 %v1934_v1, %s1912_s13  ;;  %v1940_v2 = vld [vmem:[#allocation2 + $0x8] sm:$0xff]  ;;  %s1914_s0 = smov 126   ;;  %s1915_s15 = smov 2   ;;  %v1962_v3 = vld [vmem:[#allocation2 + $0x18] sm:$0xff]  ;;  %v1970_v5 = vld [vmem:[#allocation2 + $0x20] sm:$0xff]  ;;  %v3340_v7 = vmov 15  }
  0x10   :  { %v1964_v4 = vld [vmem:[#allocation2 + $0x28] sm:$0xff]  ;;  %v1972_v6 = vld [vmem:[#allocation2 + $0x30] sm:$0xff]  ;;  %1812 = vset.pattern.permute.xlu1 %v3340_v7  ;;  %1811 = vset.pattern.permute.xlu0 %v3340_v7  ;;  %v1980_v8 = vld [vmem:[#allocation2 + $0x38] sm:$0xff]  ;;  %v52_v28 = vmul.f32 0.4, %v1934_v1  ;;  %v2070_v35 = vshrl.u32 %v27_v26, 7 }
  0x11   :  { %v1986_v9 = vld [vmem:[#allocation2 + $0x40] sm:$0xff]  ;;  %v2024_v10 = vld [vmem:[#allocation2 + $0x48] sm:$0xff]  ;;  %v2030_v11 = vld [vmem:[#allocation2 + $0x50] sm:$0xff]  ;;  %v53_v32 = vmul.f32 0.4, %v1940_v2  ;;  %v2074_v46 = vand.u32 127, %v27_v26 }
  0x12   :  { %v2032_v12 = vld [vmem:[#allocation2 + $0x58] sm:$0xff]  ;;  %v2050_v13 = vld [vmem:[#allocation2 + $0x68] sm:$0xff]  ;;  %v2056_v14 = vld [vmem:[#allocation2 + $0x60] sm:$0xff]  ;;  %v54_v36 = vmul.f32 0.4, %v1932_v0  ;;  %v29_v42 = vadd.s32 8, %v2070_v35 }
  0x13   :  { %61 = vrot.lane.b32.xlu1 %v1934_v1, %s1913_s14  ;;  %57 = vrot.lane.b32.xlu0 %v1940_v2, %s1912_s13  ;;  %v2064_v15 = vld [vmem:[#allocation2 + $0x70] sm:$0xff]  ;;  %3355 = vst [vmem:[#allocation8_spill] sm:$0xff] %v2074_v46  ;;  %vm103_vm0 = vcmp.lt.s32.totalorder %v2070_v35, 7  ;;  %vm110_vm1 = vcmp.lt.s32.totalorder %v2070_v35, 1  ;;  %vm126_vm2 = vcmp.lt.s32.totalorder %v2070_v35, 6  ;;  %vm133_vm3 = vcmp.lt.s32.totalorder %v2070_v35, 2 }
  0x14   :  { %v34_v55 = vor.u32 %v2074_v46, %v29_v42  ;;  %v33_v58 = vor.u32 %v2074_v46, %v2070_v35  ;;  %s1918_s25 = smov [#allocation5]  }
  0x15   :  { %s1780_s26 = sshll.u32 %s1918_s25, 4  ;;  %s1781_s26 = int_to_ptr.vmem [resolvable:$true] %s1780_s26 }
  0x16   :  { %v2145_v42 = vand.u32 1, %v33_v58  ;;  %s1885_s29 = scalar_lea.vmem %s1781_s26, 128  ;;  %p1890_p6 = scmp.lt.s32.totalorder %s1781_s26, %s1781_s26 }
  0x17   :  { %65 = vrot.lane.b32.xlu1 %v1932_v0, %s1913_s14  ;;  %63 = vrot.lane.b32.xlu0 %v1940_v2, %s1913_s14  ;;  %p1886_p5 = scmp.ne.s32.totalorder %s1781_s26, %s1885_s29  ;;  %p1891_p7 = scmp.lt.s32.totalorder %s1885_s29, %s1885_s29 }
  0x18   :  { %vm39_vm5 = vcmp.eq.s32.totalorder %v2145_v42, 0 }
  0x19   :  { %p1892_p8 = por %p1891_p7, %p1890_p6 }
  0x1b   :  { %78 = vrot.lane.b32.xlu1 %v1940_v2, %s1914_s0  ;;  %76 = vrot.lane.b32.xlu0 %v1934_v1, %s1914_s0  ;;  %p1893_p9 = pnand %p1892_p8, %p1886_p5 }
  0x1f   :  { %82 = vrot.lane.b32.xlu1 %v1934_v1, %s1915_s15  ;;  %80 = vrot.lane.b32.xlu0 %v1932_v0, %s1914_s0 }
  0x23   :  { %86 = vrot.lane.b32.xlu1 %v1932_v0, %s1915_s15  ;;  %84 = vrot.lane.b32.xlu0 %v1940_v2, %s1915_s15 }
  0x27   :  { %359 = vrot.lane.b32.xlu1 %v1962_v3, %s1912_s13  ;;  %384 = vrot.lane.b32.xlu0 %v1964_v4, %s1914_s0 }
  0x2b   :  { %361 = vrot.lane.b32.xlu1 %v1970_v5, %s1912_s13  ;;  %643 = vrot.lane.b32.xlu0 %v1972_v6, %s1912_s13 }
  0x2f   :  { %363 = vrot.lane.b32.xlu1 %v1964_v4, %s1912_s13  ;;  %645 = vrot.lane.b32.xlu0 %v1980_v8, %s1912_s13 }
  0x33   :  { %365 = vrot.lane.b32.xlu1 %v1962_v3, %s1913_s14  ;;  %647 = vrot.lane.b32.xlu0 %v1986_v9, %s1912_s13 }
  0x37   :  { %367 = vrot.lane.b32.xlu1 %v1970_v5, %s1913_s14  ;;  %649 = vrot.lane.b32.xlu0 %v1972_v6, %s1913_s14 }
  0x3b   :  { %369 = vrot.lane.b32.xlu1 %v1964_v4, %s1913_s14  ;;  %651 = vrot.lane.b32.xlu0 %v1980_v8, %s1913_s14 }
  0x3f   :  { %380 = vrot.lane.b32.xlu1 %v1962_v3, %s1914_s0  ;;  %653 = vrot.lane.b32.xlu0 %v1986_v9, %s1913_s14 }
  0x43   :  { %382 = vrot.lane.b32.xlu1 %v1970_v5, %s1914_s0  ;;  %664 = vrot.lane.b32.xlu0 %v1972_v6, %s1914_s0 }
  0x47   :  { %386 = vrot.lane.b32.xlu1 %v1962_v3, %s1915_s15  ;;  %666 = vrot.lane.b32.xlu0 %v1980_v8, %s1914_s0 }
  0x4b   :  { %388 = vrot.lane.b32.xlu1 %v1970_v5, %s1915_s15  ;;  %668 = vrot.lane.b32.xlu0 %v1986_v9, %s1914_s0 }
  0x4f   :  { %390 = vrot.lane.b32.xlu1 %v1964_v4, %s1915_s15  ;;  %672 = vrot.lane.b32.xlu0 %v1980_v8, %s1915_s15 }
  0x53   :  { %674 = vrot.lane.b32.xlu0 %v1986_v9, %s1915_s15  ;;  %670 = vrot.lane.b32.xlu1 %v1972_v6, %s1915_s15 }
  0x57   :  { %927 = vrot.lane.b32.xlu0 %v2024_v10, %s1912_s13  ;;  %933 = vrot.lane.b32.xlu1 %v2024_v10, %s1913_s14 }
  0x5b   :  { %929 = vrot.lane.b32.xlu0 %v2030_v11, %s1912_s13  ;;  %937 = vrot.lane.b32.xlu1 %v2032_v12, %s1913_s14 }
  0x5f   :  { %931 = vrot.lane.b32.xlu0 %v2032_v12, %s1912_s13  ;;  %950 = vrot.lane.b32.xlu1 %v2030_v11, %s1914_s0 }
  0x63   :  { %935 = vrot.lane.b32.xlu0 %v2030_v11, %s1913_s14  ;;  %954 = vrot.lane.b32.xlu1 %v2024_v10, %s1915_s15 }
  0x67   :  { %948 = vrot.lane.b32.xlu0 %v2024_v10, %s1914_s0  ;;  %958 = vrot.lane.b32.xlu1 %v2032_v12, %s1915_s15 }
  0x6b   :  { %952 = vrot.lane.b32.xlu0 %v2032_v12, %s1914_s0  ;;  %1213 = vrot.lane.b32.xlu1 %v2050_v13, %s1912_s13 }
  0x6f   :  { %956 = vrot.lane.b32.xlu0 %v2030_v11, %s1915_s15  ;;  %1217 = vrot.lane.b32.xlu1 %v2056_v14, %s1913_s14 }
  0x73   :  { %1211 = vrot.lane.b32.xlu0 %v2056_v14, %s1912_s13 }
  0x77   :  { %1215 = vrot.lane.b32.xlu0 %v2064_v15, %s1912_s13 }
  0x81   :  { %v60_v16 = vpop.permute.xlu1 %59  ;;  %v56_v17 = vpop.permute.xlu0 %55 }
  0x85   :  { %v62_v18 = vpop.permute.xlu1 %61  ;;  %v58_v19 = vpop.permute.xlu0 %57 }
  0x86   :  { %v67_v22 = vadd.f32 %v62_v18, %v56_v17 }
  0x88   :  { %v70_v29 = vmul.f32 0.25, %v67_v22 }
  0x89   :  { %v66_v20 = vpop.permute.xlu1 %65  ;;  %v64_v21 = vpop.permute.xlu0 %63 }
  0x8a   :  { %v68_v25 = vadd.f32 %v64_v21, %v58_v19  ;;  %v69_v27 = vadd.f32 %v66_v20, %v60_v16  ;;  %v73_v39 = vadd.f32 %v70_v29, %v52_v28 }
  0x8c   :  { %v71_v33 = vmul.f32 0.25, %v68_v25  ;;  %v72_v37 = vmul.f32 0.25, %v69_v27 }
  0x8d   :  { %v79_v23 = vpop.permute.xlu1 %78  ;;  %v77_v24 = vpop.permute.xlu0 %76 }
  0x8e   :  { %v74_v43 = vadd.f32 %v71_v33, %v53_v32  ;;  %v75_v48 = vadd.f32 %v72_v37, %v54_v36  ;;  %v2142_v37 = vand.u32 1, %v34_v55 }
  0x90   :  { %vm40_vm4 = vcmp.eq.s32.totalorder %v2142_v37, 0 }
  0x91   :  { %v83_v30 = vpop.permute.xlu1 %82  ;;  %v81_v31 = vpop.permute.xlu0 %80 }
  0x92   :  { %v88_v34 = vadd.f32 %v83_v30, %v77_v24 }
  0x94   :  { %v91_v38 = vmul.f32 0.05, %v88_v34 }
  0x95   :  { %v87_v40 = vpop.permute.xlu1 %86  ;;  %v85_v41 = vpop.permute.xlu0 %84 }
  0x96   :  { %v90_v44 = vadd.f32 %v87_v40, %v81_v31  ;;  %v89_v45 = vadd.f32 %v85_v41, %v79_v23  ;;  %v2076_v47 = vadd.f32 %v91_v38, %v73_v39 }
  0x98   :  { %v93_v49 = vmul.f32 0.05, %v90_v44  ;;  %v92_v50 = vmul.f32 0.05, %v89_v45  ;;  %v107_v56 = vrot.slane %v2076_v47, 7  ;;  %v130_v57 = vrot.slane %v2076_v47, 6 }
  0x99   :  { %v2078_v51 = vpop.permute.xlu1 %359  ;;  %v2083_v52 = vpop.permute.xlu0 %384  ;;  %v100_v59 = vrot.slane %v2076_v47, 1  ;;  %v123_v63 = vrot.slane %v2076_v47, 2  ;;  %v97_v38 = vmul.f32 0.4, %v2076_v47 }
  0x9a   :  { %v2085_v53 = vadd.f32 %v93_v49, %v75_v48  ;;  %v2087_v54 = vadd.f32 %v92_v50, %v74_v43 }
  0x9c   :  { %v101_v60 = vrot.slane %v2087_v54, 1  ;;  %v102_v61 = vrot.slane %v2085_v53, 1  ;;  %v108_v62 = vrot.slane %v2087_v54, 7  ;;  %v124_v1 = vrot.slane %v2087_v54, 2 }
  0x9d   :  { %v362_v0 = vpop.permute.xlu1 %361  ;;  %v125_v2 = vrot.slane %v2085_v53, 2  ;;  %v131_v16 = vrot.slane %v2087_v54, 6  ;;  %v109_v17 = vrot.slane %v2085_v53, 7  ;;  %v2104_v18 = vpop.permute.xlu0 %643  ;;  %v132_v22 = vrot.slane %v2085_v53, 6 }
  0x9e   :  { %v104_v19 = vsel %vm103_vm0, %v101_v60, %v102_v61  ;;  %v112_v20 = vsel %vm110_vm1, %v107_v56, %v108_v62  ;;  %v105_v21 = vsel %vm103_vm0, %v100_v59, %v101_v60  ;;  %v128_v29 = vsel %vm126_vm2, %v123_v63, %v124_v1 }
  0x9f   :  { %v115_v23 = vadd.f32 %v112_v20, %v104_v19  ;;  %v127_v24 = vsel %vm126_vm2, %v124_v1, %v125_v2  ;;  %v135_v25 = vsel %vm133_vm3, %v130_v57, %v131_v16  ;;  %v113_v26 = vsel %vm110_vm1, %v109_v17, %v107_v56 }
  0xa0   :  { %v138_v27 = vadd.f32 %v135_v25, %v127_v24  ;;  %v114_v28 = vadd.f32 %v113_v26, %v105_v21  ;;  %v136_v30 = vsel %vm133_vm3, %v132_v22, %v130_v57  ;;  %v98_v32 = vmul.f32 0.4, %v2087_v54 }
  0xa1   :  { %v364_v31 = vpop.permute.xlu1 %363  ;;  %v118_v33 = vmul.f32 0.25, %v115_v23  ;;  %v137_v34 = vadd.f32 %v136_v30, %v128_v29  ;;  %v2140_v36 = vpop.permute.xlu0 %645  ;;  %v3342_v21 = vmov 0  }
  0xa2   :  { %v117_v39 = vmul.f32 0.25, %v114_v28  ;;  %v141_v41 = vmul.f32 0.05, %v138_v27 }
  0xa3   :  { %v121_v40 = vadd.f32 %v118_v33, %v98_v32  ;;  %v140_v44 = vmul.f32 0.05, %v137_v34  ;;  %v356_v33 = vmul.f32 0.4, %v1962_v3  ;;  %v106_v3 = vsel %vm103_vm0, %v102_v61, %v100_v59 }
  0xa4   :  { %v120_v43 = vadd.f32 %v117_v39, %v97_v38  ;;  %v357_v38 = vmul.f32 0.4, %v1970_v5  ;;  %v111_v5 = vsel %vm110_vm1, %v108_v62, %v109_v17  ;;  %v129_v59 = vsel %vm126_vm2, %v125_v2, %v123_v63 }
  0xa5   :  { %v366_v45 = vpop.permute.xlu1 %365  ;;  %v144_v48 = vadd.f32 %v141_v41, %v121_v40  ;;  %v2147_v49 = vpop.permute.xlu0 %647  ;;  %v134_v61 = vsel %vm133_vm3, %v131_v16, %v132_v22  ;;  %v99_v63 = vmul.f32 0.4, %v2085_v53 }
  0xa6   :  { %v143_v50 = vadd.f32 %v140_v44, %v120_v43  ;;  %v371_v27 = vadd.f32 %v366_v45, %v2078_v51  ;;  %v2183_v51 = vadd.s32 16, %v2070_v35 }
  0xa7   :  { %v147_v56 = vmul.f32 4.0, %v144_v48 }
  0xa8   :  { %v146_v55 = vmul.f32 4.0, %v143_v50  ;;  %v374_v34 = vmul.f32 0.25, %v371_v27  ;;  %v358_v50 = vmul.f32 0.4, %v1964_v4  ;;  %vm165_vm7 = vcmp.lt.s32.totalorder %v2183_v51, 18 }
  0xa9   :  { %v368_v57 = vpop.permute.xlu1 %367  ;;  %v2153_v60 = vsel %vm40_vm4, %v147_v56, 0.0  ;;  %v2155_v58 = vpop.permute.xlu0 %649  ;;  %vm174_vm8 = vcmp.ge.s32.totalorder %v2183_v51, 22 }
  0xaa   :  { %185 = vperm.xlu1 %1812, %v2153_v60   ;;  %v2160_v1 = vsel %vm39_vm5, %v146_v55, 0.0  ;;  %v372_v28 = vadd.f32 %v368_v57, %v362_v0  ;;  %v377_v0 = vadd.f32 %v374_v34, %v356_v33  ;;  %v139_v34 = vadd.f32 %v134_v61, %v129_v59 }
  0xab   :  { %180 = vperm.xlu0 %1811, %v2160_v1  }
  0xac   :  { %v375_v39 = vmul.f32 0.25, %v372_v28 }
  0xad   :  { %v370_v19 = vpop.permute.xlu1 %369  ;;  %v2163_v20 = vpop.permute.xlu0 %651 }
  0xae   :  { %1814 = vset.pattern.permute.xlu1 %v3342_v21  ;;  %v373_v40 = vadd.f32 %v370_v19, %v364_v31  ;;  %v378_v31 = vadd.f32 %v375_v39, %v357_v38 }
  0xaf   :  { %1813 = vset.pattern.permute.xlu0 %v3342_v21  ;;  %198 = vperm.xlu1 %1814, %v2153_v60  }
  0xb0   :  { %194 = vperm.xlu0 %1813, %v2160_v1   ;;  %v376_v4 = vmul.f32 0.25, %v373_v40 }
  0xb1   :  { %v381_v23 = vpop.permute.xlu1 %380  ;;  %v2169_v24 = vpop.permute.xlu0 %653 }
  0xb2   :  { %v379_v62 = vadd.f32 %v376_v4, %v358_v50 }
  0xb3   :  { %1815 = vset.pattern.permute.xlu1 %v3340_v7 }
  0xb5   :  { %v383_v25 = vpop.permute.xlu1 %382  ;;  %v2172_v26 = vpop.permute.xlu0 %664 }
  0xb9   :  { %v387_v29 = vpop.permute.xlu1 %386  ;;  %v2175_v30 = vpop.permute.xlu0 %666 }
  0xba   :  { %v392_v32 = vadd.f32 %v387_v29, %v381_v23 }
  0xbc   :  { %v395_v44 = vmul.f32 0.05, %v392_v32 }
  0xbd   :  { %v389_v41 = vpop.permute.xlu1 %388  ;;  %v2179_v43 = vpop.permute.xlu0 %668 }
  0xbe   :  { %v393_v48 = vadd.f32 %v389_v41, %v383_v25  ;;  %v398_v57 = vadd.f32 %v395_v44, %v377_v0  ;;  %v116_v25 = vadd.f32 %v111_v5, %v106_v3 }
  0xc0   :  { %v396_v45 = vmul.f32 0.05, %v393_v48  ;;  %v404_v33 = vrot.slane %v398_v57, 1  ;;  %v119_v54 = vmul.f32 0.25, %v116_v25  ;;  %v410_v38 = vrot.slane %v398_v57, 7 }
  0xc1   :  { %v391_v56 = vpop.permute.xlu1 %390  ;;  %v2197_v55 = vpop.permute.xlu0 %672  ;;  %v425_v16 = vrot.slane %v398_v57, 2  ;;  %v431_v22 = vrot.slane %v398_v57, 6  ;;  %v401_v50 = vmul.f32 0.4, %v398_v57 }
  0xc2   :  { %v399_v19 = vadd.f32 %v396_v45, %v378_v31  ;;  %v394_v23 = vadd.f32 %v391_v56, %v2083_v52  ;;  %v35_v52 = vor.u32 %v2074_v46, %v2183_v51 }
  0xc4   :  { %v397_v17 = vmul.f32 0.05, %v394_v23  ;;  %v405_v27 = vrot.slane %v399_v19, 1  ;;  %v426_v28 = vrot.slane %v399_v19, 2  ;;  %v411_v29 = vrot.slane %v399_v19, 7 }
  0xc5   :  { %v2214_v47 = vpop.permute.xlu0 %674  ;;  %v2216_v32 = vpop.permute.xlu1 %670  ;;  %v432_v39 = vrot.slane %v399_v19, 6  ;;  %v402_v21 = vmul.f32 0.4, %v399_v19 }
  0xc6   :  { %v400_v2 = vadd.f32 %v397_v17, %v379_v62  ;;  %v408_v3 = vsel %vm103_vm0, %v404_v33, %v405_v27  ;;  %v429_v5 = vsel %vm126_vm2, %v425_v16, %v426_v28  ;;  %v414_v53 = vsel %vm110_vm1, %v410_v38, %v411_v29 }
  0xc7   :  { %v435_v61 = vsel %vm133_vm3, %v431_v22, %v432_v39 }
  0xc8   :  { %v412_v40 = vrot.slane %v400_v2, 7  ;;  %v433_v41 = vrot.slane %v400_v2, 6  ;;  %v406_v44 = vrot.slane %v400_v2, 1  ;;  %v427_v48 = vrot.slane %v400_v2, 2 }
  0xc9   :  { %v2225_v0 = vpop.permute.xlu0 %927  ;;  %v2227_v31 = vpop.permute.xlu1 %933 }
  0xca   :  { %v415_v4 = vsel %vm110_vm1, %v412_v40, %v410_v38  ;;  %v436_v45 = vsel %vm133_vm3, %v433_v41, %v431_v22  ;;  %v407_v56 = vsel %vm103_vm0, %v405_v27, %v406_v44  ;;  %v428_v57 = vsel %vm126_vm2, %v426_v28, %v427_v48 }
  0xcb   :  { %v416_v23 = vadd.f32 %v415_v4, %v408_v3  ;;  %v437_v25 = vadd.f32 %v436_v45, %v429_v5  ;;  %v417_v59 = vadd.f32 %v414_v53, %v407_v56  ;;  %v438_v62 = vadd.f32 %v435_v61, %v428_v57 }
  0xcc   :  { %v409_v17 = vsel %vm103_vm0, %v406_v44, %v404_v33  ;;  %v413_v38 = vsel %vm110_vm1, %v411_v29, %v412_v40  ;;  %v430_v7 = vsel %vm126_vm2, %v427_v48, %v425_v16  ;;  %v403_v45 = vmul.f32 0.4, %v400_v2 }
  0xcd   :  { %v419_v27 = vmul.f32 0.25, %v416_v23  ;;  %v420_v46 = vmul.f32 0.25, %v417_v59  ;;  %v418_v28 = vadd.f32 %v413_v38, %v409_v17  ;;  %v930_v3 = vpop.permute.xlu0 %929  ;;  %v938_v5 = vpop.permute.xlu1 %937  ;;  %v440_v53 = vmul.f32 0.05, %v437_v25 }
  0xce   :  { %v441_v4 = vmul.f32 0.05, %v438_v62  ;;  %v434_v22 = vsel %vm133_vm3, %v432_v39, %v433_v41  ;;  %v122_v29 = vadd.f32 %v119_v54, %v99_v63  ;;  %v2249_v59 = vand.u32 1, %v35_v52 }
  0xcf   :  { %v422_v56 = vadd.f32 %v419_v27, %v401_v50  ;;  %v423_v33 = vadd.f32 %v420_v46, %v402_v21  ;;  %v421_v44 = vmul.f32 0.25, %v418_v28  ;;  %v439_v57 = vadd.f32 %v434_v22, %v430_v7 }
  0xd0   :  { %v142_v25 = vmul.f32 0.05, %v139_v34  ;;  %v2252_v39 = vsub.s32 7, %v2070_v35  ;;  %v2255_v46 = vsub.s32 0, %v2070_v35  ;;  %v655_v21 = vadd.f32 %v2155_v58, %v2104_v18 }
  0xd1   :  { %v443_v40 = vadd.f32 %v440_v53, %v422_v56  ;;  %v444_v61 = vadd.f32 %v441_v4, %v423_v33  ;;  %v424_v16 = vadd.f32 %v421_v44, %v403_v45  ;;  %v442_v48 = vmul.f32 0.05, %v439_v57  ;;  %v932_v19 = vpop.permute.xlu0 %931  ;;  %v2247_v23 = vpop.permute.xlu1 %950 }
  0xd2   :  { %v145_v7 = vadd.f32 %v142_v25, %v122_v29  ;;  %v656_v41 = vadd.f32 %v2163_v20, %v2140_v36  ;;  %vm41_vm6 = vcmp.eq.s32.totalorder %v2249_v59, 0  ;;  %v657_v50 = vadd.f32 %v2169_v24, %v2147_v49 }
  0xd3   :  { %v446_v62 = vmul.f32 4.0, %v443_v40  ;;  %v447_v2 = vmul.f32 4.0, %v444_v61  ;;  %v445_v17 = vadd.f32 %v442_v48, %v424_v16  ;;  %v640_v38 = vmul.f32 0.4, %v1972_v6 }
  0xd4   :  { %v641_v28 = vmul.f32 0.4, %v1980_v8  ;;  %v642_v53 = vmul.f32 0.4, %v1986_v9  ;;  %v148_v24 = vmul.f32 4.0, %v145_v7  ;;  %v658_v45 = vmul.f32 0.25, %v655_v21 }
  0xd5   :  { %v2261_v63 = vsel %vm39_vm5, %v446_v62, 0.0  ;;  %v2265_v52 = vsel %vm40_vm4, %v447_v2, 0.0  ;;  %v448_v54 = vmul.f32 4.0, %v445_v17  ;;  %v936_v34 = vpop.permute.xlu0 %935  ;;  %v955_v20 = vpop.permute.xlu1 %954  ;;  %v659_v22 = vmul.f32 0.25, %v656_v41 }
  0xd6   :  { %468 = vperm.xlu1 %1815, %v2261_v63   ;;  %482 = vperm.xlu0 %1813, %v2261_v63   ;;  %v455_v18 = vrot.slane %v2265_v52, %v2252_v39  ;;  %v459_v58 = vrot.slane %v2261_v63, %v2255_v46  ;;  %v677_v6 = vadd.f32 %v2197_v55, %v2175_v30  ;;  %v660_v56 = vmul.f32 0.25, %v657_v50 }
  0xd7   :  { %v451_v36 = vsel %vm41_vm6, %v448_v54, 0.0  ;;  %v676_v8 = vadd.f32 %v2216_v32, %v2172_v26  ;;  %v678_v9 = vadd.f32 %v2214_v47, %v2179_v43  ;;  %v939_v33 = vadd.f32 %v2227_v31, %v2225_v0 }
  0xd8   :  { %v462_v27 = vsel %vm165_vm7, %v455_v18, %v451_v36  ;;  %v941_v44 = vadd.f32 %v938_v5, %v932_v19  ;;  %v155_v57 = vrot.slane %v2153_v60, %v2252_v39  ;;  %v924_v30 = vmul.f32 0.4, %v2024_v10 }
  0xd9   :  { %v2289_v49 = vsel %vm174_vm8, %v459_v58, %v462_v27  ;;  %v949_v4 = vpop.permute.xlu0 %948  ;;  %v940_v55 = vadd.f32 %v936_v34, %v930_v3  ;;  %v151_v29 = vsel %vm41_vm6, %v148_v24, 0.0  ;;  %v159_v26 = vrot.slane %v2160_v1, %v2255_v46  ;;  %v959_v40 = vpop.permute.xlu1 %958 }
  0xda   :  { %473 = vperm.xlu1 %1815, %v2265_v52   ;;  %490 = vperm.xlu0 %1813, %v2289_v49   ;;  %v926_v32 = vmul.f32 0.4, %v2032_v12  ;;  %v925_v43 = vmul.f32 0.4, %v2030_v11  ;;  %v661_v0 = vadd.f32 %v658_v45, %v640_v38  ;;  %v662_v31 = vadd.f32 %v659_v22, %v641_v28 }
  0xdb   :  { %v680_v5 = vmul.f32 0.05, %v677_v6  ;;  %v3356_v61 = vmov 0   ;;  %v679_v10 = vmul.f32 0.05, %v676_v8  ;;  %v663_v3 = vadd.f32 %v660_v56, %v642_v53  ;;  %v2353_v8 = vld [vmem:[#allocation2 + $0x78] sm:$0xff] }
  0xdc   :  { %v681_v16 = vmul.f32 0.05, %v678_v9  ;;  %v942_v48 = vmul.f32 0.25, %v939_v33  ;;  %v944_v19 = vmul.f32 0.25, %v941_v44  ;;  %v3357_v12 = vmov 15  }
  0xdd   :  { %v953_v47 = vpop.permute.xlu0 %952  ;;  %v171_v11 = vsel %vm165_vm7, %v155_v57, %v151_v29  ;;  %v943_v25 = vmul.f32 0.25, %v940_v55  ;;  %v960_v62 = vadd.f32 %v955_v20, %v949_v4  ;;  %v2317_v7 = vadd.f32 %v680_v5, %v662_v31 }
  0xde   :  { %1816 = vset.pattern.permute.xlu1 %v3356_v61  ;;  %1219 = vrot.lane.b32.xlu0 %v2050_v13, %s1913_s14  ;;  %v962_v2 = vadd.f32 %v959_v40, %v953_v47  ;;  %v2319_v21 = vadd.f32 %v679_v10, %v661_v0  ;;  %v2324_v34 = vadd.f32 %v681_v16, %v663_v3 }
  0xdf   :  { %486 = vperm.xlu1 %1816, %v2265_v52   ;;  %1820 = vset.pattern.permute.xlu0 %v3357_v12  ;;  %v2329_v41 = vsel %vm174_vm8, %v159_v26, %v171_v11  ;;  %v945_v18 = vadd.f32 %v942_v48, %v924_v30  ;;  %v947_v58 = vadd.f32 %v944_v19, %v926_v32  ;;  %v963_v36 = vmul.f32 0.05, %v960_v62  ;;  %v2370_v32 = vld [vmem:[#allocation2 + $0x88] sm:$0xff]  ;;  %v2401_v19 = vld [vmem:[#allocation2 + $0x80] sm:$0xff] }
  0xe0   :  { %v946_v50 = vadd.f32 %v943_v25, %v925_v43  ;;  %v965_v20 = vmul.f32 0.05, %v962_v2  ;;  %v689_v27 = vrot.slane %v2317_v7, 1  ;;  %v694_v28 = vrot.slane %v2319_v21, 7 }
  0xe1   :  { %v957_v17 = vpop.permute.xlu0 %956  ;;  %v696_v53 = vrot.slane %v2324_v34, 7  ;;  %v2339_v24 = vadd.f32 %v963_v36, %v945_v18  ;;  %v709_v6 = vrot.slane %v2319_v21, 2  ;;  %v710_v9 = vrot.slane %v2317_v7, 2 }
  0xe2   :  { %1232 = vrot.lane.b32.xlu0 %v2056_v14, %s1914_s0  ;;  %v961_v54 = vadd.f32 %v957_v17, %v2247_v23  ;;  %v688_v23 = vrot.slane %v2319_v21, 1  ;;  %v2341_v4 = vadd.f32 %v965_v20, %v947_v58  ;;  %v715_v33 = vrot.slane %v2319_v21, 6 }
  0xe3   :  { %1817 = vset.pattern.permute.xlu1 %v3357_v12  ;;  %v699_v56 = vsel %vm110_vm1, %v696_v53, %v694_v28  ;;  %v717_v44 = vrot.slane %v2324_v34, 6  ;;  %v972_v57 = vrot.slane %v2339_v24, 1  ;;  %v978_v55 = vrot.slane %v2339_v24, 7 }
  0xe4   :  { %190 = vperm.xlu1 %1817, %v2329_v41   ;;  %v964_v38 = vmul.f32 0.05, %v961_v54  ;;  %v692_v22 = vsel %vm103_vm0, %v688_v23, %v689_v27  ;;  %v980_v29 = vrot.slane %v2341_v4, 7  ;;  %v713_v43 = vsel %vm126_vm2, %v709_v6, %v710_v9 }
  0xe5   :  { %v700_v26 = vadd.f32 %v699_v56, %v692_v22  ;;  %v720_v47 = vsel %vm133_vm3, %v717_v44, %v715_v33  ;;  %v993_v40 = vrot.slane %v2339_v24, 2  ;;  %v999_v0 = vrot.slane %v2339_v24, 6 }
  0xe6   :  { %1236 = vrot.lane.b32.xlu0 %v2064_v15, %s1914_s0  ;;  %v2343_v45 = vadd.f32 %v964_v38, %v946_v50  ;;  %v983_v5 = vsel %vm110_vm1, %v980_v29, %v978_v55  ;;  %v1001_v3 = vrot.slane %v2341_v4, 6  ;;  %v685_v16 = vmul.f32 0.4, %v2319_v21 }
  0xe7   :  { %v703_v48 = vmul.f32 0.25, %v700_v26  ;;  %v721_v11 = vadd.f32 %v720_v47, %v713_v43  ;;  %v690_v54 = vrot.slane %v2324_v34, 1  ;;  %v695_v18 = vrot.slane %v2317_v7, 7 }
  0xe8   :  { %1818 = vset.pattern.permute.xlu1 %v3356_v61  ;;  %v973_v30 = vrot.slane %v2343_v45, 1  ;;  %v994_v10 = vrot.slane %v2343_v45, 2  ;;  %v1004_v2 = vsel %vm133_vm3, %v1001_v3, %v999_v0  ;;  %v969_v50 = vmul.f32 0.4, %v2339_v24 }
  0xe9   :  { %202 = vperm.xlu1 %1818, %v2329_v41   ;;  %v706_v17 = vadd.f32 %v703_v48, %v685_v16  ;;  %v724_v58 = vmul.f32 0.05, %v721_v11  ;;  %v691_v38 = vsel %vm103_vm0, %v689_v27, %v690_v54  ;;  %v711_v22 = vrot.slane %v2324_v34, 2 }
  0xea   :  { %1240 = vrot.lane.b32.xlu0 %v2050_v13, %s1915_s15  ;;  %v976_v31 = vsel %vm103_vm0, %v972_v57, %v973_v30  ;;  %v997_v62 = vsel %vm126_vm2, %v993_v40, %v994_v10  ;;  %v716_v56 = vrot.slane %v2317_v7, 6 }
  0xeb   :  { %v984_v25 = vadd.f32 %v983_v5, %v976_v31  ;;  %v1005_v20 = vadd.f32 %v1004_v2, %v997_v62  ;;  %v727_v26 = vadd.f32 %v724_v58, %v706_v17  ;;  %v698_v31 = vsel %vm110_vm1, %v694_v28, %v695_v18 }
  0xec   :  { %v701_v5 = vadd.f32 %v698_v31, %v691_v38  ;;  %v712_v27 = vsel %vm126_vm2, %v710_v9, %v711_v22  ;;  %v719_v16 = vsel %vm133_vm3, %v715_v33, %v716_v56  ;;  %v693_v28 = vsel %vm103_vm0, %v690_v54, %v688_v23 }
  0xed   :  { %1819 = vset.pattern.permute.xlu1 %v3357_v12  ;;  %v987_v36 = vmul.f32 0.25, %v984_v25  ;;  %v1008_v47 = vmul.f32 0.05, %v1005_v20  ;;  %v730_v48 = vmul.f32 4.0, %v727_v26  ;;  %v697_v25 = vsel %vm110_vm1, %v695_v18, %v696_v53 }
  0xee   :  { %1495 = vrot.lane.b32.xlu0 %v2353_v8, %s1912_s13  ;;  %478 = vperm.xlu1 %1819, %v2289_v49   ;;  %v686_v9 = vmul.f32 0.4, %v2317_v7  ;;  %v704_v33 = vmul.f32 0.25, %v701_v5  ;;  %v722_v62 = vadd.f32 %v719_v16, %v712_v27  ;;  %v702_v2 = vadd.f32 %v697_v25, %v693_v28 }
  0xef   :  { %v990_v43 = vadd.f32 %v987_v36, %v969_v50  ;;  %v2455_v17 = vsel %vm39_vm5, %v730_v48, 0.0  ;;  %v714_v53 = vsel %vm126_vm2, %v711_v22, %v709_v6  ;;  %v718_v54 = vsel %vm133_vm3, %v716_v56, %v717_v44 }
  0xf0   :  { %3358 = vst [vmem:[#allocation9_spill] sm:$0xff] %v2455_v17  ;;  %v687_v7 = vmul.f32 0.4, %v2324_v34  ;;  %v707_v18 = vadd.f32 %v704_v33, %v686_v9  ;;  %v725_v58 = vmul.f32 0.05, %v722_v62  ;;  %v705_v50 = vmul.f32 0.25, %v702_v2 }
  0xf1   :  { %v1011_v11 = vadd.f32 %v1008_v47, %v990_v43  ;;  %v723_v36 = vadd.f32 %v718_v54, %v714_v53  ;;  %v974_v6 = vrot.slane %v2341_v4, 1  ;;  %v979_v20 = vrot.slane %v2343_v45, 7 }
  0xf2   :  { %1499 = vrot.lane.b32.xlu0 %v2370_v32, %s1912_s13  ;;  %1221 = vrot.lane.b32.xlu1 %v2064_v15, %s1913_s14  ;;  %v728_v34 = vadd.f32 %v725_v58, %v707_v18  ;;  %v708_v44 = vadd.f32 %v705_v50, %v687_v7  ;;  %v995_v26 = vrot.slane %v2341_v4, 2  ;;  %v1000_v43 = vrot.slane %v2343_v45, 6 }
  0xf3   :  { %v1014_v23 = vmul.f32 4.0, %v1011_v11  ;;  %v726_v38 = vmul.f32 0.05, %v723_v36  ;;  %v975_v22 = vsel %vm103_vm0, %v973_v30, %v974_v6  ;;  %v982_v56 = vsel %vm110_vm1, %v978_v55, %v979_v20 }
  0xf4   :  { %v731_v47 = vmul.f32 4.0, %v728_v34  ;;  %v985_v5 = vadd.f32 %v982_v56, %v975_v22  ;;  %v996_v30 = vsel %vm126_vm2, %v994_v10, %v995_v26  ;;  %v1003_v55 = vsel %vm133_vm3, %v999_v0, %v1000_v43  ;;  %v1214_v22 = vpop.permute.xlu1 %1213  ;;  %v1212_v56 = vpop.permute.xlu0 %1211 }
  0xf5   :  { %v2471_v21 = vsel %vm39_vm5, %v1014_v23, 0.0  ;;  %v729_v31 = vadd.f32 %v726_v38, %v708_v44  ;;  %v977_v27 = vsel %vm103_vm0, %v974_v6, %v972_v57  ;;  %v981_v16 = vsel %vm110_vm1, %v979_v20, %v980_v29 }
  0xf6   :  { %1503 = vrot.lane.b32.xlu0 %v2401_v19, %s1913_s14  ;;  %1234 = vrot.lane.b32.xlu1 %v2050_v13, %s1914_s0  ;;  %3359 = vst [vmem:[#allocation10_spill] sm:$0xff] %v2471_v21  ;;  %v2510_v10 = vsel %vm40_vm4, %v731_v47, 0.0  ;;  %v970_v0 = vmul.f32 0.4, %v2343_v45  ;;  %v988_v11 = vmul.f32 0.25, %v985_v5  ;;  %v1006_v28 = vadd.f32 %v1003_v55, %v996_v30 }
  0xf7   :  { %3360 = vst [vmem:[#allocation11_spill] sm:$0xff] %v2510_v10  ;;  %v732_v48 = vmul.f32 4.0, %v729_v31  ;;  %v986_v25 = vadd.f32 %v981_v16, %v977_v27  ;;  %v998_v57 = vsel %vm126_vm2, %v995_v26, %v993_v40  ;;  %v1002_v29 = vsel %vm133_vm3, %v1000_v43, %v1001_v3 }
  0xf8   :  { %v739_v9 = vrot.slane %v2510_v10, %v2252_v39  ;;  %v971_v33 = vmul.f32 0.4, %v2341_v4  ;;  %v991_v24 = vadd.f32 %v988_v11, %v970_v0  ;;  %v1009_v62 = vmul.f32 0.05, %v1006_v28  ;;  %v1218_v26 = vpop.permute.xlu1 %1217  ;;  %v1216_v43 = vpop.permute.xlu0 %1215 }
  0xf9   :  { %v735_v45 = vsel %vm41_vm6, %v732_v48, 0.0  ;;  %v989_v2 = vmul.f32 0.25, %v986_v25  ;;  %v1007_v40 = vadd.f32 %v1002_v29, %v998_v57  ;;  %v743_v23 = vrot.slane %v2455_v17, %v2255_v46 }
  0xfa   :  { %1516 = vrot.lane.b32.xlu0 %v2353_v8, %s1914_s0  ;;  %1238 = vrot.lane.b32.xlu1 %v2056_v14, %s1915_s15  ;;  %v746_v3 = vsel %vm165_vm7, %v739_v9, %v735_v45  ;;  %v1012_v53 = vadd.f32 %v1009_v62, %v991_v24  ;;  %v1027_v34 = vrot.slane %v2471_v21, %v2255_v46 }
  0xfb   :  { %v992_v54 = vadd.f32 %v989_v2, %v971_v33  ;;  %v1010_v7 = vmul.f32 0.05, %v1007_v40  ;;  %v2535_v18 = vsel %vm174_vm8, %v743_v23, %v746_v3  ;;  %v1223_v33 = vadd.f32 %v1218_v26, %v1212_v56 }
  0xfc   :  { %3361 = vst [vmem:[#allocation12_spill] sm:$0xff] %v2535_v18  ;;  %v1015_v4 = vmul.f32 4.0, %v1012_v53  ;;  %v1208_v23 = vmul.f32 0.4, %v2056_v14 }
  0xfd   :  { %v1013_v58 = vadd.f32 %v1010_v7, %v992_v54  ;;  %v1226_v3 = vmul.f32 0.25, %v1223_v33  ;;  %v1209_v54 = vmul.f32 0.4, %v2050_v13 }
  0xfe   :  { %1520 = vrot.lane.b32.xlu0 %v2370_v32, %s1914_s0  ;;  %1242 = vrot.lane.b32.xlu1 %v2064_v15, %s1915_s15  ;;  %v2542_v50 = vsel %vm40_vm4, %v1015_v4, 0.0 }
  0xff   :  { %3362 = vst [vmem:[#allocation13_spill] sm:$0xff] %v2542_v50  ;;  %v1016_v36 = vmul.f32 4.0, %v1013_v58  ;;  %v1023_v6 = vrot.slane %v2542_v50, %v2252_v39 }
 0x101   :  { %v1019_v20 = vsel %vm41_vm6, %v1016_v36, 0.0 }
 0x102   :  { %1524 = vrot.lane.b32.xlu0 %v2401_v19, %s1915_s15  ;;  %1497 = vrot.lane.b32.xlu1 %v2401_v19, %s1912_s13  ;;  %v1030_v44 = vsel %vm165_vm7, %v1023_v6, %v1019_v20  ;;  %v1229_v20 = vadd.f32 %v1226_v3, %v1208_v23 }
 0x103   :  { %v2557_v38 = vsel %vm174_vm8, %v1027_v34, %v1030_v44  ;;  %v1210_v34 = vmul.f32 0.4, %v2064_v15 }
 0x104   :  { %3363 = vst [vmem:[#allocation14_spill] sm:$0xff] %v2557_v38 }
 0x106   :  { %752 = vperm.xlu0 %1820, %v2455_v17   ;;  %1501 = vrot.lane.b32.xlu1 %v2353_v8, %s1913_s14 }
 0x10a   :  { %1036 = vperm.xlu0 %1820, %v2471_v21   ;;  %1505 = vrot.lane.b32.xlu1 %v2370_v32, %s1913_s14 }
 0x10e   :  { %1518 = vrot.lane.b32.xlu1 %v2401_v19, %s1914_s0 }
 0x112   :  { %1522 = vrot.lane.b32.xlu1 %v2353_v8, %s1915_s15 }
 0x116   :  { %1526 = vrot.lane.b32.xlu1 %v2370_v32, %s1915_s15 }
 0x11a   :  { %757 = vperm.xlu1 %1819, %v2510_v10  }
 0x11e   :  { %762 = vperm.xlu1 %1819, %v2535_v18  }
 0x122   :  { %1821 = vset.pattern.permute.xlu1 %v3356_v61 }
 0x123   :  { %770 = vperm.xlu1 %1821, %v2510_v10  }
 0x125   :  { %v2564_v47 = vpop.permute.xlu1 %185 }
 0x126   :  { %v2566_v31 = vpop.permute.xlu0 %180 }
 0x127   :  { %774 = vperm.xlu1 %1821, %v2535_v18  }
 0x12a   :  { %v2568_v5 = vpop.permute.xlu1 %198 }
 0x12b   :  { %1822 = vset.pattern.permute.xlu1 %v3357_v12  ;;  %v2570_v30 = vpop.permute.xlu0 %194 }
 0x12c   :  { %1041 = vperm.xlu1 %1822, %v2542_v50  }
 0x130   :  { %1046 = vperm.xlu1 %1822, %v2557_v38  }
 0x134   :  { %1823 = vset.pattern.permute.xlu1 %v3356_v61 }
 0x135   :  { %1054 = vperm.xlu1 %1823, %v2542_v50  }
 0x139   :  { %1058 = vperm.xlu1 %1823, %v2557_v38  }
 0x13d   :  { %1824 = vset.pattern.permute.xlu1 %v3357_v12 }
 0x151   :  { %v2572_v55 = vpop.permute.xlu1 %468  ;;  %v2574_v27 = vpop.permute.xlu0 %482 }
 0x155   :  { %v2576_v16 = vpop.permute.xlu1 %473  ;;  %v2578_v48 = vpop.permute.xlu0 %490 }
 0x156   :  { %3364 = vst [vmem:[#allocation15_spill] sm:$0xff] %v2578_v48 }
 0x159   :  { %v1220_v11 = vpop.permute.xlu0 %1219 }
 0x15a   :  { %v2580_v0 = vpop.permute.xlu1 %486  ;;  %v1224_v24 = vadd.f32 %v1220_v11, %v1214_v22 }
 0x15c   :  { %v1227_v7 = vmul.f32 0.25, %v1224_v24 }
 0x15d   :  { %v1233_v57 = vpop.permute.xlu0 %1232 }
 0x15e   :  { %v1230_v56 = vadd.f32 %v1227_v7, %v1209_v54 }
 0x15f   :  { %v2582_v28 = vpop.permute.xlu1 %190 }
 0x161   :  { %v1237_v9 = vpop.permute.xlu0 %1236 }
 0x164   :  { %v2584_v25 = vpop.permute.xlu1 %202 }
 0x165   :  { %v1241_v62 = vpop.permute.xlu0 %1240 }
 0x169   :  { %v2586_v29 = vpop.permute.xlu1 %478  ;;  %v2590_v36 = vpop.permute.xlu0 %1495 }
 0x16a   :  { %3365 = vst [vmem:[#allocation16_spill] sm:$0xff] %v2586_v29 }
 0x16d   :  { %v1222_v45 = vpop.permute.xlu1 %1221 }
 0x16e   :  { %v1225_v53 = vadd.f32 %v1222_v45, %v1216_v43  ;;  %v2593_v45 = vpop.permute.xlu0 %1499 }
 0x170   :  { %v1228_v44 = vmul.f32 0.25, %v1225_v53 }
 0x171   :  { %v1235_v2 = vpop.permute.xlu1 %1234 }
 0x172   :  { %v1245_v40 = vadd.f32 %v1241_v62, %v1235_v2  ;;  %v1231_v33 = vadd.f32 %v1228_v44, %v1210_v34 }
 0x174   :  { %v1248_v6 = vmul.f32 0.05, %v1245_v40 }
 0x175   :  { %v1239_v4 = vpop.permute.xlu1 %1238 }
 0x176   :  { %v1244_v58 = vadd.f32 %v1239_v4, %v1233_v57  ;;  %v1251_v14 = vadd.f32 %v1248_v6, %v1230_v56 }
 0x178   :  { %v1247_v22 = vmul.f32 0.05, %v1244_v58  ;;  %v1257_v3 = vrot.slane %v1251_v14, 1  ;;  %v1278_v15 = vrot.slane %v1251_v14, 2  ;;  %v1263_v53 = vrot.slane %v1251_v14, 7 }
 0x179   :  { %v1243_v26 = vpop.permute.xlu1 %1242  ;;  %v1284_v58 = vrot.slane %v1251_v14, 6 }
 0x17a   :  { %v1250_v11 = vadd.f32 %v1247_v22, %v1229_v20  ;;  %v1246_v62 = vadd.f32 %v1243_v26, %v1237_v9  ;;  %v1504_v26 = vpop.permute.xlu0 %1503 }
 0x17c   :  { %v1249_v43 = vmul.f32 0.05, %v1246_v62  ;;  %v1256_v57 = vrot.slane %v1250_v11, 1  ;;  %v1262_v2 = vrot.slane %v1250_v11, 7  ;;  %v1277_v40 = vrot.slane %v1250_v11, 2 }
 0x17d   :  { %v2595_v13 = vpop.permute.xlu1 %1497  ;;  %v1283_v23 = vrot.slane %v1250_v11, 6  ;;  %v1253_v21 = vmul.f32 0.4, %v1250_v11 }
 0x17e   :  { %v1252_v24 = vadd.f32 %v1249_v43, %v1231_v33  ;;  %v1260_v6 = vsel %vm103_vm0, %v1256_v57, %v1257_v3  ;;  %v1281_v44 = vsel %vm126_vm2, %v1277_v40, %v1278_v15  ;;  %v1266_v22 = vsel %vm110_vm1, %v1262_v2, %v1263_v53  ;;  %v1517_v11 = vpop.permute.xlu0 %1516 }
 0x17f   :  { %v1287_v56 = vsel %vm133_vm3, %v1283_v23, %v1284_v58 }
 0x180   :  { %v1264_v4 = vrot.slane %v1252_v24, 7  ;;  %v1285_v54 = vrot.slane %v1252_v24, 6  ;;  %v1258_v7 = vrot.slane %v1252_v24, 1  ;;  %v1279_v20 = vrot.slane %v1252_v24, 2 }
 0x181   :  { %v1502_v9 = vpop.permute.xlu1 %1501 }
 0x182   :  { %v1267_v34 = vsel %vm110_vm1, %v1264_v4, %v1262_v2  ;;  %v1288_v33 = vsel %vm133_vm3, %v1285_v54, %v1283_v23  ;;  %v1259_v43 = vsel %vm103_vm0, %v1257_v3, %v1258_v7  ;;  %v1280_v38 = vsel %vm126_vm2, %v1278_v15, %v1279_v20 }
 0x183   :  { %v1268_v62 = vadd.f32 %v1267_v34, %v1260_v6  ;;  %v1289_v50 = vadd.f32 %v1288_v33, %v1281_v44  ;;  %v1269_v18 = vadd.f32 %v1266_v22, %v1259_v43  ;;  %v1290_v10 = vadd.f32 %v1287_v56, %v1280_v38 }
 0x184   :  { %v1261_v17 = vsel %vm103_vm0, %v1258_v7, %v1256_v57  ;;  %v1265_v6 = vsel %vm110_vm1, %v1263_v53, %v1264_v4  ;;  %v1254_v34 = vmul.f32 0.4, %v1251_v14  ;;  %v1282_v23 = vsel %vm126_vm2, %v1279_v20, %v1277_v40  ;;  %v3366_v53 = vld [vmem:[#allocation8_spill] sm:$0xff]  ;;  %v1521_v40 = vpop.permute.xlu0 %1520 }
 0x185   :  { %v1506_v12 = vpop.permute.xlu1 %1505  ;;  %v1271_v2 = vmul.f32 0.25, %v1268_v62  ;;  %v1292_v48 = vmul.f32 0.05, %v1289_v50  ;;  %v1272_v29 = vmul.f32 0.25, %v1269_v18  ;;  %v1270_v15 = vadd.f32 %v1265_v6, %v1261_v17 }
 0x186   :  { %v1293_v44 = vmul.f32 0.05, %v1290_v10  ;;  %v1255_v22 = vmul.f32 0.4, %v1252_v24  ;;  %v1286_v38 = vsel %vm133_vm3, %v1284_v58, %v1285_v54  ;;  %vm205_vm9 = vcmp.ge.s32.totalorder %v3366_v53, 16 }
 0x187   :  { %v1274_v3 = vadd.f32 %v1271_v2, %v1253_v21  ;;  %v1275_v57 = vadd.f32 %v1272_v29, %v1254_v34  ;;  %v1273_v7 = vmul.f32 0.25, %v1270_v15  ;;  %v1291_v33 = vadd.f32 %v1286_v38, %v1282_v23 }
 0x188   :  { %vm206_vm10 = vcmp.lt.s32.totalorder %v3366_v53, 18  ;;  %vm211_vm12 = vcmp.ge.s32.totalorder %v3366_v53, 126  ;;  %v1508_v6 = vadd.f32 %v1504_v26, %v2595_v13  ;;  %v1507_v34 = vadd.f32 %v1502_v9, %v2590_v36  ;;  %v1525_v9 = vpop.permute.xlu0 %1524 }
 0x189   :  { %v1519_v56 = vpop.permute.xlu1 %1518  ;;  %v1295_v62 = vadd.f32 %v1292_v48, %v1274_v3  ;;  %v1296_v21 = vadd.f32 %v1293_v44, %v1275_v57  ;;  %v1276_v50 = vadd.f32 %v1273_v7, %v1255_v22  ;;  %v1294_v18 = vmul.f32 0.05, %v1291_v33  ;;  %vm2623_vm11 = vmand %vm205_vm9, %vm206_vm10 }
 0x18a   :  { %v208_v20 = vsel %vm2623_vm11, %v2566_v31, %v2160_v1  ;;  %v1509_v3 = vadd.f32 %v1506_v12, %v2593_v45  ;;  %v209_v36 = vsel %vm2623_vm11, %v2564_v47, %v2153_v60  ;;  %v1493_v13 = vmul.f32 0.4, %v2401_v19 }
 0x18b   :  { %v1298_v14 = vmul.f32 4.0, %v1295_v62  ;;  %v1299_v48 = vmul.f32 4.0, %v1296_v21  ;;  %v1297_v29 = vadd.f32 %v1294_v18, %v1276_v50  ;;  %v2649_v2 = vsel %vm211_vm12, %v2570_v30, %v208_v20 }
 0x18c   :  { %v1492_v12 = vmul.f32 0.4, %v2353_v8  ;;  %v2674_v45 = vsel %vm211_vm12, %v2568_v5, %v209_v36  ;;  %v1511_v26 = vmul.f32 0.25, %v1508_v6  ;;  %v1510_v15 = vmul.f32 0.25, %v1507_v34 }
 0x18d   :  { %v1523_v10 = vpop.permute.xlu1 %1522  ;;  %v2629_v24 = vsel %vm39_vm5, %v1298_v14, 0.0  ;;  %v2637_v54 = vsel %vm40_vm4, %v1299_v48, 0.0  ;;  %v1300_v58 = vmul.f32 4.0, %v1297_v29  ;;  %v1494_v44 = vmul.f32 0.4, %v2370_v32 }
 0x18e   :  { %1320 = vperm.xlu0 %1820, %v2629_v24   ;;  %v1311_v4 = vrot.slane %v2629_v24, %v2255_v46  ;;  %1325 = vperm.xlu1 %1824, %v2637_v54   ;;  %v1307_v43 = vrot.slane %v2637_v54, %v2252_v39  ;;  %v1512_v22 = vmul.f32 0.25, %v1509_v3  ;;  %v1529_v38 = vadd.f32 %v1525_v9, %v1519_v56  ;;  %v3369_v9 = vld [vmem:[#allocation16_spill] sm:$0xff] }
 0x18f   :  { %v1303_v23 = vsel %vm41_vm6, %v1300_v58, 0.0  ;;  %v1528_v62 = vadd.f32 %v1523_v10, %v1517_v11  ;;  %v1514_v8 = vadd.f32 %v1511_v26, %v1493_v13  ;;  %v1513_v19 = vadd.f32 %v1510_v15, %v1492_v12 }
 0x190   :  { %v1314_v1 = vsel %vm165_vm7, %v1307_v43, %v1303_v23  ;;  %v1515_v47 = vadd.f32 %v1512_v22, %v1494_v44  ;;  %v1532_v5 = vmul.f32 0.05, %v1529_v38  ;;  %v494_v33 = vsel %vm2623_vm11, %v2576_v16, %v2265_v52 }
 0x191   :  { %v1527_v31 = vpop.permute.xlu1 %1526  ;;  %v2662_v30 = vsel %vm174_vm8, %v1311_v4, %v1314_v1  ;;  %v1531_v57 = vmul.f32 0.05, %v1528_v62  ;;  %v493_v14 = vsel %vm2623_vm11, %v2572_v55, %v2261_v63  ;;  %v2702_v21 = vsel %vm211_vm12, %v2580_v0, %v494_v33 }
 0x192   :  { %218 = vrot.lane.b32.xlu0 %v2649_v2, %s1912_s13  ;;  %1330 = vperm.xlu1 %1824, %v2662_v30   ;;  %v1530_v60 = vadd.f32 %v1527_v31, %v1521_v40  ;;  %v2685_v32 = vadd.f32 %v1532_v5, %v1514_v8  ;;  %v2713_v63 = vsel %vm211_vm12, %v2574_v27, %v493_v14  ;;  %vm45_vm13 = vcmp.lt.s32.totalorder %v3366_v53, 16 }
 0x193   :  { %v1534_v11 = vadd.f32 %v1531_v57, %v1513_v19  ;;  %v210_v34 = vsel %vm2623_vm11, %v2582_v28, %v2329_v41  ;;  %v495_v26 = vsel %vm2623_vm11, %v3369_v9, %v2289_v49 }
 0x194   :  { %v1533_v7 = vmul.f32 0.05, %v1530_v60  ;;  %v1541_v18 = vrot.slane %v2685_v32, 1  ;;  %v1562_v0 = vrot.slane %v2685_v32, 2  ;;  %v1547_v3 = vrot.slane %v2685_v32, 7  ;;  %v3370_v60 = vld [vmem:[#allocation15_spill] sm:$0xff] }
 0x195   :  { %v1540_v50 = vrot.slane %v1534_v11, 1  ;;  %v1546_v52 = vrot.slane %v1534_v11, 7  ;;  %v1561_v55 = vrot.slane %v1534_v11, 2  ;;  %v1567_v29 = vrot.slane %v1534_v11, 6 }
 0x196   :  { %226 = vrot.lane.b32.xlu0 %v2674_v45, %s1913_s14  ;;  %1825 = vset.pattern.permute.xlu1 %v3356_v61  ;;  %v2687_v56 = vadd.f32 %v1533_v7, %v1515_v47  ;;  %v1537_v20 = vmul.f32 0.4, %v1534_v11  ;;  %v2746_v1 = vsel %vm211_vm12, %v2584_v25, %v210_v34  ;;  %v1568_v12 = vrot.slane %v2685_v32, 6 }
 0x197   :  { %1338 = vperm.xlu1 %1825, %v2637_v54   ;;  %v1544_v10 = vsel %vm103_vm0, %v1540_v50, %v1541_v18  ;;  %v1565_v4 = vsel %vm126_vm2, %v1561_v55, %v1562_v0  ;;  %v1550_v28 = vsel %vm110_vm1, %v1546_v52, %v1547_v3  ;;  %v2777_v49 = vsel %vm211_vm12, %v3370_v60, %v495_v26 }
 0x198   :  { %v1548_v16 = vrot.slane %v2687_v56, 7  ;;  %v1569_v40 = vrot.slane %v2687_v56, 6  ;;  %v1542_v23 = vrot.slane %v2687_v56, 1  ;;  %v1563_v13 = vrot.slane %v2687_v56, 2 }
 0x199   :  { %v1571_v22 = vsel %vm133_vm3, %v1567_v29, %v1568_v12  ;;  %v1538_v19 = vmul.f32 0.4, %v2685_v32  ;;  %v1539_v32 = vmul.f32 0.4, %v2687_v56 }
 0x19a   :  { %239 = vrot.lane.b32.xlu0 %v2649_v2, %s1914_s0  ;;  %v1551_v48 = vsel %vm110_vm1, %v1548_v16, %v1546_v52  ;;  %v1572_v58 = vsel %vm133_vm3, %v1569_v40, %v1567_v29  ;;  %v1543_v41 = vsel %vm103_vm0, %v1541_v18, %v1542_v23  ;;  %v1564_v44 = vsel %vm126_vm2, %v1562_v0, %v1563_v13 }
 0x19b   :  { %220 = vrot.lane.b32.xlu1 %v2674_v45, %s1912_s13  ;;  %v1552_v27 = vadd.f32 %v1551_v48, %v1544_v10  ;;  %v1573_v6 = vadd.f32 %v1572_v58, %v1565_v4  ;;  %v1553_v15 = vadd.f32 %v1550_v28, %v1543_v41  ;;  %v1545_v38 = vsel %vm103_vm0, %v1542_v23, %v1540_v50  ;;  %v3372_v48 = vld [vmem:[#allocation10_spill] sm:$0xff] }
 0x19c   :  { %v1549_v62 = vsel %vm110_vm1, %v1547_v3, %v1548_v16  ;;  %v1574_v5 = vadd.f32 %v1571_v22, %v1564_v44  ;;  %v1566_v7 = vsel %vm126_vm2, %v1563_v13, %v1561_v55  ;;  %v1570_v11 = vsel %vm133_vm3, %v1568_v12, %v1569_v40  ;;  %v3371_v16 = vld [vmem:[#allocation9_spill] sm:$0xff] }
 0x19d   :  { %v1555_v43 = vmul.f32 0.25, %v1552_v27  ;;  %v1576_v36 = vmul.f32 0.05, %v1573_v6  ;;  %v1556_v47 = vmul.f32 0.25, %v1553_v15  ;;  %v1554_v57 = vadd.f32 %v1549_v62, %v1545_v38  ;;  %v3374_v6 = vld [vmem:[#allocation11_spill] sm:$0xff] }
 0x19e   :  { %247 = vrot.lane.b32.xlu0 %v2674_v45, %s1915_s15  ;;  %v1577_v50 = vmul.f32 0.05, %v1574_v5  ;;  %v1575_v52 = vadd.f32 %v1570_v11, %v1566_v7 }
 0x19f   :  { %224 = vrot.lane.b32.xlu1 %v2649_v2, %s1913_s14  ;;  %v1558_v31 = vadd.f32 %v1555_v43, %v1537_v20  ;;  %v1559_v14 = vadd.f32 %v1556_v47, %v1538_v19  ;;  %v1557_v18 = vmul.f32 0.25, %v1554_v57  ;;  %v3373_v20 = vmov 15   ;;  %v758_v43 = vpop.permute.xlu1 %757 }
 0x1a0   :  { %v1578_v42 = vmul.f32 0.05, %v1575_v52  ;;  %v778_v34 = vsel %vm2623_vm11, %v758_v43, %v3374_v6  ;;  %v216_v57 = vmul.f32 0.4, %v2674_v45 }
 0x1a1   :  { %v1579_v25 = vadd.f32 %v1576_v36, %v1558_v31  ;;  %v1580_v55 = vadd.f32 %v1577_v50, %v1559_v14  ;;  %v1560_v0 = vadd.f32 %v1557_v18, %v1539_v32  ;;  %v2849_v31 = vpop.permute.xlu0 %752 }
 0x1a2   :  { %504 = vrot.lane.b32.xlu0 %v2702_v21, %s1912_s13 }
 0x1a3   :  { %241 = vrot.lane.b32.xlu1 %v2674_v45, %s1914_s0  ;;  %v1582_v8 = vmul.f32 4.0, %v1579_v25  ;;  %v1583_v56 = vmul.f32 4.0, %v1580_v55  ;;  %v1581_v10 = vadd.f32 %v1578_v42, %v1560_v0  ;;  %v2829_v59 = vpop.permute.xlu1 %762  ;;  %v215_v42 = vmul.f32 0.4, %v2649_v2 }
 0x1a5   :  { %v2792_v33 = vsel %vm39_vm5, %v1582_v8, 0.0  ;;  %v2809_v29 = vsel %vm40_vm4, %v1583_v56, 0.0  ;;  %v1584_v40 = vmul.f32 4.0, %v1581_v10  ;;  %v2853_v41 = vpop.permute.xlu0 %1036 }
 0x1a6   :  { %508 = vrot.lane.b32.xlu0 %v2713_v63, %s1913_s14  ;;  %v1591_v27 = vrot.slane %v2809_v29, %v2252_v39  ;;  %v1595_v58 = vrot.slane %v2792_v33, %v2255_v46 }
 0x1a7   :  { %245 = vrot.lane.b32.xlu1 %v2649_v2, %s1915_s15  ;;  %v1587_v4 = vsel %vm41_vm6, %v1584_v40, 0.0  ;;  %v771_v46 = vpop.permute.xlu1 %770 }
 0x1a8   :  { %v1598_v37 = vsel %vm165_vm7, %v1591_v27, %v1587_v4  ;;  %v2839_v51 = vsel %vm211_vm12, %v771_v46, %v778_v34 }
 0x1a9   :  { %v2826_v39 = vsel %vm174_vm8, %v1595_v58, %v1598_v37 }
 0x1aa   :  { %525 = vrot.lane.b32.xlu0 %v2702_v21, %s1914_s0 }
 0x1ab   :  { %502 = vrot.lane.b32.xlu1 %v2713_v63, %s1912_s13  ;;  %v2843_v23 = vpop.permute.xlu1 %774 }
 0x1ae   :  { %529 = vrot.lane.b32.xlu0 %v2713_v63, %s1915_s15 }
 0x1af   :  { %510 = vrot.lane.b32.xlu1 %v2702_v21, %s1913_s14  ;;  %v2845_v3 = vpop.permute.xlu1 %1041 }
 0x1b2   :  { %222 = vrot.lane.b32.xlu0 %v2746_v1, %s1912_s13 }
 0x1b3   :  { %523 = vrot.lane.b32.xlu1 %v2713_v63, %s1914_s0 }
 0x1b6   :  { %243 = vrot.lane.b32.xlu0 %v2746_v1, %s1914_s0 }
 0x1b7   :  { %531 = vrot.lane.b32.xlu1 %v2702_v21, %s1915_s15 }
 0x1ba   :  { %512 = vrot.lane.b32.xlu0 %v2777_v49, %s1913_s14 }
 0x1bb   :  { %228 = vrot.lane.b32.xlu1 %v2746_v1, %s1913_s14 }
 0x1be   :  { %1604 = vperm.xlu0 %1820, %v2792_v33  }
 0x1bf   :  { %249 = vrot.lane.b32.xlu1 %v2746_v1, %s1915_s15 }
 0x1c2   :  { %1826 = vset.pattern.permute.xlu0 %v3356_v61 }
 0x1c3   :  { %766 = vperm.xlu0 %1826, %v3371_v16   ;;  %506 = vrot.lane.b32.xlu1 %v2777_v49, %s1912_s13 }
 0x1c7   :  { %533 = vrot.lane.b32.xlu0 %v2777_v49, %s1915_s15  ;;  %527 = vrot.lane.b32.xlu1 %v2777_v49, %s1914_s0 }
 0x1cb   :  { %1050 = vperm.xlu0 %1826, %v3372_v48   ;;  %1342 = vperm.xlu1 %1825, %v2662_v30  }
 0x1cf   :  { %1334 = vperm.xlu0 %1826, %v2629_v24   ;;  %1827 = vset.pattern.permute.xlu1 %v3373_v20 }
 0x1d0   :  { %1609 = vperm.xlu1 %1827, %v2809_v29  }
 0x1d3   :  { %1618 = vperm.xlu0 %1826, %v2792_v33  }
 0x1d4   :  { %1614 = vperm.xlu1 %1827, %v2826_v39  }
 0x1d8   :  { %1828 = vset.pattern.permute.xlu1 %v3356_v61  ;;  %v2847_v61 = vpop.permute.xlu1 %1046 }
 0x1d9   :  { %1622 = vperm.xlu1 %1828, %v2809_v29  }
 0x1dc   :  { %v2851_v36 = vpop.permute.xlu1 %1054 }
 0x1dd   :  { %1626 = vperm.xlu1 %1828, %v2826_v39  }
 0x1e0   :  { %v2855_v28 = vpop.permute.xlu1 %1058 }
 0x1e1   :  { %788 = vrot.lane.b32.xlu1 %v2839_v51, %s1912_s13 }
 0x209   :  { %v2857_v13 = vpop.permute.xlu0 %1320  ;;  %v2859_v12 = vpop.permute.xlu1 %1325 }
 0x20d   :  { %v219_v25 = vpop.permute.xlu0 %218  ;;  %v2861_v9 = vpop.permute.xlu1 %1330 }
 0x211   :  { %v227_v26 = vpop.permute.xlu0 %226 }
 0x212   :  { %v2863_v15 = vpop.permute.xlu1 %1338 }
 0x215   :  { %v240_v44 = vpop.permute.xlu0 %239 }
 0x216   :  { %v221_v22 = vpop.permute.xlu1 %220 }
 0x217   :  { %v231_v38 = vadd.f32 %v227_v26, %v221_v22 }
 0x219   :  { %v248_v62 = vpop.permute.xlu0 %247  ;;  %v234_v47 = vmul.f32 0.25, %v231_v38 }
 0x21a   :  { %v225_v60 = vpop.permute.xlu1 %224 }
 0x21b   :  { %v230_v8 = vadd.f32 %v225_v60, %v219_v25  ;;  %v237_v32 = vadd.f32 %v234_v47, %v216_v57 }
 0x21d   :  { %v505_v19 = vpop.permute.xlu0 %504  ;;  %v233_v50 = vmul.f32 0.25, %v230_v8 }
 0x21e   :  { %v242_v5 = vpop.permute.xlu1 %241 }
 0x21f   :  { %v252_v7 = vadd.f32 %v248_v62, %v242_v5  ;;  %v236_v56 = vadd.f32 %v233_v50, %v215_v42  ;;  %v499_v5 = vmul.f32 0.4, %v2713_v63 }
 0x221   :  { %v509_v11 = vpop.permute.xlu0 %508  ;;  %v255_v14 = vmul.f32 0.05, %v252_v7 }
 0x222   :  { %v246_v18 = vpop.permute.xlu1 %245 }
 0x223   :  { %v2866_v52 = vadd.f32 %v255_v14, %v237_v32  ;;  %v251_v55 = vadd.f32 %v246_v18, %v240_v44 }
 0x225   :  { %v526_v0 = vpop.permute.xlu0 %525  ;;  %v254_v10 = vmul.f32 0.05, %v251_v55  ;;  %v264_v45 = vrot.slane %v2866_v52, 1  ;;  %v270_v58 = vrot.slane %v2866_v52, 7  ;;  %v285_v37 = vrot.slane %v2866_v52, 2 }
 0x226   :  { %v503_v40 = vpop.permute.xlu1 %502  ;;  %v291_v34 = vrot.slane %v2866_v52, 6 }
 0x227   :  { %v2869_v4 = vadd.f32 %v254_v10, %v236_v56  ;;  %v514_v20 = vadd.f32 %v509_v11, %v503_v40  ;;  %v500_v56 = vmul.f32 0.4, %v2702_v21 }
 0x229   :  { %v530_v27 = vpop.permute.xlu0 %529  ;;  %v263_v43 = vrot.slane %v2869_v4, 1  ;;  %v269_v46 = vrot.slane %v2869_v4, 7  ;;  %v284_v6 = vrot.slane %v2869_v4, 2  ;;  %v290_v25 = vrot.slane %v2869_v4, 6 }
 0x22a   :  { %v511_v2 = vpop.permute.xlu1 %510  ;;  %v517_v62 = vmul.f32 0.25, %v514_v20 }
 0x22b   :  { %v2883_v44 = vsel %vm103_vm0, %v263_v43, %v264_v45  ;;  %v2889_v22 = vsel %vm110_vm1, %v269_v46, %v270_v58  ;;  %v2895_v38 = vsel %vm126_vm2, %v284_v6, %v285_v37  ;;  %v2901_v60 = vsel %vm133_vm3, %v290_v25, %v291_v34 }
 0x22c   :  { %v515_v8 = vadd.f32 %v511_v2, %v505_v19  ;;  %v520_v11 = vadd.f32 %v517_v62, %v499_v5 }
 0x22d   :  { %v223_v26 = vpop.permute.xlu0 %222 }
 0x22e   :  { %v524_v47 = vpop.permute.xlu1 %523  ;;  %v518_v14 = vmul.f32 0.25, %v515_v8 }
 0x22f   :  { %v535_v57 = vadd.f32 %v530_v27, %v524_v47  ;;  %v217_v47 = vmul.f32 0.4, %v2746_v1 }
 0x230   :  { %v521_v10 = vadd.f32 %v518_v14, %v500_v56  ;;  %v3375_v56 = vld [vmem:[#allocation12_spill] sm:$0xff] }
 0x231   :  { %v244_v7 = vpop.permute.xlu0 %243  ;;  %v538_v32 = vmul.f32 0.05, %v535_v57  ;;  %v777_v57 = vsel %vm2623_vm11, %v2849_v31, %v3371_v16 }
 0x232   :  { %v532_v50 = vpop.permute.xlu1 %531 }
 0x233   :  { %v2904_v18 = vadd.f32 %v538_v32, %v520_v11  ;;  %v536_v55 = vadd.f32 %v532_v50, %v526_v0 }
 0x235   :  { %v513_v42 = vpop.permute.xlu0 %512  ;;  %v539_v40 = vmul.f32 0.05, %v536_v55  ;;  %v547_v63 = vrot.slane %v2904_v18, 1  ;;  %v553_v27 = vrot.slane %v2904_v18, 7  ;;  %v568_v2 = vrot.slane %v2904_v18, 2 }
 0x236   :  { %v229_v58 = vpop.permute.xlu1 %228 }
 0x237   :  { %v232_v20 = vadd.f32 %v229_v58, %v223_v26  ;;  %v2909_v43 = vadd.f32 %v539_v40, %v521_v10  ;;  %v574_v26 = vrot.slane %v2904_v18, 6  ;;  %v779_v10 = vsel %vm2623_vm11, %v2829_v59, %v3375_v56 }
 0x239   :  { %v2907_v19 = vpop.permute.xlu0 %1604  ;;  %v235_v6 = vmul.f32 0.25, %v232_v20  ;;  %v548_v0 = vrot.slane %v2909_v43, 1  ;;  %v554_v34 = vrot.slane %v2909_v43, 7  ;;  %v569_v21 = vrot.slane %v2909_v43, 2 }
 0x23a   :  { %v250_v62 = vpop.permute.xlu1 %249  ;;  %v575_v8 = vrot.slane %v2909_v43, 6  ;;  %v2963_v20 = vsel %vm211_vm12, %v2843_v23, %v779_v10 }
 0x23b   :  { %v253_v5 = vadd.f32 %v250_v62, %v244_v7  ;;  %v2928_v32 = vsel %vm103_vm0, %v547_v63, %v548_v0  ;;  %v2934_v14 = vsel %vm110_vm1, %v553_v27, %v554_v34  ;;  %v2940_v1 = vsel %vm126_vm2, %v568_v2, %v569_v21 }
 0x23c   :  { %v238_v16 = vadd.f32 %v235_v6, %v217_v47  ;;  %v2950_v50 = vsel %vm133_vm3, %v574_v26, %v575_v8 }
 0x23d   :  { %v256_v31 = vmul.f32 0.05, %v253_v5 }
 0x23e   :  { %v767_v11 = vpop.permute.xlu0 %766  ;;  %v507_v55 = vpop.permute.xlu1 %506 }
 0x23f   :  { %v2944_v7 = vsel %vm211_vm12, %v767_v11, %v777_v57  ;;  %v259_v40 = vadd.f32 %v256_v31, %v238_v16  ;;  %v516_v58 = vadd.f32 %v513_v42, %v507_v55  ;;  %v261_v55 = vmul.f32 0.4, %v2866_v52 }
 0x240   :  { %786 = vrot.lane.b32.xlu0 %v2944_v7, %s1912_s13  ;;  %792 = vrot.lane.b32.xlu1 %v2944_v7, %s1913_s14 }
 0x241   :  { %v265_v63 = vrot.slane %v259_v40, 1  ;;  %v271_v6 = vrot.slane %v259_v40, 7  ;;  %v286_v2 = vrot.slane %v259_v40, 2  ;;  %v292_v34 = vrot.slane %v259_v40, 6 }
 0x242   :  { %v519_v62 = vmul.f32 0.25, %v516_v58  ;;  %v534_v8 = vpop.permute.xlu0 %533  ;;  %v528_v47 = vpop.permute.xlu1 %527 }
 0x243   :  { %v266_v59 = vsel %vm103_vm0, %v264_v45, %v265_v63  ;;  %v274_v23 = vsel %vm110_vm1, %v271_v6, %v269_v46  ;;  %v287_v42 = vsel %vm126_vm2, %v285_v37, %v286_v2  ;;  %v295_v5 = vsel %vm133_vm3, %v292_v34, %v290_v25  ;;  %v3376_v34 = vld [vmem:[#allocation13_spill] sm:$0xff] }
 0x244   :  { %796 = vrot.lane.b32.xlu1 %v2963_v20, %s1913_s14  ;;  %790 = vrot.lane.b32.xlu0 %v2963_v20, %s1912_s13  ;;  %v275_v57 = vadd.f32 %v274_v23, %v2883_v44  ;;  %v276_v11 = vadd.f32 %v2889_v22, %v266_v59  ;;  %v296_v45 = vadd.f32 %v295_v5, %v2895_v38  ;;  %v501_v46 = vmul.f32 0.4, %v2777_v49  ;;  %v1854_v59 = vld [vmem:[#allocation2 + $0x8] sm:$0xff] }
 0x245   :  { %v297_v16 = vadd.f32 %v2901_v60, %v287_v42  ;;  %v537_v31 = vadd.f32 %v534_v8, %v528_v47  ;;  %v260_v37 = vmul.f32 0.4, %v2869_v4  ;;  %v1853_v8 = vld [vmem:[#allocation2] sm:$0xff] }
 0x246   :  { %v278_v56 = vmul.f32 0.25, %v275_v57  ;;  %v279_v10 = vmul.f32 0.25, %v276_v11  ;;  %v522_v25 = vadd.f32 %v519_v62, %v501_v46  ;;  %v299_v60 = vmul.f32 0.05, %v296_v45 }
 0x247   :  { %v540_v44 = vmul.f32 0.05, %v537_v31  ;;  %v300_v40 = vmul.f32 0.05, %v297_v16  ;;  %v1062_v62 = vsel %vm2623_vm11, %v2845_v3, %v3376_v34  ;;  %v545_v46 = vmul.f32 0.4, %v2909_v43 }
 0x248   :  { %809 = vrot.lane.b32.xlu1 %v2839_v51, %s1914_s0  ;;  %794 = vrot.lane.b32.xlu0 %v2839_v51, %s1913_s14  ;;  %v281_v22 = vadd.f32 %v278_v56, %v260_v37  ;;  %v282_v38 = vadd.f32 %v279_v10, %v261_v55 }
 0x249   :  { %v543_v49 = vadd.f32 %v540_v44, %v522_v25  ;;  %v1051_v25 = vpop.permute.xlu0 %1050 }
 0x24a   :  { %v302_v58 = vadd.f32 %v299_v60, %v281_v22  ;;  %v303_v63 = vadd.f32 %v300_v40, %v282_v38  ;;  %v1855_v22 = vld [vmem:[#allocation2 + $0x18] sm:$0xff]  ;;  %v1856_v60 = vld [vmem:[#allocation2 + $0x20] sm:$0xff] }
 0x24b   :  { %v549_v52 = vrot.slane %v543_v49, 1  ;;  %v555_v4 = vrot.slane %v543_v49, 7  ;;  %v570_v6 = vrot.slane %v543_v49, 2  ;;  %v576_v2 = vrot.slane %v543_v49, 6  ;;  %v3377_v49 = vld [vmem:[#allocation14_spill] sm:$0xff] }
 0x24c   :  { %813 = vrot.lane.b32.xlu1 %v2944_v7, %s1915_s15  ;;  %807 = vrot.lane.b32.xlu0 %v2944_v7, %s1914_s0  ;;  %v305_v47 = vsub.f32 %v1853_v8, %v302_v58  ;;  %v306_v23 = vsub.f32 %v1854_v59, %v303_v63 }
 0x24d   :  { %v550_v42 = vsel %vm103_vm0, %v548_v0, %v549_v52  ;;  %v558_v5 = vsel %vm110_vm1, %v555_v4, %v553_v27  ;;  %v571_v57 = vsel %vm126_vm2, %v569_v21, %v570_v6  ;;  %v579_v3 = vsel %vm133_vm3, %v576_v2, %v574_v26 }
 0x24e   :  { %v308_v11 = vmul.f32 %v305_v47, %v305_v47  ;;  %v309_v45 = vmul.f32 %v306_v23, %v306_v23  ;;  %v559_v16 = vadd.f32 %v558_v5, %v2928_v32  ;;  %v560_v0 = vadd.f32 %v2934_v14, %v550_v42 }
 0x24f   :  { %v544_v27 = vmul.f32 0.4, %v2904_v18  ;;  %v580_v21 = vadd.f32 %v579_v3, %v2940_v1  ;;  %v581_v31 = vadd.f32 %v2950_v50, %v571_v57  ;;  %v3033_v14 = vsel %vm211_vm12, %v2851_v36, %v1062_v62 }
 0x250   :  { %817 = vrot.lane.b32.xlu1 %v2963_v20, %s1915_s15  ;;  %811 = vrot.lane.b32.xlu0 %v2963_v20, %s1914_s0  ;;  %v311_v26 = vadd.f32 1e-06, %v308_v11  ;;  %v312_v55 = vadd.f32 1e-06, %v309_v45  ;;  %v562_v37 = vmul.f32 0.25, %v559_v16  ;;  %v563_v32 = vmul.f32 0.25, %v560_v0  ;;  %v1335_v0 = vpop.permute.xlu0 %1334 }
 0x251   :  { %v583_v56 = vmul.f32 0.05, %v580_v21  ;;  %v584_v43 = vmul.f32 0.05, %v581_v31  ;;  %v1061_v1 = vsel %vm2623_vm11, %v2853_v41, %v3372_v48  ;;  %v1063_v48 = vsel %vm2623_vm11, %v2847_v61, %v3377_v49  ;;  %v1343_v21 = vpop.permute.xlu1 %1342 }
 0x252   :  { %v565_v18 = vadd.f32 %v562_v37, %v544_v27  ;;  %v566_v10 = vadd.f32 %v563_v32, %v545_v46  ;;  %1829 = vrsqrt.f32 %v311_v26  ;;  %v3045_v44 = vsel %vm211_vm12, %v1051_v25, %v1061_v1 }
 0x253   :  { %1831 = vrsqrt.f32 %v312_v55  ;;  %v3058_v63 = vsel %vm211_vm12, %v2855_v28, %v1063_v48  ;;  %vm316_vm14 = vcmp.eq.f32.partialorder %v311_v26, inf  ;;  %v319_v2 = vand.u32 2147483648, %v311_v26 }
 0x254   :  { %1072 = vrot.lane.b32.xlu1 %v3033_v14, %s1912_s13  ;;  %815 = vrot.lane.b32.xlu0 %v2839_v51, %s1915_s15  ;;  %v586_v36 = vadd.f32 %v583_v56, %v565_v18  ;;  %v587_v50 = vadd.f32 %v584_v43, %v566_v10  ;;  %vm318_vm15 = vcmp.eq.f32.partialorder %v311_v26, 0.0  ;;  %vm323_vm4 = vcmp.eq.f32.partialorder %v312_v55, inf }
 0x255   :  { %v326_v8 = vand.u32 2147483648, %v312_v55  ;;  %vm325_vm5 = vcmp.eq.f32.partialorder %v312_v55, 0.0  ;;  %v1346_v3 = vsel %vm2623_vm11, %v2859_v12, %v2637_v54  ;;  %v1345_v46 = vsel %vm2623_vm11, %v2857_v13, %v2629_v24  ;;  %v1610_v43 = vpop.permute.xlu1 %1609 }
 0x256   :  { %v589_v38 = vsub.f32 %v1855_v22, %v586_v36  ;;  %v590_v40 = vsub.f32 %v1856_v60, %v587_v50  ;;  %v3090_v45 = vsel %vm211_vm12, %v2863_v15, %v1346_v3  ;;  %v1347_v56 = vsel %vm2623_vm11, %v2861_v9, %v2662_v30  ;;  %v1619_v36 = vpop.permute.xlu0 %1618 }
 0x257   :  { %v3118_v10 = vsel %vm211_vm12, %v1343_v21, %v1347_v56  ;;  %v1630_v9 = vsel %vm2623_vm11, %v1610_v43, %v2809_v29  ;;  %v1629_v50 = vsel %vm2623_vm11, %v2907_v19, %v2792_v33 }
 0x258   :  { %1076 = vrot.lane.b32.xlu1 %v3045_v44, %s1913_s14  ;;  %1070 = vrot.lane.b32.xlu0 %v3045_v44, %s1912_s13  ;;  %v592_v41 = vmul.f32 %v589_v38, %v589_v38  ;;  %v593_v58 = vmul.f32 %v590_v40, %v590_v40  ;;  %v3153_v22 = vsel %vm211_vm12, %v1619_v36, %v1629_v50 }
 0x259   :  { %v1615_v25 = vpop.permute.xlu1 %1614 }
 0x25a   :  { %v595_v52 = vadd.f32 1e-06, %v592_v41  ;;  %v596_v4 = vadd.f32 1e-06, %v593_v58  ;;  %v1631_v38 = vsel %vm2623_vm11, %v1615_v25, %v2826_v39 }
 0x25c   :  { %1080 = vrot.lane.b32.xlu1 %v3058_v63, %s1913_s14  ;;  %1074 = vrot.lane.b32.xlu0 %v3058_v63, %s1912_s13  ;;  %1833 = vrsqrt.f32 %v595_v52  ;;  %vm600_vm6 = vcmp.eq.f32.partialorder %v595_v52, inf  ;;  %v603_v54 = vand.u32 2147483648, %v595_v52  ;;  %vm602_vm7 = vcmp.eq.f32.partialorder %v595_v52, 0.0 }
 0x25d   :  { %1835 = vrsqrt.f32 %v596_v4  ;;  %vm607_vm8 = vcmp.eq.f32.partialorder %v596_v4, inf  ;;  %v610_v31 = vand.u32 2147483648, %v596_v4  ;;  %vm609_vm9 = vcmp.eq.f32.partialorder %v596_v4, 0.0  ;;  %v1623_v30 = vpop.permute.xlu1 %1622 }
 0x25e   :  { %v3141_v1 = vsel %vm211_vm12, %v1623_v30, %v1630_v9 }
 0x25f   :  { %v1830_v61 = vpop.eup %1829 }
 0x260   :  { %1093 = vrot.lane.b32.xlu1 %v3033_v14, %s1914_s0  ;;  %1078 = vrot.lane.b32.xlu0 %v3033_v14, %s1913_s14  ;;  %v1832_v6 = vpop.eup %1831  ;;  %v315_v28 = vmul.f32 %v1830_v61, %v311_v26 }
 0x261   :  { %v322_v34 = vmul.f32 %v1832_v6, %v312_v55  ;;  %v1627_v29 = vpop.permute.xlu1 %1626 }
 0x262   :  { %v317_v62 = vsel %vm316_vm14, %v311_v26, %v315_v28  ;;  %v3102_v26 = vsel %vm211_vm12, %v1335_v0, %v1345_v46  ;;  %v3164_v60 = vsel %vm211_vm12, %v1627_v29, %v1631_v38  ;;  %v784_v46 = vmul.f32 0.4, %v2839_v51 }
 0x263   :  { %v320_v47 = vsel %vm318_vm15, %v319_v2, %v317_v62  ;;  %v324_v59 = vsel %vm323_vm4, %v312_v55, %v322_v34 }
 0x264   :  { %1097 = vrot.lane.b32.xlu1 %v3045_v44, %s1915_s15  ;;  %1091 = vrot.lane.b32.xlu0 %v3045_v44, %s1914_s0  ;;  %v327_v23 = vsel %vm325_vm5, %v326_v8, %v324_v59  ;;  %v335_v42 = vsel %vm45_vm13, %v320_v47, 0.0  ;;  %v785_v8 = vmul.f32 0.4, %v2963_v20  ;;  %v783_v59 = vmul.f32 0.4, %v2944_v7 }
 0x265   :  { %v336_v5 = vsel %vm45_vm13, %v327_v23, 0.0  ;;  %v789_v17 = vpop.permute.xlu1 %788 }
 0x266   :  { %v3079_v57 = vadd.f32 %v336_v5, %v335_v42 }
 0x268   :  { %1101 = vrot.lane.b32.xlu1 %v3058_v63, %s1915_s15  ;;  %1095 = vrot.lane.b32.xlu0 %v3058_v63, %s1914_s0 }
 0x269   :  { %v1834_v11 = vpop.eup %1833 }
 0x26a   :  { %v1836_v16 = vpop.eup %1835  ;;  %v599_v27 = vmul.f32 %v1834_v11, %v595_v52 }
 0x26b   :  { %v606_v12 = vmul.f32 %v1836_v16, %v596_v4 }
 0x26c   :  { %1356 = vrot.lane.b32.xlu1 %v3090_v45, %s1912_s13  ;;  %1099 = vrot.lane.b32.xlu0 %v3033_v14, %s1915_s15  ;;  %v601_v15 = vsel %vm600_vm6, %v595_v52, %v599_v27 }
 0x26d   :  { %v604_v55 = vsel %vm602_vm7, %v603_v54, %v601_v15  ;;  %v608_v37 = vsel %vm607_vm8, %v596_v4, %v606_v12 }
 0x26e   :  { %v611_v24 = vsel %vm609_vm9, %v610_v31, %v608_v37  ;;  %v619_v13 = vsel %vm45_vm13, %v604_v55, 0.0 }
 0x26f   :  { %v620_v32 = vsel %vm45_vm13, %v611_v24, 0.0 }
 0x270   :  { %1360 = vrot.lane.b32.xlu1 %v3102_v26, %s1913_s14  ;;  %1354 = vrot.lane.b32.xlu0 %v3102_v26, %s1912_s13  ;;  %v622_v18 = vadd.f32 %v620_v32, %v619_v13 }
 0x274   :  { %1364 = vrot.lane.b32.xlu1 %v3118_v10, %s1913_s14  ;;  %1358 = vrot.lane.b32.xlu0 %v3118_v10, %s1912_s13 }
 0x278   :  { %1377 = vrot.lane.b32.xlu1 %v3090_v45, %s1914_s0  ;;  %1362 = vrot.lane.b32.xlu0 %v3090_v45, %s1913_s14 }
 0x27c   :  { %1381 = vrot.lane.b32.xlu1 %v3102_v26, %s1915_s15  ;;  %1375 = vrot.lane.b32.xlu0 %v3102_v26, %s1914_s0 }
 0x280   :  { %1385 = vrot.lane.b32.xlu1 %v3118_v10, %s1915_s15  ;;  %1379 = vrot.lane.b32.xlu0 %v3118_v10, %s1914_s0 }
 0x284   :  { %1640 = vrot.lane.b32.xlu1 %v3141_v1, %s1912_s13  ;;  %1383 = vrot.lane.b32.xlu0 %v3090_v45, %s1915_s15 }
 0x288   :  { %1644 = vrot.lane.b32.xlu1 %v3153_v22, %s1913_s14  ;;  %1638 = vrot.lane.b32.xlu0 %v3153_v22, %s1912_s13 }
 0x28c   :  { %1648 = vrot.lane.b32.xlu1 %v3164_v60, %s1913_s14  ;;  %1642 = vrot.lane.b32.xlu0 %v3164_v60, %s1912_s13 }
 0x290   :  { %1661 = vrot.lane.b32.xlu1 %v3141_v1, %s1914_s0  ;;  %1646 = vrot.lane.b32.xlu0 %v3141_v1, %s1913_s14 }
 0x294   :  { %1665 = vrot.lane.b32.xlu1 %v3153_v22, %s1915_s15  ;;  %1659 = vrot.lane.b32.xlu0 %v3153_v22, %s1914_s0 }
 0x298   :  { %1669 = vrot.lane.b32.xlu1 %v3164_v60, %s1915_s15  ;;  %1663 = vrot.lane.b32.xlu0 %v3164_v60, %s1914_s0 }
 0x29c   :  { %1667 = vrot.lane.b32.xlu0 %v3141_v1, %s1915_s15 }
 0x2b2   :  { %v787_v33 = vpop.permute.xlu0 %786  ;;  %v793_v39 = vpop.permute.xlu1 %792 }
 0x2b3   :  { %v798_v4 = vadd.f32 %v793_v39, %v787_v33 }
 0x2b5   :  { %v801_v62 = vmul.f32 0.25, %v798_v4 }
 0x2b6   :  { %v791_v19 = vpop.permute.xlu0 %790  ;;  %v797_v40 = vpop.permute.xlu1 %796 }
 0x2b7   :  { %v800_v41 = vadd.f32 %v797_v40, %v791_v19  ;;  %v804_v16 = vadd.f32 %v801_v62, %v783_v59 }
 0x2b9   :  { %v803_v61 = vmul.f32 0.25, %v800_v41 }
 0x2ba   :  { %v795_v49 = vpop.permute.xlu0 %794  ;;  %v810_v48 = vpop.permute.xlu1 %809 }
 0x2bb   :  { %340 = vadd.xlane.f32.xlu0 %v3079_v57  ;;  %v799_v2 = vadd.f32 %v795_v49, %v789_v17  ;;  %v806_v23 = vadd.f32 %v803_v61, %v785_v8 }
 0x2bc   :  { %624 = vadd.xlane.f32.xlu1 %v622_v18 }
 0x2bd   :  { %v802_v3 = vmul.f32 0.25, %v799_v2 }
 0x2be   :  { %v808_v58 = vpop.permute.xlu0 %807  ;;  %v814_v52 = vpop.permute.xlu1 %813 }
 0x2bf   :  { %v819_v6 = vadd.f32 %v814_v52, %v808_v58  ;;  %v805_v21 = vadd.f32 %v802_v3, %v784_v46  ;;  %v1858_v46 = vld [vmem:[#allocation2 + $0x38] sm:$0xff] }
 0x2c1   :  { %v822_v42 = vmul.f32 0.05, %v819_v6 }
 0x2c2   :  { %v818_v28 = vpop.permute.xlu1 %817  ;;  %v812_v34 = vpop.permute.xlu0 %811 }
 0x2c3   :  { %v821_v47 = vadd.f32 %v818_v28, %v812_v34  ;;  %v825_v54 = vadd.f32 %v822_v42, %v804_v16 }
 0x2c5   :  { %v824_v5 = vmul.f32 0.05, %v821_v47  ;;  %v831_v7 = vrot.slane %v825_v54, 1  ;;  %v837_v24 = vrot.slane %v825_v54, 7  ;;  %v858_v13 = vrot.slane %v825_v54, 6 }
 0x2c6   :  { %v1073_v57 = vpop.permute.xlu1 %1072  ;;  %v816_v11 = vpop.permute.xlu0 %815  ;;  %v852_v36 = vrot.slane %v825_v54, 2  ;;  %v828_v61 = vmul.f32 0.4, %v825_v54 }
 0x2c7   :  { %v827_v0 = vadd.f32 %v824_v5, %v806_v23  ;;  %v820_v27 = vadd.f32 %v816_v11, %v810_v48 }
 0x2c9   :  { %v823_v15 = vmul.f32 0.05, %v820_v27  ;;  %v839_v20 = vrot.slane %v827_v0, 7  ;;  %v860_v55 = vrot.slane %v827_v0, 6  ;;  %v833_v32 = vrot.slane %v827_v0, 1 }
 0x2ca   :  { %v1077_v12 = vpop.permute.xlu1 %1076  ;;  %v1071_v31 = vpop.permute.xlu0 %1070  ;;  %v854_v18 = vrot.slane %v827_v0, 2  ;;  %v1857_v0 = vld [vmem:[#allocation2 + $0x30] sm:$0xff] }
 0x2cb   :  { %v826_v37 = vadd.f32 %v823_v15, %v805_v21  ;;  %v842_v51 = vsel %vm110_vm1, %v839_v20, %v837_v24  ;;  %v863_v50 = vsel %vm133_vm3, %v860_v55, %v858_v13  ;;  %v1082_v23 = vadd.f32 %v1077_v12, %v1071_v31 }
 0x2cc   :  { %v1069_v12 = vmul.f32 0.4, %v3058_v63 }
 0x2cd   :  { %v832_v43 = vrot.slane %v826_v37, 1  ;;  %v838_v25 = vrot.slane %v826_v37, 7  ;;  %v853_v30 = vrot.slane %v826_v37, 2  ;;  %v859_v29 = vrot.slane %v826_v37, 6 }
 0x2ce   :  { %v1081_v56 = vpop.permute.xlu1 %1080  ;;  %v1075_v9 = vpop.permute.xlu0 %1074  ;;  %v829_v6 = vmul.f32 0.4, %v826_v37  ;;  %v1085_v20 = vmul.f32 0.25, %v1082_v23 }
 0x2cf   :  { %v834_v38 = vsel %vm103_vm0, %v832_v43, %v833_v32  ;;  %v835_v17 = vsel %vm103_vm0, %v831_v7, %v832_v43  ;;  %v841_v33 = vsel %vm110_vm1, %v837_v24, %v838_v25  ;;  %v855_v39 = vsel %vm126_vm2, %v853_v30, %v854_v18 }
 0x2d0   :  { %v843_v19 = vadd.f32 %v842_v51, %v835_v17  ;;  %v844_v40 = vadd.f32 %v841_v33, %v834_v38  ;;  %v856_v49 = vsel %vm126_vm2, %v852_v36, %v853_v30  ;;  %v862_v48 = vsel %vm133_vm3, %v858_v13, %v859_v29 }
 0x2d1   :  { %v864_v58 = vadd.f32 %v863_v50, %v856_v49  ;;  %v865_v52 = vadd.f32 %v862_v48, %v855_v39  ;;  %v1084_v42 = vadd.f32 %v1081_v56, %v1075_v9  ;;  %v1067_v32 = vmul.f32 0.4, %v3045_v44 }
 0x2d2   :  { %v1094_v41 = vpop.permute.xlu1 %1093  ;;  %v1079_v4 = vpop.permute.xlu0 %1078  ;;  %v846_v28 = vmul.f32 0.25, %v843_v19  ;;  %v847_v2 = vmul.f32 0.25, %v844_v40  ;;  %v1068_v51 = vmul.f32 0.4, %v3033_v14 }
 0x2d3   :  { %v867_v8 = vmul.f32 0.05, %v864_v58  ;;  %v868_v47 = vmul.f32 0.05, %v865_v52  ;;  %v1083_v15 = vadd.f32 %v1079_v4, %v1073_v57  ;;  %v1087_v55 = vmul.f32 0.25, %v1084_v42 }
 0x2d4   :  { %v849_v34 = vadd.f32 %v846_v28, %v828_v61  ;;  %v850_v62 = vadd.f32 %v847_v2, %v829_v6  ;;  %v1088_v25 = vadd.f32 %v1085_v20, %v1067_v32 }
 0x2d5   :  { %v1086_v18 = vmul.f32 0.25, %v1083_v15  ;;  %v1090_v30 = vadd.f32 %v1087_v55, %v1069_v12 }
 0x2d6   :  { %v1098_v59 = vpop.permute.xlu1 %1097  ;;  %v1092_v5 = vpop.permute.xlu0 %1091  ;;  %v870_v3 = vadd.f32 %v867_v8, %v849_v34  ;;  %v871_v11 = vadd.f32 %v868_v47, %v850_v62 }
 0x2d7   :  { %v1103_v16 = vadd.f32 %v1098_v59, %v1092_v5  ;;  %v1089_v63 = vadd.f32 %v1086_v18, %v1068_v51 }
 0x2d8   :  { %v873_v27 = vsub.f32 %v1857_v0, %v870_v3  ;;  %v874_v21 = vsub.f32 %v1858_v46, %v871_v11 }
 0x2d9   :  { %v1106_v31 = vmul.f32 0.05, %v1103_v16 }
 0x2da   :  { %v1102_v54 = vpop.permute.xlu1 %1101  ;;  %v1096_v37 = vpop.permute.xlu0 %1095  ;;  %v876_v7 = vmul.f32 %v873_v27, %v873_v27  ;;  %v877_v24 = vmul.f32 %v874_v21, %v874_v21 }
 0x2db   :  { %v1105_v13 = vadd.f32 %v1102_v54, %v1096_v37  ;;  %v1109_v44 = vadd.f32 %v1106_v31, %v1088_v25  ;;  %v1351_v37 = vmul.f32 0.4, %v3102_v26 }
 0x2dc   :  { %v3206_v56 = vadd.f32 1e-06, %v877_v24  ;;  %v3210_v36 = vadd.f32 1e-06, %v876_v7 }
 0x2dd   :  { %v1108_v57 = vmul.f32 0.05, %v1105_v13  ;;  %v1115_v49 = vrot.slane %v1109_v44, 1  ;;  %v1121_v48 = vrot.slane %v1109_v44, 7  ;;  %v1142_v58 = vrot.slane %v1109_v44, 6 }
 0x2de   :  { %v3208_v43 = vpop.permute.xlu1 %1356  ;;  %v1100_v9 = vpop.permute.xlu0 %1099  ;;  %1837 = vrsqrt.f32 %v3206_v56  ;;  %v1136_v28 = vrot.slane %v1109_v44, 2  ;;  %v1112_v21 = vmul.f32 0.4, %v1109_v44  ;;  %vm891_vm10 = vcmp.eq.f32.partialorder %v3206_v56, inf }
 0x2df   :  { %v1104_v50 = vadd.f32 %v1100_v9, %v1094_v41  ;;  %v1111_v29 = vadd.f32 %v1108_v57, %v1090_v30  ;;  %1839 = vrsqrt.f32 %v3210_v36  ;;  %vm893_vm11 = vcmp.eq.f32.partialorder %v3206_v56, 0.0 }
 0x2e0   :  { %vm884_vm12 = vcmp.eq.f32.partialorder %v3210_v36, inf  ;;  %vm886_vm14 = vcmp.eq.f32.partialorder %v3210_v36, 0.0  ;;  %v894_v44 = vand.u32 2147483648, %v3206_v56 }
 0x2e1   :  { %v1107_v38 = vmul.f32 0.05, %v1104_v50  ;;  %v1123_v33 = vrot.slane %v1111_v29, 7  ;;  %v1144_v39 = vrot.slane %v1111_v29, 6  ;;  %v1117_v52 = vrot.slane %v1111_v29, 1 }
 0x2e2   :  { %v1361_v17 = vpop.permute.xlu1 %1360  ;;  %v1355_v19 = vpop.permute.xlu0 %1354  ;;  %v1138_v4 = vrot.slane %v1111_v29, 2 }
 0x2e3   :  { %v1110_v40 = vadd.f32 %v1107_v38, %v1089_v63  ;;  %v1126_v2 = vsel %vm110_vm1, %v1123_v33, %v1121_v48  ;;  %v1147_v34 = vsel %vm133_vm3, %v1144_v39, %v1142_v58  ;;  %v1366_v7 = vadd.f32 %v1361_v17, %v1355_v19  ;;  %v1859_v33 = vld [vmem:[#allocation2 + $0x48] sm:$0xff]  ;;  %v1860_v19 = vld [vmem:[#allocation2 + $0x50] sm:$0xff] }
 0x2e4   :  { %v887_v38 = vand.u32 2147483648, %v3210_v36 }
 0x2e5   :  { %v1116_v14 = vrot.slane %v1110_v40, 1  ;;  %v1122_v41 = vrot.slane %v1110_v40, 7  ;;  %v1137_v61 = vrot.slane %v1110_v40, 2  ;;  %v1143_v62 = vrot.slane %v1110_v40, 6 }
 0x2e6   :  { %v1365_v6 = vpop.permute.xlu1 %1364  ;;  %v1359_v8 = vpop.permute.xlu0 %1358  ;;  %v1113_v15 = vmul.f32 0.4, %v1110_v40  ;;  %v1369_v29 = vmul.f32 0.25, %v1366_v7 }
 0x2e7   :  { %v1118_v47 = vsel %vm103_vm0, %v1116_v14, %v1117_v52  ;;  %v1119_v59 = vsel %vm103_vm0, %v1115_v49, %v1116_v14  ;;  %v1125_v23 = vsel %vm110_vm1, %v1121_v48, %v1122_v41  ;;  %v1139_v42 = vsel %vm126_vm2, %v1137_v61, %v1138_v4 }
 0x2e8   :  { %v1127_v5 = vadd.f32 %v1126_v2, %v1119_v59  ;;  %v1128_v3 = vadd.f32 %v1125_v23, %v1118_v47  ;;  %v1140_v11 = vsel %vm126_vm2, %v1136_v28, %v1137_v61  ;;  %v1146_v16 = vsel %vm133_vm3, %v1142_v58, %v1143_v62 }
 0x2e9   :  { %v1148_v0 = vadd.f32 %v1147_v34, %v1140_v11  ;;  %v1149_v27 = vadd.f32 %v1146_v16, %v1139_v42  ;;  %v1368_v25 = vadd.f32 %v1365_v6, %v1359_v8  ;;  %v1372_v47 = vadd.f32 %v1369_v29, %v1351_v37 }
 0x2ea   :  { %v1378_v46 = vpop.permute.xlu1 %1377  ;;  %v1130_v54 = vmul.f32 0.25, %v1127_v5  ;;  %v1131_v20 = vmul.f32 0.25, %v1128_v3  ;;  %v1363_v55 = vpop.permute.xlu0 %1362  ;;  %v1352_v16 = vmul.f32 0.4, %v3090_v45 }
 0x2eb   :  { %v1838_v24 = vpop.eup %1837  ;;  %v1151_v12 = vmul.f32 0.05, %v1148_v0  ;;  %v1152_v31 = vmul.f32 0.05, %v1149_v27  ;;  %v1371_v58 = vmul.f32 0.25, %v1368_v25  ;;  %v1367_v52 = vadd.f32 %v1363_v55, %v3208_v43 }
 0x2ec   :  { %v1133_v13 = vadd.f32 %v1130_v54, %v1112_v21  ;;  %v1134_v32 = vadd.f32 %v1131_v20, %v1113_v15  ;;  %v1840_v18 = vpop.eup %1839  ;;  %v890_v57 = vmul.f32 %v1838_v24, %v3206_v56  ;;  %v1353_v43 = vmul.f32 0.4, %v3118_v10 }
 0x2ed   :  { %v883_v50 = vmul.f32 %v1840_v18, %v3210_v36 }
 0x2ee   :  { %v1382_v30 = vpop.permute.xlu1 %1381  ;;  %v1154_v26 = vadd.f32 %v1151_v12, %v1133_v13  ;;  %v1155_v9 = vadd.f32 %v1152_v31, %v1134_v32  ;;  %v1376_v51 = vpop.permute.xlu0 %1375  ;;  %v892_v17 = vsel %vm891_vm10, %v3206_v56, %v890_v57  ;;  %v1374_v42 = vadd.f32 %v1371_v58, %v1353_v43 }
 0x2ef   :  { %v1387_v63 = vadd.f32 %v1382_v30, %v1376_v51  ;;  %v885_v49 = vsel %vm884_vm12, %v3210_v36, %v883_v50  ;;  %v895_v48 = vsel %vm893_vm11, %v894_v44, %v892_v17  ;;  %v1370_v36 = vmul.f32 0.25, %v1367_v52 }
 0x2f0   :  { %v1157_v39 = vsub.f32 %v1859_v33, %v1154_v26  ;;  %v1158_v40 = vsub.f32 %v1860_v19, %v1155_v9  ;;  %v888_v14 = vsel %vm886_vm14, %v887_v38, %v885_v49  ;;  %v904_v41 = vsel %vm45_vm13, %v895_v48, 0.0 }
 0x2f1   :  { %v1390_v28 = vmul.f32 0.05, %v1387_v63  ;;  %v903_v34 = vsel %vm45_vm13, %v888_v14, 0.0  ;;  %v1373_v21 = vadd.f32 %v1370_v36, %v1352_v16 }
 0x2f2   :  { %v1386_v4 = vpop.permute.xlu1 %1385  ;;  %v1160_v61 = vmul.f32 %v1157_v39, %v1157_v39  ;;  %v1161_v6 = vmul.f32 %v1158_v40, %v1158_v40  ;;  %v1380_v2 = vpop.permute.xlu0 %1379  ;;  %v906_v56 = vadd.f32 %v904_v41, %v903_v34 }
 0x2f3   :  { %v1389_v62 = vadd.f32 %v1386_v4, %v1380_v2  ;;  %v1393_v5 = vadd.f32 %v1390_v28, %v1372_v47 }
 0x2f4   :  { %v3255_v8 = vadd.f32 1e-06, %v1161_v6  ;;  %v3258_v59 = vadd.f32 1e-06, %v1160_v61  ;;  %908 = vadd.xlane.f32.xlu0 %v906_v56 }
 0x2f5   :  { %v1392_v3 = vmul.f32 0.05, %v1389_v62  ;;  %v1405_v54 = vrot.slane %v1393_v5, 7  ;;  %v1426_v20 = vrot.slane %v1393_v5, 6  ;;  %v1399_v13 = vrot.slane %v1393_v5, 1 }
 0x2f6   :  { %v3260_v23 = vpop.permute.xlu1 %1640  ;;  %v1384_v11 = vpop.permute.xlu0 %1383  ;;  %1841 = vrsqrt.f32 %v3258_v59  ;;  %v1420_v57 = vrot.slane %v1393_v5, 2  ;;  %v1396_v49 = vmul.f32 0.4, %v1393_v5  ;;  %vm1168_vm15 = vcmp.eq.f32.partialorder %v3258_v59, inf }
 0x2f7   :  { %v1388_v0 = vadd.f32 %v1384_v11, %v1378_v46  ;;  %1843 = vrsqrt.f32 %v3255_v8  ;;  %v1395_v27 = vadd.f32 %v1392_v3, %v1374_v42  ;;  %vm1170_vm4 = vcmp.eq.f32.partialorder %v3258_v59, 0.0 }
 0x2f8   :  { %v1171_v61 = vand.u32 2147483648, %v3258_v59  ;;  %vm1175_vm5 = vcmp.eq.f32.partialorder %v3255_v8, inf  ;;  %v1178_v36 = vand.u32 2147483648, %v3255_v8  ;;  %vm1177_vm6 = vcmp.eq.f32.partialorder %v3255_v8, 0.0 }
 0x2f9   :  { %v1391_v10 = vmul.f32 0.05, %v1388_v0  ;;  %v1407_v55 = vrot.slane %v1395_v27, 7  ;;  %v1428_v37 = vrot.slane %v1395_v27, 6  ;;  %v1401_v32 = vrot.slane %v1395_v27, 1 }
 0x2fa   :  { %v1645_v15 = vpop.permute.xlu1 %1644  ;;  %v1639_v7 = vpop.permute.xlu0 %1638  ;;  %v1422_v46 = vrot.slane %v1395_v27, 2 }
 0x2fb   :  { %v1394_v24 = vadd.f32 %v1391_v10, %v1373_v21  ;;  %v1410_v12 = vsel %vm110_vm1, %v1407_v55, %v1405_v54  ;;  %v1431_v45 = vsel %vm133_vm3, %v1428_v37, %v1426_v20  ;;  %v1650_v56 = vadd.f32 %v1645_v15, %v1639_v7  ;;  %v1861_v10 = vld [vmem:[#allocation2 + $0x60] sm:$0xff] }
 0x2fd   :  { %v1400_v31 = vrot.slane %v1394_v24, 1  ;;  %v1406_v18 = vrot.slane %v1394_v24, 7  ;;  %v1421_v25 = vrot.slane %v1394_v24, 2  ;;  %v1427_v26 = vrot.slane %v1394_v24, 6 }
 0x2fe   :  { %v1649_v30 = vpop.permute.xlu1 %1648  ;;  %v1643_v9 = vpop.permute.xlu0 %1642  ;;  %v1397_v48 = vmul.f32 0.4, %v1394_v24  ;;  %v1653_v7 = vmul.f32 0.25, %v1650_v56 }
 0x2ff   :  { %v1402_v51 = vsel %vm103_vm0, %v1400_v31, %v1401_v32  ;;  %v1403_v50 = vsel %vm103_vm0, %v1399_v13, %v1400_v31  ;;  %v1409_v44 = vsel %vm110_vm1, %v1405_v54, %v1406_v18  ;;  %v1423_v29 = vsel %vm126_vm2, %v1421_v25, %v1422_v46  ;;  %v1862_v54 = vld [vmem:[#allocation2 + $0x68] sm:$0xff] }
 0x300   :  { %v1411_v63 = vadd.f32 %v1410_v12, %v1403_v50  ;;  %v1412_v38 = vadd.f32 %v1409_v44, %v1402_v51  ;;  %v1424_v17 = vsel %vm126_vm2, %v1420_v57, %v1421_v25  ;;  %v1430_v33 = vsel %vm133_vm3, %v1426_v20, %v1427_v26 }
 0x301   :  { %v1432_v39 = vadd.f32 %v1431_v45, %v1424_v17  ;;  %v1433_v19 = vadd.f32 %v1430_v33, %v1423_v29  ;;  %v1652_v3 = vadd.f32 %v1649_v30, %v1643_v9  ;;  %v1635_v31 = vmul.f32 0.4, %v3153_v22 }
 0x302   :  { %v1662_v40 = vpop.permute.xlu1 %1661  ;;  %v1414_v58 = vmul.f32 0.25, %v1411_v63  ;;  %v1415_v52 = vmul.f32 0.25, %v1412_v38  ;;  %v1647_v4 = vpop.permute.xlu0 %1646  ;;  %v1637_v18 = vmul.f32 0.4, %v3164_v60  ;;  %v1636_v29 = vmul.f32 0.4, %v3141_v1 }
 0x303   :  { %v1842_v14 = vpop.eup %1841  ;;  %v1435_v41 = vmul.f32 0.05, %v1432_v39  ;;  %v1436_v34 = vmul.f32 0.05, %v1433_v19  ;;  %v1651_v24 = vadd.f32 %v1647_v4, %v3260_v23  ;;  %v1655_v45 = vmul.f32 0.25, %v1652_v3 }
 0x304   :  { %v1844_v6 = vpop.eup %1843  ;;  %v1417_v28 = vadd.f32 %v1414_v58, %v1396_v49  ;;  %v1418_v2 = vadd.f32 %v1415_v52, %v1397_v48  ;;  %v1167_v62 = vmul.f32 %v1842_v14, %v3258_v59  ;;  %v1656_v9 = vadd.f32 %v1653_v7, %v1635_v31  ;;  %v1864_v31 = vld [vmem:[#allocation2 + $0x80] sm:$0xff] }
 0x305   :  { %v1174_v43 = vmul.f32 %v1844_v6, %v3255_v8  ;;  %v1654_v23 = vmul.f32 0.25, %v1651_v24  ;;  %v1658_v51 = vadd.f32 %v1655_v45, %v1637_v18 }
 0x306   :  { %v1666_v47 = vpop.permute.xlu1 %1665  ;;  %v1438_v42 = vadd.f32 %v1435_v41, %v1417_v28  ;;  %v1439_v5 = vadd.f32 %v1436_v34, %v1418_v2  ;;  %v1660_v11 = vpop.permute.xlu0 %1659  ;;  %v1169_v16 = vsel %vm1168_vm15, %v3258_v59, %v1167_v62 }
 0x307   :  { %v1671_v0 = vadd.f32 %v1666_v47, %v1660_v11  ;;  %v1172_v27 = vsel %vm1170_vm4, %v1171_v61, %v1169_v16  ;;  %v1176_v21 = vsel %vm1175_vm5, %v3255_v8, %v1174_v43  ;;  %v1657_v60 = vadd.f32 %v1654_v23, %v1636_v29 }
 0x308   :  { %v1441_v15 = vsub.f32 %v1861_v10, %v1438_v42  ;;  %v1442_v20 = vsub.f32 %v1862_v54, %v1439_v5  ;;  %v1179_v55 = vsel %vm1177_vm6, %v1178_v36, %v1176_v21  ;;  %v1187_v37 = vsel %vm45_vm13, %v1172_v27, 0.0 }
 0x309   :  { %v1188_v59 = vsel %vm45_vm13, %v1179_v55, 0.0  ;;  %v1674_v57 = vmul.f32 0.05, %v1671_v0 }
 0x30a   :  { %v1670_v13 = vpop.permute.xlu1 %1669  ;;  %v1444_v32 = vmul.f32 %v1441_v15, %v1441_v15  ;;  %v1445_v12 = vmul.f32 %v1442_v20, %v1442_v20  ;;  %v1664_v46 = vpop.permute.xlu0 %1663  ;;  %v1190_v8 = vadd.f32 %v1188_v59, %v1187_v37 }
 0x30b   :  { %v1673_v25 = vadd.f32 %v1670_v13, %v1664_v46  ;;  %v1677_v22 = vadd.f32 %v1674_v57, %v1656_v9  ;;  %v1863_v46 = vld [vmem:[#allocation2 + $0x78] sm:$0xff] }
 0x30c   :  { %v3302_v30 = vadd.f32 1e-06, %v1445_v12  ;;  %1192 = vadd.xlane.f32.xlu1 %v1190_v8  ;;  %v1447_v26 = vadd.f32 1e-06, %v1444_v32 }
 0x30d   :  { %v1676_v50 = vmul.f32 0.05, %v1673_v25  ;;  %v1683_v49 = vrot.slane %v1677_v22, 1  ;;  %v1689_v48 = vrot.slane %v1677_v22, 7  ;;  %v1710_v58 = vrot.slane %v1677_v22, 6 }
 0x30e   :  { %v1668_v44 = vpop.permute.xlu0 %1667  ;;  %1845 = vrsqrt.f32 %v1447_v26  ;;  %v1704_v6 = vrot.slane %v1677_v22, 2  ;;  %v1680_v11 = vmul.f32 0.4, %v1677_v22  ;;  %v1455_v7 = vand.u32 2147483648, %v1447_v26 }
 0x30f   :  { %v1672_v63 = vadd.f32 %v1668_v44, %v1662_v40  ;;  %1847 = vrsqrt.f32 %v3302_v30  ;;  %v1679_v38 = vadd.f32 %v1676_v50, %v1658_v51  ;;  %v1462_v32 = vand.u32 2147483648, %v3302_v30 }
 0x311   :  { %v1675_v17 = vmul.f32 0.05, %v1672_v63  ;;  %v1691_v33 = vrot.slane %v1679_v38, 7  ;;  %v1712_v39 = vrot.slane %v1679_v38, 6  ;;  %v1685_v52 = vrot.slane %v1679_v38, 1 }
 0x312   :  { %v1706_v4 = vrot.slane %v1679_v38, 2 }
 0x313   :  { %v1678_v19 = vadd.f32 %v1675_v17, %v1657_v60  ;;  %v1694_v1 = vsel %vm110_vm1, %v1691_v33, %v1689_v48  ;;  %v1715_v40 = vsel %vm133_vm3, %v1712_v39, %v1710_v58 }
 0x315   :  { %v1684_v14 = vrot.slane %v1678_v19, 1  ;;  %v1690_v41 = vrot.slane %v1678_v19, 7  ;;  %v1705_v61 = vrot.slane %v1678_v19, 2  ;;  %v1711_v28 = vrot.slane %v1678_v19, 6 }
 0x316   :  { %v1681_v16 = vmul.f32 0.4, %v1678_v19 }
 0x317   :  { %v1686_v2 = vsel %vm103_vm0, %v1684_v14, %v1685_v52  ;;  %v1687_v34 = vsel %vm103_vm0, %v1683_v49, %v1684_v14  ;;  %v1693_v62 = vsel %vm110_vm1, %v1689_v48, %v1690_v41  ;;  %v1707_v56 = vsel %vm126_vm2, %v1705_v61, %v1706_v4 }
 0x318   :  { %v1695_v47 = vadd.f32 %v1694_v1, %v1687_v34  ;;  %v1696_v43 = vadd.f32 %v1693_v62, %v1686_v2  ;;  %v1708_v36 = vsel %vm126_vm2, %v1704_v6, %v1705_v61  ;;  %v1714_v42 = vsel %vm133_vm3, %v1710_v58, %v1711_v28 }
 0x319   :  { %v1716_v5 = vadd.f32 %v1715_v40, %v1708_v36  ;;  %v1717_v3 = vadd.f32 %v1714_v42, %v1707_v56  ;;  %vm1452_vm0 = vcmp.eq.f32.partialorder %v1447_v26, inf  ;;  %vm1454_vm1 = vcmp.eq.f32.partialorder %v1447_v26, 0.0 }
 0x31a   :  { %v1698_v0 = vmul.f32 0.25, %v1695_v47  ;;  %v1699_v27 = vmul.f32 0.25, %v1696_v43  ;;  %vm1459_vm2 = vcmp.eq.f32.partialorder %v3302_v30, inf  ;;  %vm1461_vm3 = vcmp.eq.f32.partialorder %v3302_v30, 0.0 }
 0x31b   :  { %v1846_v21 = vpop.eup %1845  ;;  %v1719_v10 = vmul.f32 0.05, %v1716_v5  ;;  %v1720_v55 = vmul.f32 0.05, %v1717_v3 }
 0x31c   :  { %v1848_v15 = vpop.eup %1847  ;;  %v1701_v54 = vadd.f32 %v1698_v0, %v1680_v11  ;;  %v1702_v20 = vadd.f32 %v1699_v27, %v1681_v16  ;;  %v1451_v37 = vmul.f32 %v1846_v21, %v1447_v26 }
 0x31d   :  { %v1458_v24 = vmul.f32 %v1848_v15, %v3302_v30 }
 0x31e   :  { %v1722_v35 = vadd.f32 %v1719_v10, %v1701_v54  ;;  %v1723_v13 = vadd.f32 %v1720_v55, %v1702_v20  ;;  %v1453_v59 = vsel %vm1452_vm0, %v1447_v26, %v1451_v37 }
 0x31f   :  { %v1456_v12 = vsel %vm1454_vm1, %v1455_v7, %v1453_v59  ;;  %v1460_v45 = vsel %vm1459_vm2, %v3302_v30, %v1458_v24 }
 0x320   :  { %v1725_v8 = vsub.f32 %v1863_v46, %v1722_v35  ;;  %v1726_v18 = vsub.f32 %v1864_v31, %v1723_v13  ;;  %v1463_v25 = vsel %vm1461_vm3, %v1462_v32, %v1460_v45  ;;  %v1471_v57 = vsel %vm45_vm13, %v1456_v12, 0.0 }
 0x321   :  { %v1472_v23 = vsel %vm45_vm13, %v1463_v25, 0.0 }
 0x322   :  { %v1728_v9 = vmul.f32 %v1725_v8, %v1725_v8  ;;  %v1729_v26 = vmul.f32 %v1726_v18, %v1726_v18  ;;  %v1474_v51 = vadd.f32 %v1472_v23, %v1471_v57 }
 0x324   :  { %v1732_v50 = vadd.f32 1e-06, %v1729_v26  ;;  %1476 = vadd.xlane.f32.xlu0 %v1474_v51  ;;  %v1731_v44 = vadd.f32 1e-06, %v1728_v9 }
 0x326   :  { %1849 = vrsqrt.f32 %v1731_v44  ;;  %vm1736_vm7 = vcmp.eq.f32.partialorder %v1731_v44, inf  ;;  %v1739_v22 = vand.u32 2147483648, %v1731_v44  ;;  %vm1738_vm8 = vcmp.eq.f32.partialorder %v1731_v44, 0.0 }
 0x327   :  { %1851 = vrsqrt.f32 %v1732_v50  ;;  %vm1743_vm9 = vcmp.eq.f32.partialorder %v1732_v50, inf  ;;  %v1746_v17 = vand.u32 2147483648, %v1732_v50  ;;  %vm1745_vm10 = vcmp.eq.f32.partialorder %v1732_v50, 0.0 }
 0x333   :  { %v1850_v30 = vpop.eup %1849 }
 0x334   :  { %v1852_v29 = vpop.eup %1851  ;;  %v1735_v63 = vmul.f32 %v1850_v30, %v1731_v44 }
 0x335   :  { %v1742_v38 = vmul.f32 %v1852_v29, %v1732_v50 }
 0x336   :  { %v1737_v60 = vsel %vm1736_vm7, %v1731_v44, %v1735_v63 }
 0x337   :  { %v1740_v33 = vsel %vm1738_vm8, %v1739_v22, %v1737_v60  ;;  %v1744_v39 = vsel %vm1743_vm9, %v1732_v50, %v1742_v38 }
 0x338   :  { %v1747_v19 = vsel %vm1745_vm10, %v1746_v17, %v1744_v39  ;;  %v1755_v49 = vsel %vm45_vm13, %v1740_v33, 0.0 }
 0x339   :  { %v1756_v48 = vsel %vm45_vm13, %v1747_v19, 0.0 }
 0x33a   :  { %v1758_v58 = vadd.f32 %v1756_v48, %v1755_v49 }
 0x33c   :  { %1760 = vadd.xlane.f32.xlu0 %v1758_v58 }
 0x344   :  { %v341_v52 = vpop.xlane.xlu0 %340 }
 0x345   :  { %v625_v4 = vpop.xlane.xlu1 %624  ;;  %v342_v14 = vrot.slane %v341_v52, 4 }
 0x346   :  { %v626_v41 = vrot.slane %v625_v4, 4 }
 0x347   :  { %v343_v61 = vadd.f32 %v342_v14, %v341_v52 }
 0x348   :  { %v627_v6 = vadd.f32 %v626_v41, %v625_v4 }
 0x349   :  { %v344_v1 = vrot.slane %v343_v61, 2 }
 0x34a   :  { %v628_v40 = vrot.slane %v627_v6, 2 }
 0x34b   :  { %v345_v28 = vadd.f32 %v344_v1, %v343_v61 }
 0x34c   :  { %v629_v2 = vadd.f32 %v628_v40, %v627_v6 }
 0x34d   :  { %v346_v34 = vrot.slane %v345_v28, 1 }
 0x34e   :  { %v630_v62 = vrot.slane %v629_v2, 1 }
 0x34f   :  { %v347_v56 = vadd.f32 %v346_v34, %v345_v28 }
 0x350   :  { %v631_v47 = vadd.f32 %v630_v62, %v629_v2 }
 0x351   :  { %1789 = vpush %v347_v56 }
 0x352   :  { %1791 = vpush %v631_v47 }
 0x37d   :  { %v909_v53 = vpop.xlane.xlu0 %908 }
 0x37e   :  { %v910_v43 = vrot.slane %v909_v53, 4 }
 0x380   :  { %v911_v36 = vadd.f32 %v910_v43, %v909_v53 }
 0x382   :  { %v912_v42 = vrot.slane %v911_v36, 2  ;;  %s1790_s16 = spop %1789 }
 0x383   :  { %s1792_s17 = spop %1791 }
 0x384   :  { %v913_v5 = vadd.f32 %v912_v42, %v911_v36  ;;  %s635_s19 = sadd.f32 %s1792_s17, %s1790_s16 }
 0x386   :  { %v914_v3 = vrot.slane %v913_v5, 1 }
 0x388   :  { %v915_v11 = vadd.f32 %v914_v3, %v913_v5 }
 0x38a   :  { %1793 = vpush %v915_v11 }
 0x395   :  { %v1193_v16 = vpop.xlane.xlu1 %1192 }
 0x396   :  { %v1194_v0 = vrot.slane %v1193_v16, 4 }
 0x398   :  { %v1195_v27 = vadd.f32 %v1194_v0, %v1193_v16 }
 0x39a   :  { %v1196_v21 = vrot.slane %v1195_v27, 2 }
 0x39c   :  { %v1197_v10 = vadd.f32 %v1196_v21, %v1195_v27 }
 0x39e   :  { %v1198_v15 = vrot.slane %v1197_v10, 1 }
 0x3a0   :  { %v1199_v54 = vadd.f32 %v1198_v15, %v1197_v10 }
 0x3a2   :  { %1795 = vpush %v1199_v54 }
 0x3ad   :  { %v1477_v20 = vpop.xlane.xlu0 %1476 }
 0x3ae   :  { %v1478_v55 = vrot.slane %v1477_v20, 4 }
 0x3b0   :  { %v1479_v37 = vadd.f32 %v1478_v55, %v1477_v20 }
 0x3b2   :  { %v1480_v7 = vrot.slane %v1479_v37, 2 }
 0x3b4   :  { %v1481_v24 = vadd.f32 %v1480_v7, %v1479_v37 }
 0x3b6   :  { %v1482_v35 = vrot.slane %v1481_v24, 1 }
 0x3b8   :  { %v1483_v13 = vadd.f32 %v1482_v35, %v1481_v24 }
 0x3ba   :  { %1797 = vpush %v1483_v13 }
 0x3bb   :  { %s1794_s18 = spop %1793 }
 0x3bc   :  { %s919_s21 = sadd.f32 %s1794_s18, %s635_s19 }
 0x3c5   :  { %v1761_v59 = vpop.xlane.xlu0 %1760 }
 0x3c6   :  { %v1762_v32 = vrot.slane %v1761_v59, 4 }
 0x3c8   :  { %v1763_v12 = vadd.f32 %v1762_v32, %v1761_v59 }
 0x3ca   :  { %v1764_v45 = vrot.slane %v1763_v12, 2 }
 0x3cc   :  { %v1765_v46 = vadd.f32 %v1764_v45, %v1763_v12 }
 0x3ce   :  { %v1766_v8 = vrot.slane %v1765_v46, 1 }
 0x3d0   :  { %v1767_v31 = vadd.f32 %v1766_v8, %v1765_v46 }
 0x3d2   :  { %1799 = vpush %v1767_v31 }
 0x3d3   :  { %s1796_s20 = spop %1795 }
 0x3d4   :  { %s1203_s23 = sadd.f32 %s1796_s20, %s919_s21 }
 0x3eb   :  { %s1798_s22 = spop %1797 }
 0x3ec   :  { %s1487_s24 = sadd.f32 %s1798_s22, %s1203_s23 }
 0x403   :  { %s1800_s27 = spop %1799 }
 0x404   :  { %s1771_s28 = sadd.f32 %s1800_s27, %s1487_s24 }
 0x406   :  { %v1772_v18 = vstv %s1771_s28 }
 0x407   :  { %1773 = vst [vmem:[#allocation5] sm:$0xff] %v1772_v18 }
 0x408   :  { %1896 = shalt.err (!%p1893_p9)
}
 0x409   :  { %1783 = dma.vmem_to_hbm [thread:$0]  %s1781_s26, 128, %s3339_s1, [#allocation4]  }
 0x40a   :  { %1907 = dma.done.wait [#allocation4], 128  }
 0x40b   :  { %1908 = vsyncadd [#allocation4], 4294967168 }
 0x40c   :  { %1787 = vsyncpa [#allocation3], 1 }
 0x40d   :  { %1788 = vsyncpa [#allocation4], 1 }

</bundles_post_ra>
